<compile_context>
chip_gen: v5e
topology: v5e:2x2
jax: 0.10.0
libtpu: 0.0.40
codegen_flags: <defaults>
</compile_context>

<pallas_src>
import jax
import jax.numpy as jnp
from jax.experimental import pallas as pl
from jax.experimental.pallas import tpu as pltpu

KH = KW = 5
PAD = 2  # 5x5 conv, stride 1, padding 2 -> "same" spatial size


def _basic_block_kernel(x_ref, w1_ref, b1_ref, w2_ref, b2_ref, o_ref, pad_ref):
    # x_ref  : (Bb, H, W*C)          f32  lane-dense, unpadded input block
    # w*_ref : (KH*KW*W*C, W*C)      bf16 block-diagonal conv weights (BN scale folded)
    # b*_ref : (1, W*C)              f32  BN bias tiled over width
    # o_ref  : (Bb, H, W*C)          f32
    # pad_ref: (Bb, H+4, (W+4)*C)    f32  scratch holding the zero-padded activation
    Bb, H, WC = x_ref.shape
    WCp = pad_ref.shape[2]
    C = (WCp - WC) // (2 * PAD)

    def build_patches():
        # im2col on the padded scratch -> (Bb*H, KH*KW*W*C), bf16 MXU operand.
        xp = pad_ref[...]                                   # (Bb, H+4, (W+4)*C)
        cols = []
        for kh in range(KH):
            rows = xp[:, kh:kh + H, :]                      # (Bb, H, (W+4)*C)
            for kw in range(KW):
                cols.append(
                    rows[:, :, kw * C:kw * C + WC].reshape(Bb * H, WC))
        return jnp.concatenate(cols, axis=1).astype(jnp.bfloat16)

    # Zero the (small) padded scratch every step -- halo stays zero, interior
    # is overwritten below.  No cross-step scratch state => megacore-safe.
    pad_ref[...] = jnp.zeros_like(pad_ref)
    pad_ref[:, PAD:PAD + H, PAD * C:PAD * C + WC] = x_ref[...]

    # ---- conv1 (+ fused BN scale) as one dense matmul, bias + ReLU in f32 ----
    s1 = build_patches()                                    # (Bb*H, 25*W*C) bf16
    acc1 = jax.lax.dot_general(
        s1, w1_ref[...],
        dimension_numbers=(((1,), (0,)), ((), ())),
        preferred_element_type=jnp.float32)                 # (Bb*H, W*C) f32
    h1 = jnp.maximum(acc1 + b1_ref[...], 0.0)

    # ---- write intermediate back into the padded scratch (halo still zero) ----
    pad_ref[:, PAD:PAD + H, PAD * C:PAD * C + WC] = h1.reshape(Bb, H, WC)

    # ---- conv2 (+ fused BN scale) ----
    s2 = build_patches()
    acc2 = jax.lax.dot_general(
        s2, w2_ref[...],
        dimension_numbers=(((1,), (0,)), ((), ())),
        preferred_element_type=jnp.float32)                 # (Bb*H, W*C) f32

    # ---- bias + residual (lane-dense input) + ReLU, lane-dense store ----
    identity = x_ref[...].reshape(Bb * H, WC)
    out = jnp.maximum(acc2 + b2_ref[...] + identity, 0.0)
    o_ref[...] = out.reshape(Bb, H, WC).astype(o_ref.dtype)


def _fold_conv_bn_weight(w_oihw, scale, W):
    """OIHW conv weight + per-channel BN scale -> bf16 block-diag matmul weight.

    Returns (KH*KW*W*C_in, W*C_out) acting on the width/channel-folded patch
    layout produced in-kernel by build_patches().
    """
    w = jnp.transpose(w_oihw, (2, 3, 1, 0)).astype(jnp.float32)   # HWIO
    w = w * scale.astype(jnp.float32)                             # fold BN scale (O)
    kh, kw, ci, co = w.shape
    eye = jnp.eye(W, dtype=jnp.float32)
    # bd[kh, kw, w1, ci, w2, co] = (w1 == w2) * w[kh, kw, ci, co]
    bd = jnp.einsum('ab,hwio->hwaibo', eye, w)
    return bd.reshape(kh * kw * W * ci, W * co).astype(jnp.bfloat16)


def _pick_b_blk(B, H):
    """Batch-block size: push M = b_blk*H toward ~128 MXU rows, but keep >= 2
    grid steps when the batch allows (v7x dual-TensorCore sharding)."""
    b_blk = min(B, max(1, 128 // H))
    if B > 1:
        b_blk = min(b_blk, max(1, B // 2))
    while B % b_blk:
        b_blk -= 1
    return b_blk


@jax.jit
def basic_block5x5(x_nchw, w1_oihw, scale1, bias1, w2_oihw, scale2, bias2):
    """Fused BasicBlock5x5 forward (stride=1, no downsample). x_nchw: (B,C,H,W) f32."""
    B, C, H, W = x_nchw.shape
    WC = W * C
    WCp = (W + 2 * PAD) * C
    assert WC % 128 == 0, "kernel assumes a lane-dense W*C (multiple of 128)"

    b_blk = _pick_b_blk(B, H)
    grid = (B // b_blk,)

    # NCHW -> NHWC -> fold (W, C) into lanes (free XLA glue).
    x = jnp.transpose(x_nchw, (0, 2, 3, 1)).astype(jnp.float32).reshape(B, H, WC)

    w1 = _fold_conv_bn_weight(w1_oihw, scale1, W)        # (25*W*C, W*C) bf16
    w2 = _fold_conv_bn_weight(w2_oihw, scale2, W)
    b1 = jnp.tile(bias1.astype(jnp.float32), W).reshape(1, WC)
    b2 = jnp.tile(bias2.astype(jnp.float32), W).reshape(1, WC)

    # Grid-invariant operands: single-buffered (fetched once, no double-buffer).
    w_spec = pl.BlockSpec((KH * KW * WC, WC), lambda i: (0, 0),
                          pipeline_mode=pl.Buffered(1))
    b_spec = pl.BlockSpec((1, WC), lambda i: (0, 0),
                          pipeline_mode=pl.Buffered(1))

    out = pl.pallas_call(
        _basic_block_kernel,
        out_shape=jax.ShapeDtypeStruct((B, H, WC), jnp.float32),
        grid_spec=pltpu.PrefetchScalarGridSpec(
            num_scalar_prefetch=0,
            grid=grid,
            in_specs=[
                pl.BlockSpec((b_blk, H, WC), lambda i: (i, 0, 0)),
                w_spec, b_spec, w_spec, b_spec,
            ],
            out_specs=pl.BlockSpec((b_blk, H, WC), lambda i: (i, 0, 0)),
            scratch_shapes=[
                pltpu.VMEM((b_blk, H + 2 * PAD, WCp), jnp.float32)],
        ),
        compiler_params=pltpu.CompilerParams(
            dimension_semantics=("parallel",)),
    )(x, w1, b1, w2, b2)

    # Unfold lanes back to (W, C) and return NCHW.
    out = out.reshape(B, H, W, C)
    return jnp.transpose(out, (0, 3, 1, 2))


def _reference(x, w1, s1, b1, w2, s2, b2):
    """Pure-JAX reference (NCHW) mirroring the PyTorch forward (eval-mode BN)."""
    def conv(inp, w):
        return jax.lax.conv_general_dilated(
            inp, w, window_strides=(1, 1), padding=((PAD, PAD), (PAD, PAD)),
            dimension_numbers=("NCHW", "OIHW", "NCHW"))

    out = conv(x, w1)
    out = out * s1.reshape(1, -1, 1, 1) + b1.reshape(1, -1, 1, 1)
    out = jnp.maximum(out, 0.0)
    out = conv(out, w2)
    out = out * s2.reshape(1, -1, 1, 1) + b2.reshape(1, -1, 1, 1)
    return jnp.maximum(out + x, 0.0)


if __name__ == "__main__":
    # BasicBlock5x5(inplanes=8, planes=8, stride=1, downsample=None)
    B, C, H, W = 4, 8, 16, 16    # W*C = 128 (lane-dense), grid=2 with b_blk=2
    eps = 1e-5

    key = jax.random.PRNGKey(0)
    ks = jax.random.split(key, 11)
    x = jax.random.normal(ks[0], (B, C, H, W), jnp.float32)
    w1 = jax.random.normal(ks[1], (C, C, KH, KW), jnp.float32) * 0.1
    w2 = jax.random.normal(ks[2], (C, C, KH, KW), jnp.float32) * 0.1
    gamma1 = 1.0 + 0.1 * jax.random.normal(ks[3], (C,), jnp.float32)
    beta1 = 0.1 * jax.random.normal(ks[4], (C,), jnp.float32)
    mean1 = 0.1 * jax.random.normal(ks[5], (C,), jnp.float32)
    var1 = jnp.abs(jax.random.normal(ks[6], (C,), jnp.float32)) + 0.5
    gamma2 = 1.0 + 0.1 * jax.random.normal(ks[7], (C,), jnp.float32)
    beta2 = 0.1 * jax.random.normal(ks[8], (C,), jnp.float32)
    mean2 = 0.1 * jax.random.normal(ks[9], (C,), jnp.float32)
    var2 = jnp.abs(jax.random.normal(ks[10], (C,), jnp.float32)) + 0.5

    # Fuse BN (inference mode) into per-channel scale/bias.
    scale1 = gamma1 / jnp.sqrt(var1 + eps)
    bias1 = beta1 - mean1 * scale1
    scale2 = gamma2 / jnp.sqrt(var2 + eps)
    bias2 = beta2 - mean2 * scale2

    out = basic_block5x5(x, w1, scale1, bias1, w2, scale2, bias2)
    out = jax.block_until_ready(out)

    ref = jax.block_until_ready(
        _reference(x, w1, scale1, bias1, w2, scale2, bias2))
    assert out.shape == (B, C, H, W)
    max_err = float(jnp.max(jnp.abs(out - ref)))
    # bf16 MXU operands with f32 accumulation -> loosened tolerance.
    assert jnp.allclose(out, ref, atol=5e-2, rtol=5e-2), max_err

    print("KERNEL_OK")
</pallas_src>

<mosaic_0001>
module attributes {stable_mosaic.version = 11 : i64} {
  func.func @_basic_block_kernel(%arg0: i32, %arg1: memref<2x16x128xf32, #tpu.memory_space<vmem>>, %arg2: memref<3200x128xbf16, #tpu.memory_space<vmem>>, %arg3: memref<1x128xf32, #tpu.memory_space<vmem>>, %arg4: memref<3200x128xbf16, #tpu.memory_space<vmem>>, %arg5: memref<1x128xf32, #tpu.memory_space<vmem>>, %arg6: memref<2x16x128xf32, #tpu.memory_space<vmem>>, %arg7: memref<2x20x160xf32, #tpu.memory_space<vmem>>) attributes {dimension_semantics = [#tpu.dimension_semantics<parallel>], iteration_bounds = array<i64: 2>, scalar_prefetch = 0 : i64, scratch_operands = 1 : i64, tpu.core_type = #tpu.core_type<tc>, window_params = [{transform_indices = @transform_0, window_bounds = array<i64: 2, 16, 128>}, {pipeline_mode = #tpu.pipeline_mode<synchronous>, transform_indices = @transform_1, window_bounds = array<i64: 3200, 128>}, {pipeline_mode = #tpu.pipeline_mode<synchronous>, transform_indices = @transform_2, window_bounds = array<i64: 1, 128>}, {pipeline_mode = #tpu.pipeline_mode<synchronous>, transform_indices = @transform_3, window_bounds = array<i64: 3200, 128>}, {pipeline_mode = #tpu.pipeline_mode<synchronous>, transform_indices = @transform_4, window_bounds = array<i64: 1, 128>}, {transform_indices = @transform_5, window_bounds = array<i64: 2, 16, 128>}]} {
    %cst = arith.constant 0.000000e+00 : f32
    %0 = vector.broadcast %cst : f32 to vector<2x20x160xf32>
    %c0 = arith.constant 0 : index
    %c0_0 = arith.constant 0 : index
    %c0_1 = arith.constant 0 : index
    %1 = vector.load %arg7[%c0, %c0_0, %c0_1] : memref<2x20x160xf32, #tpu.memory_space<vmem>>, vector<2x20x160xf32>
    tpu.vector_store %arg7[%c0, %c0_0, %c0_1], %0 {strides = array<i32>} : memref<2x20x160xf32, #tpu.memory_space<vmem>>, vector<2x20x160xf32>,
    %c0_2 = arith.constant 0 : index
    %c0_3 = arith.constant 0 : index
    %c0_4 = arith.constant 0 : index
    %2 = vector.load %arg1[%c0_2, %c0_3, %c0_4] : memref<2x16x128xf32, #tpu.memory_space<vmem>>, vector<2x16x128xf32>
    %c0_5 = arith.constant 0 : index
    %c2 = arith.constant 2 : index
    %c16 = arith.constant 16 : index
    %3 = vector.load %arg7[%c0_5, %c2, %c16] : memref<2x20x160xf32, #tpu.memory_space<vmem>>, vector<2x16x128xf32>
    tpu.vector_store %arg7[%c0_5, %c2, %c16], %2 {strides = array<i32>} : memref<2x20x160xf32, #tpu.memory_space<vmem>>, vector<2x16x128xf32>,
    %c0_6 = arith.constant 0 : index
    %c0_7 = arith.constant 0 : index
    %c0_8 = arith.constant 0 : index
    %4 = vector.load %arg7[%c0_6, %c0_7, %c0_8] : memref<2x20x160xf32, #tpu.memory_space<vmem>>, vector<2x20x160xf32>
    %5 = vector.extract_strided_slice %4 {offsets = [0, 0, 0], sizes = [2, 16, 160], strides = [1, 1, 1]} : vector<2x20x160xf32> to vector<2x16x160xf32>
    %6 = vector.extract_strided_slice %5 {offsets = [0, 0, 0], sizes = [2, 16, 128], strides = [1, 1, 1]} : vector<2x16x160xf32> to vector<2x16x128xf32>
    %7 = vector.shape_cast %6 : vector<2x16x128xf32> to vector<32x128xf32>
    %8 = vector.extract_strided_slice %5 {offsets = [0, 0, 8], sizes = [2, 16, 128], strides = [1, 1, 1]} : vector<2x16x160xf32> to vector<2x16x128xf32>
    %9 = vector.shape_cast %8 : vector<2x16x128xf32> to vector<32x128xf32>
    %10 = vector.extract_strided_slice %5 {offsets = [0, 0, 16], sizes = [2, 16, 128], strides = [1, 1, 1]} : vector<2x16x160xf32> to vector<2x16x128xf32>
    %11 = vector.shape_cast %10 : vector<2x16x128xf32> to vector<32x128xf32>
    %12 = vector.extract_strided_slice %5 {offsets = [0, 0, 24], sizes = [2, 16, 128], strides = [1, 1, 1]} : vector<2x16x160xf32> to vector<2x16x128xf32>
    %13 = vector.shape_cast %12 : vector<2x16x128xf32> to vector<32x128xf32>
    %14 = vector.extract_strided_slice %5 {offsets = [0, 0, 32], sizes = [2, 16, 128], strides = [1, 1, 1]} : vector<2x16x160xf32> to vector<2x16x128xf32>
    %15 = vector.shape_cast %14 : vector<2x16x128xf32> to vector<32x128xf32>
    %16 = vector.extract_strided_slice %4 {offsets = [0, 1, 0], sizes = [2, 16, 160], strides = [1, 1, 1]} : vector<2x20x160xf32> to vector<2x16x160xf32>
    %17 = vector.extract_strided_slice %16 {offsets = [0, 0, 0], sizes = [2, 16, 128], strides = [1, 1, 1]} : vector<2x16x160xf32> to vector<2x16x128xf32>
    %18 = vector.shape_cast %17 : vector<2x16x128xf32> to vector<32x128xf32>
    %19 = vector.extract_strided_slice %16 {offsets = [0, 0, 8], sizes = [2, 16, 128], strides = [1, 1, 1]} : vector<2x16x160xf32> to vector<2x16x128xf32>
    %20 = vector.shape_cast %19 : vector<2x16x128xf32> to vector<32x128xf32>
    %21 = vector.extract_strided_slice %16 {offsets = [0, 0, 16], sizes = [2, 16, 128], strides = [1, 1, 1]} : vector<2x16x160xf32> to vector<2x16x128xf32>
    %22 = vector.shape_cast %21 : vector<2x16x128xf32> to vector<32x128xf32>
    %23 = vector.extract_strided_slice %16 {offsets = [0, 0, 24], sizes = [2, 16, 128], strides = [1, 1, 1]} : vector<2x16x160xf32> to vector<2x16x128xf32>
    %24 = vector.shape_cast %23 : vector<2x16x128xf32> to vector<32x128xf32>
    %25 = vector.extract_strided_slice %16 {offsets = [0, 0, 32], sizes = [2, 16, 128], strides = [1, 1, 1]} : vector<2x16x160xf32> to vector<2x16x128xf32>
    %26 = vector.shape_cast %25 : vector<2x16x128xf32> to vector<32x128xf32>
    %27 = vector.extract_strided_slice %4 {offsets = [0, 2, 0], sizes = [2, 16, 160], strides = [1, 1, 1]} : vector<2x20x160xf32> to vector<2x16x160xf32>
    %28 = vector.extract_strided_slice %27 {offsets = [0, 0, 0], sizes = [2, 16, 128], strides = [1, 1, 1]} : vector<2x16x160xf32> to vector<2x16x128xf32>
    %29 = vector.shape_cast %28 : vector<2x16x128xf32> to vector<32x128xf32>
    %30 = vector.extract_strided_slice %27 {offsets = [0, 0, 8], sizes = [2, 16, 128], strides = [1, 1, 1]} : vector<2x16x160xf32> to vector<2x16x128xf32>
    %31 = vector.shape_cast %30 : vector<2x16x128xf32> to vector<32x128xf32>
    %32 = vector.extract_strided_slice %27 {offsets = [0, 0, 16], sizes = [2, 16, 128], strides = [1, 1, 1]} : vector<2x16x160xf32> to vector<2x16x128xf32>
    %33 = vector.shape_cast %32 : vector<2x16x128xf32> to vector<32x128xf32>
    %34 = vector.extract_strided_slice %27 {offsets = [0, 0, 24], sizes = [2, 16, 128], strides = [1, 1, 1]} : vector<2x16x160xf32> to vector<2x16x128xf32>
    %35 = vector.shape_cast %34 : vector<2x16x128xf32> to vector<32x128xf32>
    %36 = vector.extract_strided_slice %27 {offsets = [0, 0, 32], sizes = [2, 16, 128], strides = [1, 1, 1]} : vector<2x16x160xf32> to vector<2x16x128xf32>
    %37 = vector.shape_cast %36 : vector<2x16x128xf32> to vector<32x128xf32>
    %38 = vector.extract_strided_slice %4 {offsets = [0, 3, 0], sizes = [2, 16, 160], strides = [1, 1, 1]} : vector<2x20x160xf32> to vector<2x16x160xf32>
    %39 = vector.extract_strided_slice %38 {offsets = [0, 0, 0], sizes = [2, 16, 128], strides = [1, 1, 1]} : vector<2x16x160xf32> to vector<2x16x128xf32>
    %40 = vector.shape_cast %39 : vector<2x16x128xf32> to vector<32x128xf32>
    %41 = vector.extract_strided_slice %38 {offsets = [0, 0, 8], sizes = [2, 16, 128], strides = [1, 1, 1]} : vector<2x16x160xf32> to vector<2x16x128xf32>
    %42 = vector.shape_cast %41 : vector<2x16x128xf32> to vector<32x128xf32>
    %43 = vector.extract_strided_slice %38 {offsets = [0, 0, 16], sizes = [2, 16, 128], strides = [1, 1, 1]} : vector<2x16x160xf32> to vector<2x16x128xf32>
    %44 = vector.shape_cast %43 : vector<2x16x128xf32> to vector<32x128xf32>
    %45 = vector.extract_strided_slice %38 {offsets = [0, 0, 24], sizes = [2, 16, 128], strides = [1, 1, 1]} : vector<2x16x160xf32> to vector<2x16x128xf32>
    %46 = vector.shape_cast %45 : vector<2x16x128xf32> to vector<32x128xf32>
    %47 = vector.extract_strided_slice %38 {offsets = [0, 0, 32], sizes = [2, 16, 128], strides = [1, 1, 1]} : vector<2x16x160xf32> to vector<2x16x128xf32>
    %48 = vector.shape_cast %47 : vector<2x16x128xf32> to vector<32x128xf32>
    %49 = vector.extract_strided_slice %4 {offsets = [0, 4, 0], sizes = [2, 16, 160], strides = [1, 1, 1]} : vector<2x20x160xf32> to vector<2x16x160xf32>
    %50 = vector.extract_strided_slice %49 {offsets = [0, 0, 0], sizes = [2, 16, 128], strides = [1, 1, 1]} : vector<2x16x160xf32> to vector<2x16x128xf32>
    %51 = vector.shape_cast %50 : vector<2x16x128xf32> to vector<32x128xf32>
    %52 = vector.extract_strided_slice %49 {offsets = [0, 0, 8], sizes = [2, 16, 128], strides = [1, 1, 1]} : vector<2x16x160xf32> to vector<2x16x128xf32>
    %53 = vector.shape_cast %52 : vector<2x16x128xf32> to vector<32x128xf32>
    %54 = vector.extract_strided_slice %49 {offsets = [0, 0, 16], sizes = [2, 16, 128], strides = [1, 1, 1]} : vector<2x16x160xf32> to vector<2x16x128xf32>
    %55 = vector.shape_cast %54 : vector<2x16x128xf32> to vector<32x128xf32>
    %56 = vector.extract_strided_slice %49 {offsets = [0, 0, 24], sizes = [2, 16, 128], strides = [1, 1, 1]} : vector<2x16x160xf32> to vector<2x16x128xf32>
    %57 = vector.shape_cast %56 : vector<2x16x128xf32> to vector<32x128xf32>
    %58 = vector.extract_strided_slice %49 {offsets = [0, 0, 32], sizes = [2, 16, 128], strides = [1, 1, 1]} : vector<2x16x160xf32> to vector<2x16x128xf32>
    %59 = vector.shape_cast %58 : vector<2x16x128xf32> to vector<32x128xf32>
    %60 = tpu.concatenate %7, %9, %11, %13, %15, %18, %20, %22, %24, %26, %29, %31, %33, %35, %37, %40 in 1 : vector<32x128xf32>, vector<32x128xf32>, vector<32x128xf32>, vector<32x128xf32>, vector<32x128xf32>, vector<32x128xf32>, vector<32x128xf32>, vector<32x128xf32>, vector<32x128xf32>, vector<32x128xf32>, vector<32x128xf32>, vector<32x128xf32>, vector<32x128xf32>, vector<32x128xf32>, vector<32x128xf32>, vector<32x128xf32> -> vector<32x2048xf32>
    %61 = tpu.concatenate %42, %44, %46, %48, %51, %53, %55, %57, %59 in 1 : vector<32x128xf32>, vector<32x128xf32>, vector<32x128xf32>, vector<32x128xf32>, vector<32x128xf32>, vector<32x128xf32>, vector<32x128xf32>, vector<32x128xf32>, vector<32x128xf32> -> vector<32x1152xf32>
    %62 = tpu.concatenate %60, %61 in 1 : vector<32x2048xf32>, vector<32x1152xf32> -> vector<32x3200xf32>
    %63 = arith.truncf %62 : vector<32x3200xf32> to vector<32x3200xbf16>
    %c0_9 = arith.constant 0 : index
    %c0_10 = arith.constant 0 : index
    %64 = vector.load %arg2[%c0_9, %c0_10] : memref<3200x128xbf16, #tpu.memory_space<vmem>>, vector<3200x128xbf16>
    %cst_11 = arith.constant dense<0.000000e+00> : vector<32x128xf32>
    %65 = tpu.matmul %63, %64, %cst_11 {dimension_numbers = #tpu.dot_dimension_numbers<[1], [0], [0], [1], [0, 0, 1, 1], [], []>} : vector<32x3200xbf16>, vector<3200x128xbf16>, vector<32x128xf32> -> vector<32x128xf32>
    %c0_12 = arith.constant 0 : index
    %c0_13 = arith.constant 0 : index
    %66 = vector.load %arg3[%c0_12, %c0_13] : memref<1x128xf32, #tpu.memory_space<vmem>>, vector<1x128xf32>
    %67 = vector.broadcast %66 : vector<1x128xf32> to vector<32x128xf32>
    %68 = arith.addf %65, %67 : vector<32x128xf32>
    %cst_14 = arith.constant 0.000000e+00 : f32
    %69 = vector.broadcast %cst_14 : f32 to vector<32x128xf32>
    %70 = arith.maximumf %68, %69 : vector<32x128xf32>
    %71 = vector.shape_cast %70 : vector<32x128xf32> to vector<2x16x128xf32>
    %c0_15 = arith.constant 0 : index
    %c2_16 = arith.constant 2 : index
    %c16_17 = arith.constant 16 : index
    %72 = vector.load %arg7[%c0_15, %c2_16, %c16_17] : memref<2x20x160xf32, #tpu.memory_space<vmem>>, vector<2x16x128xf32>
    tpu.vector_store %arg7[%c0_15, %c2_16, %c16_17], %71 {strides = array<i32>} : memref<2x20x160xf32, #tpu.memory_space<vmem>>, vector<2x16x128xf32>,
    %c0_18 = arith.constant 0 : index
    %c0_19 = arith.constant 0 : index
    %c0_20 = arith.constant 0 : index
    %73 = vector.load %arg7[%c0_18, %c0_19, %c0_20] : memref<2x20x160xf32, #tpu.memory_space<vmem>>, vector<2x20x160xf32>
    %74 = vector.extract_strided_slice %73 {offsets = [0, 0, 0], sizes = [2, 16, 160], strides = [1, 1, 1]} : vector<2x20x160xf32> to vector<2x16x160xf32>
    %75 = vector.extract_strided_slice %74 {offsets = [0, 0, 0], sizes = [2, 16, 128], strides = [1, 1, 1]} : vector<2x16x160xf32> to vector<2x16x128xf32>
    %76 = vector.shape_cast %75 : vector<2x16x128xf32> to vector<32x128xf32>
    %77 = vector.extract_strided_slice %74 {offsets = [0, 0, 8], sizes = [2, 16, 128], strides = [1, 1, 1]} : vector<2x16x160xf32> to vector<2x16x128xf32>
    %78 = vector.shape_cast %77 : vector<2x16x128xf32> to vector<32x128xf32>
    %79 = vector.extract_strided_slice %74 {offsets = [0, 0, 16], sizes = [2, 16, 128], strides = [1, 1, 1]} : vector<2x16x160xf32> to vector<2x16x128xf32>
    %80 = vector.shape_cast %79 : vector<2x16x128xf32> to vector<32x128xf32>
    %81 = vector.extract_strided_slice %74 {offsets = [0, 0, 24], sizes = [2, 16, 128], strides = [1, 1, 1]} : vector<2x16x160xf32> to vector<2x16x128xf32>
    %82 = vector.shape_cast %81 : vector<2x16x128xf32> to vector<32x128xf32>
    %83 = vector.extract_strided_slice %74 {offsets = [0, 0, 32], sizes = [2, 16, 128], strides = [1, 1, 1]} : vector<2x16x160xf32> to vector<2x16x128xf32>
    %84 = vector.shape_cast %83 : vector<2x16x128xf32> to vector<32x128xf32>
    %85 = vector.extract_strided_slice %73 {offsets = [0, 1, 0], sizes = [2, 16, 160], strides = [1, 1, 1]} : vector<2x20x160xf32> to vector<2x16x160xf32>
    %86 = vector.extract_strided_slice %85 {offsets = [0, 0, 0], sizes = [2, 16, 128], strides = [1, 1, 1]} : vector<2x16x160xf32> to vector<2x16x128xf32>
    %87 = vector.shape_cast %86 : vector<2x16x128xf32> to vector<32x128xf32>
    %88 = vector.extract_strided_slice %85 {offsets = [0, 0, 8], sizes = [2, 16, 128], strides = [1, 1, 1]} : vector<2x16x160xf32> to vector<2x16x128xf32>
    %89 = vector.shape_cast %88 : vector<2x16x128xf32> to vector<32x128xf32>
    %90 = vector.extract_strided_slice %85 {offsets = [0, 0, 16], sizes = [2, 16, 128], strides = [1, 1, 1]} : vector<2x16x160xf32> to vector<2x16x128xf32>
    %91 = vector.shape_cast %90 : vector<2x16x128xf32> to vector<32x128xf32>
    %92 = vector.extract_strided_slice %85 {offsets = [0, 0, 24], sizes = [2, 16, 128], strides = [1, 1, 1]} : vector<2x16x160xf32> to vector<2x16x128xf32>
    %93 = vector.shape_cast %92 : vector<2x16x128xf32> to vector<32x128xf32>
    %94 = vector.extract_strided_slice %85 {offsets = [0, 0, 32], sizes = [2, 16, 128], strides = [1, 1, 1]} : vector<2x16x160xf32> to vector<2x16x128xf32>
    %95 = vector.shape_cast %94 : vector<2x16x128xf32> to vector<32x128xf32>
    %96 = vector.extract_strided_slice %73 {offsets = [0, 2, 0], sizes = [2, 16, 160], strides = [1, 1, 1]} : vector<2x20x160xf32> to vector<2x16x160xf32>
    %97 = vector.extract_strided_slice %96 {offsets = [0, 0, 0], sizes = [2, 16, 128], strides = [1, 1, 1]} : vector<2x16x160xf32> to vector<2x16x128xf32>
    %98 = vector.shape_cast %97 : vector<2x16x128xf32> to vector<32x128xf32>
    %99 = vector.extract_strided_slice %96 {offsets = [0, 0, 8], sizes = [2, 16, 128], strides = [1, 1, 1]} : vector<2x16x160xf32> to vector<2x16x128xf32>
    %100 = vector.shape_cast %99 : vector<2x16x128xf32> to vector<32x128xf32>
    %101 = vector.extract_strided_slice %96 {offsets = [0, 0, 16], sizes = [2, 16, 128], strides = [1, 1, 1]} : vector<2x16x160xf32> to vector<2x16x128xf32>
    %102 = vector.shape_cast %101 : vector<2x16x128xf32> to vector<32x128xf32>
    %103 = vector.extract_strided_slice %96 {offsets = [0, 0, 24], sizes = [2, 16, 128], strides = [1, 1, 1]} : vector<2x16x160xf32> to vector<2x16x128xf32>
    %104 = vector.shape_cast %103 : vector<2x16x128xf32> to vector<32x128xf32>
    %105 = vector.extract_strided_slice %96 {offsets = [0, 0, 32], sizes = [2, 16, 128], strides = [1, 1, 1]} : vector<2x16x160xf32> to vector<2x16x128xf32>
    %106 = vector.shape_cast %105 : vector<2x16x128xf32> to vector<32x128xf32>
    %107 = vector.extract_strided_slice %73 {offsets = [0, 3, 0], sizes = [2, 16, 160], strides = [1, 1, 1]} : vector<2x20x160xf32> to vector<2x16x160xf32>
    %108 = vector.extract_strided_slice %107 {offsets = [0, 0, 0], sizes = [2, 16, 128], strides = [1, 1, 1]} : vector<2x16x160xf32> to vector<2x16x128xf32>
    %109 = vector.shape_cast %108 : vector<2x16x128xf32> to vector<32x128xf32>
    %110 = vector.extract_strided_slice %107 {offsets = [0, 0, 8], sizes = [2, 16, 128], strides = [1, 1, 1]} : vector<2x16x160xf32> to vector<2x16x128xf32>
    %111 = vector.shape_cast %110 : vector<2x16x128xf32> to vector<32x128xf32>
    %112 = vector.extract_strided_slice %107 {offsets = [0, 0, 16], sizes = [2, 16, 128], strides = [1, 1, 1]} : vector<2x16x160xf32> to vector<2x16x128xf32>
    %113 = vector.shape_cast %112 : vector<2x16x128xf32> to vector<32x128xf32>
    %114 = vector.extract_strided_slice %107 {offsets = [0, 0, 24], sizes = [2, 16, 128], strides = [1, 1, 1]} : vector<2x16x160xf32> to vector<2x16x128xf32>
    %115 = vector.shape_cast %114 : vector<2x16x128xf32> to vector<32x128xf32>
    %116 = vector.extract_strided_slice %107 {offsets = [0, 0, 32], sizes = [2, 16, 128], strides = [1, 1, 1]} : vector<2x16x160xf32> to vector<2x16x128xf32>
    %117 = vector.shape_cast %116 : vector<2x16x128xf32> to vector<32x128xf32>
    %118 = vector.extract_strided_slice %73 {offsets = [0, 4, 0], sizes = [2, 16, 160], strides = [1, 1, 1]} : vector<2x20x160xf32> to vector<2x16x160xf32>
    %119 = vector.extract_strided_slice %118 {offsets = [0, 0, 0], sizes = [2, 16, 128], strides = [1, 1, 1]} : vector<2x16x160xf32> to vector<2x16x128xf32>
    %120 = vector.shape_cast %119 : vector<2x16x128xf32> to vector<32x128xf32>
    %121 = vector.extract_strided_slice %118 {offsets = [0, 0, 8], sizes = [2, 16, 128], strides = [1, 1, 1]} : vector<2x16x160xf32> to vector<2x16x128xf32>
    %122 = vector.shape_cast %121 : vector<2x16x128xf32> to vector<32x128xf32>
    %123 = vector.extract_strided_slice %118 {offsets = [0, 0, 16], sizes = [2, 16, 128], strides = [1, 1, 1]} : vector<2x16x160xf32> to vector<2x16x128xf32>
    %124 = vector.shape_cast %123 : vector<2x16x128xf32> to vector<32x128xf32>
    %125 = vector.extract_strided_slice %118 {offsets = [0, 0, 24], sizes = [2, 16, 128], strides = [1, 1, 1]} : vector<2x16x160xf32> to vector<2x16x128xf32>
    %126 = vector.shape_cast %125 : vector<2x16x128xf32> to vector<32x128xf32>
    %127 = vector.extract_strided_slice %118 {offsets = [0, 0, 32], sizes = [2, 16, 128], strides = [1, 1, 1]} : vector<2x16x160xf32> to vector<2x16x128xf32>
    %128 = vector.shape_cast %127 : vector<2x16x128xf32> to vector<32x128xf32>
    %129 = tpu.concatenate %76, %78, %80, %82, %84, %87, %89, %91, %93, %95, %98, %100, %102, %104, %106, %109 in 1 : vector<32x128xf32>, vector<32x128xf32>, vector<32x128xf32>, vector<32x128xf32>, vector<32x128xf32>, vector<32x128xf32>, vector<32x128xf32>, vector<32x128xf32>, vector<32x128xf32>, vector<32x128xf32>, vector<32x128xf32>, vector<32x128xf32>, vector<32x128xf32>, vector<32x128xf32>, vector<32x128xf32>, vector<32x128xf32> -> vector<32x2048xf32>
    %130 = tpu.concatenate %111, %113, %115, %117, %120, %122, %124, %126, %128 in 1 : vector<32x128xf32>, vector<32x128xf32>, vector<32x128xf32>, vector<32x128xf32>, vector<32x128xf32>, vector<32x128xf32>, vector<32x128xf32>, vector<32x128xf32>, vector<32x128xf32> -> vector<32x1152xf32>
    %131 = tpu.concatenate %129, %130 in 1 : vector<32x2048xf32>, vector<32x1152xf32> -> vector<32x3200xf32>
    %132 = arith.truncf %131 : vector<32x3200xf32> to vector<32x3200xbf16>
    %c0_21 = arith.constant 0 : index
    %c0_22 = arith.constant 0 : index
    %133 = vector.load %arg4[%c0_21, %c0_22] : memref<3200x128xbf16, #tpu.memory_space<vmem>>, vector<3200x128xbf16>
    %cst_23 = arith.constant dense<0.000000e+00> : vector<32x128xf32>
    %134 = tpu.matmul %132, %133, %cst_23 {dimension_numbers = #tpu.dot_dimension_numbers<[1], [0], [0], [1], [0, 0, 1, 1], [], []>} : vector<32x3200xbf16>, vector<3200x128xbf16>, vector<32x128xf32> -> vector<32x128xf32>
    %c0_24 = arith.constant 0 : index
    %c0_25 = arith.constant 0 : index
    %c0_26 = arith.constant 0 : index
    %135 = vector.load %arg1[%c0_24, %c0_25, %c0_26] : memref<2x16x128xf32, #tpu.memory_space<vmem>>, vector<2x16x128xf32>
    %136 = vector.shape_cast %135 : vector<2x16x128xf32> to vector<32x128xf32>
    %c0_27 = arith.constant 0 : index
    %c0_28 = arith.constant 0 : index
    %137 = vector.load %arg5[%c0_27, %c0_28] : memref<1x128xf32, #tpu.memory_space<vmem>>, vector<1x128xf32>
    %138 = vector.broadcast %137 : vector<1x128xf32> to vector<32x128xf32>
    %139 = arith.addf %134, %138 : vector<32x128xf32>
    %140 = arith.addf %139, %136 : vector<32x128xf32>
    %cst_29 = arith.constant 0.000000e+00 : f32
    %141 = vector.broadcast %cst_29 : f32 to vector<32x128xf32>
    %142 = arith.maximumf %140, %141 : vector<32x128xf32>
    %143 = vector.shape_cast %142 : vector<32x128xf32> to vector<2x16x128xf32>
    %c0_30 = arith.constant 0 : index
    %c0_31 = arith.constant 0 : index
    %c0_32 = arith.constant 0 : index
    %144 = vector.load %arg6[%c0_30, %c0_31, %c0_32] : memref<2x16x128xf32, #tpu.memory_space<vmem>>, vector<2x16x128xf32>
    tpu.vector_store %arg6[%c0_30, %c0_31, %c0_32], %143 {strides = array<i32>} : memref<2x16x128xf32, #tpu.memory_space<vmem>>, vector<2x16x128xf32>,
    return
  }
  func.func @transform_0(%arg0: i32) -> (i32, i32, i32) {
    %c0_i32 = arith.constant 0 : i32
    %c0_i32_0 = arith.constant 0 : i32
    %c0_i32_1 = arith.constant 0 : i32
    return %arg0, %c0_i32, %c0_i32_0 : i32, i32, i32
  }
  func.func @transform_1(%arg0: i32) -> (i32, i32) {
    %c0_i32 = arith.constant 0 : i32
    %c0_i32_0 = arith.constant 0 : i32
    %c0_i32_1 = arith.constant 0 : i32
    return %c0_i32, %c0_i32_0 : i32, i32
  }
  func.func @transform_2(%arg0: i32) -> (i32, i32) {
    %c0_i32 = arith.constant 0 : i32
    %c0_i32_0 = arith.constant 0 : i32
    %c0_i32_1 = arith.constant 0 : i32
    return %c0_i32, %c0_i32_0 : i32, i32
  }
  func.func @transform_3(%arg0: i32) -> (i32, i32) {
    %c0_i32 = arith.constant 0 : i32
    %c0_i32_0 = arith.constant 0 : i32
    %c0_i32_1 = arith.constant 0 : i32
    return %c0_i32, %c0_i32_0 : i32, i32
  }
  func.func @transform_4(%arg0: i32) -> (i32, i32) {
    %c0_i32 = arith.constant 0 : i32
    %c0_i32_0 = arith.constant 0 : i32
    %c0_i32_1 = arith.constant 0 : i32
    return %c0_i32, %c0_i32_0 : i32, i32
  }
  func.func @transform_5(%arg0: i32) -> (i32, i32, i32) {
    %c0_i32 = arith.constant 0 : i32
    %c0_i32_0 = arith.constant 0 : i32
    %c0_i32_1 = arith.constant 0 : i32
    return %arg0, %c0_i32, %c0_i32_0 : i32, i32, i32
  }
}

</mosaic_0001>

<bundles_post_ra>
// kernel: tile.13
= control target key start
LH: loop header
LB: loop body
LE: loop exit
PB: predicated region body
PF: predicated region fallthrough
CT: control target
= control target key end

     0   :  { %s28_s0 = inlined_call_operand.vmem [shape: f32[8], index: 0, kind: input, shape index: {}]   ;;  %s29_s1 = inlined_call_operand.vmem [shape: f32[16,8], index: 1, kind: output, shape index: {}]  }
   0x1   :  { %v4_v0 = vld [vmem:[%s28_s0] ss:$0 sm:$0xff] }
   0x2   :  { %5 = vst [vmem:[%s29_s1] sm:$0xff] %v4_v0 }
   0x3   :  { %8 = vst [vmem:[%s29_s1 + $0x8] sm:$0xff] %v4_v0 }

// kernel: tile.14
= control target key start
LH: loop header
LB: loop body
LE: loop exit
PB: predicated region body
PF: predicated region fallthrough
CT: control target
= control target key end

     0   :  { %s131_s10 = smov 120   ;;  %s132_s11 = smov 104   ;;  %vm3_vm0 = vcmask 64512   ;;  %vm9_vm1 = vcmask 1048512   ;;  %vm15_vm2 = vcmask 982912   ;;  %vm21_vm3 = vcmask 917312   ;;  %s207_s0 = inlined_call_operand.vmem [shape: f32[16,8], index: 0, kind: input, shape index: {}]   ;;  %s208_s1 = inlined_call_operand.vmem [shape: f32[1,128], index: 1, kind: output, shape index: {}]  }
   0x1   :  { %v101_v0 = vld [vmem:[%s207_s0 + $0xf] sm:$0x1]   ;;  %v103_v1 = vld [vmem:[%s207_s0 + $0xd] sm:$0x1]   ;;  %v105_v2 = vld [vmem:[%s207_s0 + $0xb] sm:$0x1]  }
   0x2   :  { %7 = vrot.lane.b32.xlu0 %v101_v0, %s131_s10  ;;  %19 = vrot.lane.b32.xlu1 %v103_v1, %s132_s11  ;;  %s133_s14 = smov 88   ;;  %v102_v3 = vld [vmem:[%s207_s0 + $0xe] sm:$0x1]   ;;  %v104_v4 = vld [vmem:[%s207_s0 + $0xc] sm:$0x1]   ;;  %s134_s19 = smov 112  }
   0x3   :  { %31 = vrot.lane.b32.xlu2 %v105_v2, %s133_s14  ;;  %s135_s20 = smov 96   ;;  %v106_v5 = vld [vmem:[%s207_s0 + $0xa] sm:$0x1]   ;;  %s136_s23 = smov 80   ;;  %v107_v6 = vld [vmem:[%s207_s0 + $0x9] sm:$0x1]  }
   0x4   :  { %v108_v7 = vld [vmem:[%s207_s0 + $0x8] sm:$0x1]   ;;  %s137_s28 = smov 72   ;;  %s138_s29 = smov 64   ;;  %v109_v8 = vld [vmem:[%s207_s0 + $0x7] sm:$0x1]  }
   0x5   :  { %s139_s3 = smov 56   ;;  %v110_v9 = vld [vmem:[%s207_s0 + $0x6] sm:$0x1]   ;;  %v111_v10 = vld [vmem:[%s207_s0 + $0x5] sm:$0x1]   ;;  %s140_s8 = smov 48  }
   0x6   :  { %s141_s9 = smov 40   ;;  %v112_v11 = vld [vmem:[%s207_s0 + $0x4] sm:$0x1]   ;;  %s142_s12 = smov 32   ;;  %v113_v12 = vld [vmem:[%s207_s0 + $0x3] sm:$0x1]  }
   0x7   :  { %v114_v13 = vld [vmem:[%s207_s0 + $0x2] sm:$0x1]   ;;  %s143_s17 = smov 24   ;;  %s144_s18 = smov 16   ;;  %v115_v14 = vld [vmem:[%s207_s0 + $0x1] sm:$0x1]  }
   0x8   :  { %s145_s21 = smov 8   ;;  %v2_v15 = vld [vmem:[%s207_s0] sm:$0x1]   ;;  %vm27_vm4 = vcmask 851712   ;;  %vm33_vm5 = vcmask 786112   ;;  %vm39_vm6 = vcmask 720512  }
   0x9   :  { %4 = vst.msk [vmem:[#allocation0] sm:$0x1] %vm3_vm0, %v2_v15   ;;  %vm45_vm7 = vcmask 654912   ;;  %vm51_vm8 = vcmask 589312   ;;  %vm57_vm9 = vcmask 523712   ;;  %vm63_vm10 = vcmask 458112  }
   0xa   :  { %13 = vrot.lane.b32.xlu0 %v102_v3, %s134_s19  ;;  %25 = vrot.lane.b32.xlu1 %v104_v4, %s135_s20  ;;  %vm69_vm11 = vcmask 392512   ;;  %vm75_vm12 = vcmask 326912   ;;  %vm81_vm13 = vcmask 261312   ;;  %vm87_vm14 = vcmask 195712  }
   0xb   :  { %37 = vrot.lane.b32.xlu2 %v106_v5, %s136_s23  ;;  %vm93_vm15 = vcmask 130112  }
  0x12   :  { %43 = vrot.lane.b32.xlu0 %v107_v6, %s137_s28  ;;  %49 = vrot.lane.b32.xlu1 %v108_v7, %s138_s29 }
  0x13   :  { %55 = vrot.lane.b32.xlu2 %v109_v8, %s139_s3 }
  0x1a   :  { %61 = vrot.lane.b32.xlu0 %v110_v9, %s140_s8  ;;  %67 = vrot.lane.b32.xlu1 %v111_v10, %s141_s9 }
  0x1b   :  { %73 = vrot.lane.b32.xlu2 %v112_v11, %s142_s12 }
  0x22   :  { %79 = vrot.lane.b32.xlu0 %v113_v12, %s143_s17  ;;  %85 = vrot.lane.b32.xlu1 %v114_v13, %s144_s18 }
  0x23   :  { %91 = vrot.lane.b32.xlu2 %v115_v14, %s145_s21 }
  0x5d   :  { %v32_v16 = vpop.permute.xlu2 %31  }
  0x65   :  { %v38_v17 = vpop.permute.xlu2 %37  }
  0x6d   :  { %v56_v18 = vpop.permute.xlu2 %55  }
  0x74   :  { %v8_v19 = vpop.permute.xlu0 %7   ;;  %v20_v20 = vpop.permute.xlu1 %19  }
  0x75   :  { %10 = vst.msk [vmem:[#allocation0] sm:$0x1] %vm9_vm1, %v8_v19   ;;  %v74_v21 = vpop.permute.xlu2 %73  }
  0x7c   :  { %v14_v22 = vpop.permute.xlu0 %13   ;;  %v26_v23 = vpop.permute.xlu1 %25  }
  0x7d   :  { %16 = vst.msk [vmem:[#allocation0] sm:$0x1] %vm15_vm2, %v14_v22   ;;  %v92_v24 = vpop.permute.xlu2 %91  }
  0x7e   :  { %22 = vst.msk [vmem:[#allocation0] sm:$0x1] %vm21_vm3, %v20_v20  }
  0x7f   :  { %28 = vst.msk [vmem:[#allocation0] sm:$0x1] %vm27_vm4, %v26_v23  }
  0x80   :  { %34 = vst.msk [vmem:[#allocation0] sm:$0x1] %vm33_vm5, %v32_v16  }
  0x81   :  { %40 = vst.msk [vmem:[#allocation0] sm:$0x1] %vm39_vm6, %v38_v17  }
  0x84   :  { %v44_v25 = vpop.permute.xlu0 %43   ;;  %v50_v26 = vpop.permute.xlu1 %49  }
  0x85   :  { %46 = vst.msk [vmem:[#allocation0] sm:$0x1] %vm45_vm7, %v44_v25  }
  0x86   :  { %52 = vst.msk [vmem:[#allocation0] sm:$0x1] %vm51_vm8, %v50_v26  }
  0x87   :  { %58 = vst.msk [vmem:[#allocation0] sm:$0x1] %vm57_vm9, %v56_v18  }
  0x8c   :  { %v62_v27 = vpop.permute.xlu0 %61   ;;  %v68_v28 = vpop.permute.xlu1 %67  }
  0x8d   :  { %64 = vst.msk [vmem:[#allocation0] sm:$0x1] %vm63_vm10, %v62_v27  }
  0x8e   :  { %70 = vst.msk [vmem:[#allocation0] sm:$0x1] %vm69_vm11, %v68_v28  }
  0x8f   :  { %76 = vst.msk [vmem:[#allocation0] sm:$0x1] %vm75_vm12, %v74_v21  }
  0x94   :  { %v80_v29 = vpop.permute.xlu0 %79   ;;  %v86_v30 = vpop.permute.xlu1 %85  }
  0x95   :  { %82 = vst.msk [vmem:[#allocation0] sm:$0x1] %vm81_vm13, %v80_v29  }
  0x96   :  { %88 = vst.msk [vmem:[#allocation0] sm:$0x1] %vm87_vm14, %v86_v30  }
  0x97   :  { %94 = vst.msk [vmem:[#allocation0] sm:$0x1] %vm93_vm15, %v92_v24  }
  0x9e   :  { %v97_v31 = vld [vmem:[#allocation0] sm:$0x1] }
  0x9f   :  { %100 = vst [vmem:[%s208_s1] sm:$0x1] %v97_v31 }

// kernel: basic_block5x5.1
= control target key start
LH: loop header
LB: loop body
LE: loop exit
PB: predicated region body
PF: predicated region fallthrough
CT: control target
= control target key end

     0   :  { %s8775_s18 = smov 0   ;;  %s11331_s0 = inlined_call_operand.vmem [shape: f32[4,16,128], index: 0, kind: input, shape index: {}]   ;;  %s11332_s1 = inlined_call_operand.vmem [shape: bf16[3200,128], index: 1, kind: input, shape index: {}]   ;;  %s11333_s2 = inlined_call_operand.vmem [shape: f32[1,128], index: 2, kind: input, shape index: {}]   ;;  %s11334_s3 = inlined_call_operand.vmem [shape: bf16[3200,128], index: 3, kind: input, shape index: {}]   ;;  %s11335_s4 = inlined_call_operand.vmem [shape: f32[1,128], index: 4, kind: input, shape index: {}]   ;;  %s11336_s5 = inlined_call_operand.vmem [shape: f32[4,16,128], index: 5, kind: output, shape index: {}]  }
   0x1 LB: > { %s5882_s19 = sadd.s32 4294967295, %s8737_s18   ;;  %p5886_p0 = scmp.ge.s32.totalorder %s8737_s18, 1  ;;  %s8737_s18 = sphi %s8775_s18, %s15_s18  }
   0x2   : > { %p189_p1 = scmp.lt.s32.totalorder %s8737_s18, 3 }
   0x4   : > { %p190_p2 = pnand %p5886_p0, %p189_p1 }
   0x5   : > { %s5887_s20 = sshll.u32 (!%p190_p2), %s5882_s19, 1  ;;  %s8740_s6 = smov (!%p190_p2), 16  }
   0x6   : > { %193 = sbr.rel (%p190_p2) target bundleno = 1191 (0x4a7), region = 40  ;;  %p220_p3 = scmp.lt.s32.totalorder (!%p190_p2), %s5887_s20, 3 }
   0x7   : > { %s8741_s17 = smov (!%p190_p2), 112   ;;  %s8742_s19 = smov (!%p190_p2), 120  }
   0x8   : > { %s8743_s21 = smov (!%p190_p2), 104   ;;  %s8744_s22 = smov (!%p190_p2), 96  }
   0xb   : > { %v7504_v0 = vld [vmem:[%s11332_s1 + $0x38] sm:$0xff]  ;;  %v7503_v1 = vld [vmem:[%s11332_s1 + $0x30] sm:$0xff]  ;;  %vm234_vm0 = vcmask 261120   ;;  %v8739_v2 = vmov 0.0   ;;  %s11338_s20 = smov (!%p220_p3, %s5887_s20), 3  ;;  %v7502_v3 = vld [vmem:[%s11332_s1 + $0x28] sm:$0xff] }
   0xc   : > { %2560 = vmatpush.bf16.msra.mxu0 %v7504_v0  ;;  %243 = vst [vmem:[#allocation2 + $0x40] sm:$0xff] %v8739_v2  ;;  %s7495_s25 = sshll.u32 %s11338_s20, 4  ;;  %vm255_vm1 = vcmask 1041408   ;;  %v7501_v13 = vld [vmem:[%s11332_s1 + $0x20] sm:$0xff]  ;;  %vm239_vm2 = vcmask 257024   ;;  %v7500_v15 = vld [vmem:[%s11332_s1 + $0x18] sm:$0xff] }
   0xd   : > { %244 = vst.msk [vmem:[#allocation2 + $0x48] sm:$0xff] %vm234_vm0, %v8739_v2  ;;  %s8799_s28 = scalar_lea.vmem %s11331_s0, %s7495_s25  ;;  %v7499_v16 = vld [vmem:[%s11332_s1 + $0x10] sm:$0xff]  ;;  %vm284_vm3 = vcmask 1047680   ;;  %vm286_vm4 = vcmask 130048   ;;  %v7498_v18 = vld [vmem:[%s11332_s1 + $0x8] sm:$0xff]  ;;  %v7497_v19 = vld [vmem:[%s11332_s1] sm:$0xff]  ;;  %s231_s16 = scalar_lea.vmem %s11336_s5, %s7495_s25 }
   0xe   : > { %233 = vst [vmem:[#allocation2] sm:$0xff] %v8739_v2  ;;  %v248_v4 = vld [vmem:[%s8799_s28 + $0x8] sm:$0xff]  ;;  %v247_v5 = vld [vmem:[%s8799_s28] sm:$0xff]  ;;  %v249_v6 = vld [vmem:[%s8799_s28 + $0x10] sm:$0xff]  ;;  %vm288_vm5 = vcmask 1041536   ;;  %vm290_vm6 = vcmask 123904  }
   0xf   : > { %235 = vst.msk [vmem:[#allocation2 + $0x8] sm:$0xff] %vm234_vm0, %v8739_v2  ;;  %v257_v7 = vrot.slane %v248_v4, 6  ;;  %v256_v8 = vrot.slane %v247_v5, 6  ;;  %v250_v9 = vld [vmem:[%s8799_s28 + $0x18] sm:$0xff]  ;;  %v259_v10 = vrot.slane %v249_v6, 6  ;;  %vm280_vm7 = vcmask 1047682  }
  0x10   : > { %2561 = vmatpush.bf16.msra.mxu0 %v7503_v1  ;;  %236 = vst [vmem:[#allocation2 + $0x10] sm:$0xff] %v8739_v2  ;;  %v260_v11 = vrot.slane %v250_v9, 6  ;;  %vm282_vm8 = vcmask 130050   ;;  %vm316_vm9 = vcmask 1046528   ;;  %vm347_vm10 = vcmask 1045504  }
  0x11   : > { %237 = vst.msk [vmem:[#allocation2 + $0x18] sm:$0xff] %vm234_vm0, %v8739_v2  ;;  %266 = vrot.lane.b32.xlu1 %v257_v7, %s8740_s6  ;;  %262 = vrot.lane.b32.xlu0 %v256_v8, %s8740_s6  ;;  %v258_v14 = vsel %vm255_vm1, %v256_v8, %v257_v7  ;;  %vm372_vm11 = vcmask 1044480   ;;  %vm397_vm12 = vcmask 1043456   ;;  %vm463_vm13 = vcmask 916480  }
  0x12   : > { %238 = vst [vmem:[#allocation2 + $0x20] sm:$0xf] %v8739_v2  ;;  %v261_v12 = vsel %vm255_vm1, %v259_v10, %v260_v11  ;;  %vm438_vm14 = vcmask 982016   ;;  %vm488_vm15 = vcmask 850944  }
  0x13   : > { %241 = vst [vmem:[#allocation2 + $0x30] sm:$0xff] %v8739_v2  ;;  %270 = vrot.lane.b32.xlu2 %v261_v12, %s8740_s6 }
  0x14   : > { %242 = vst.msk [vmem:[#allocation2 + $0x38] sm:$0xff] %vm234_vm0, %v8739_v2  ;;  %2562 = vmatpush.bf16.msra.mxu0 %v7502_v3  ;;  %vm513_vm0 = vcmask 785408  }
  0x15   : > { %245 = vst [vmem:[#allocation2 + $0x50] sm:$0xf] %v8739_v2 }
  0x16   : > { %240 = vst.msk [vmem:[#allocation2 + $0x28] sm:$0xf] %vm239_vm2, %v8739_v2 }
  0x17   : > { %246 = vst.msk [vmem:[#allocation2 + $0x58] sm:$0xf] %vm239_vm2, %v8739_v2 }
  0x18   : > { %2563 = vmatpush.bf16.msra.mxu0 %v7501_v13 }
  0x19   : > { %268 = vrot.lane.b32.xlu1 %v259_v10, %s8740_s6  ;;  %264 = vrot.lane.b32.xlu0 %v258_v14, %s8740_s6 }
  0x1b   : > { %272 = vrot.lane.b32.xlu2 %v260_v11, %s8740_s6 }
  0x1c   : > { %2564 = vmatpush.bf16.msra.mxu0 %v7500_v15 }
  0x20   : > { %2565 = vmatpush.bf16.msra.mxu0 %v7499_v16 }
  0x24   : > { %2566 = vmatpush.bf16.msra.mxu0 %v7498_v18 }
  0x28   : > { %2567 = vmatpush.bf16.msra.mxu0 %v7497_v19 }
  0x6d   : > { %v271_v17 = vpop.permute.xlu2 %270 }
  0x6e   : > { %294 = vst.msk [vmem:[#allocation2 + $0x40] sm:$0xff] %vm284_vm3, %v271_v17 }
  0x6f   : > { %295 = vst.msk [vmem:[#allocation2 + $0x48] sm:$0xff] %vm286_vm4, %v271_v17 }
  0x75   : > { %v273_v20 = vpop.permute.xlu2 %272  ;;  %v306_v33 = vld [vmem:[#allocation2 + $0x40] sm:$0xff] }
  0x76   : > { %296 = vst.msk [vmem:[#allocation2 + $0x50] sm:$0x3] %vm288_vm5, %v273_v20  ;;  %v8875_v34 = vld [vmem:[#allocation2 + $0x48] sm:$0xff]  ;;  %v323_v39 = vrot.slane %v306_v33, 1  ;;  %v354_v44 = vrot.slane %v306_v33, 2  ;;  %v379_v49 = vrot.slane %v306_v33, 3 }
  0x77   : > { %297 = vst.msk [vmem:[#allocation2 + $0x58] sm:$0x3] %vm290_vm6, %v273_v20  ;;  %v8880_v37 = vpack.i.bf16 %v8875_v34, %v306_v33  ;;  %v404_v53 = vrot.slane %v306_v33, 4 }
  0x7d   : > { %v308_v36 = vld [vmem:[#allocation2 + $0x50] sm:$0xf] }
  0x7e   : > { %v325_v41 = vrot.slane %v308_v36, 1  ;;  %v356_v47 = vrot.slane %v308_v36, 2  ;;  %v381_v50 = vrot.slane %v308_v36, 3  ;;  %v406_v56 = vrot.slane %v308_v36, 4 }
  0x80   : > { %v8896_v48 = vsel %vm316_vm9, %v323_v39, %v325_v41  ;;  %v8918_v0 = vsel %vm347_vm10, %v354_v44, %v356_v47  ;;  %v8936_v8 = vsel %vm372_vm11, %v379_v49, %v381_v50  ;;  %v8940_v11 = vsel %vm397_vm12, %v404_v53, %v406_v56  ;;  %v7518_v47 = vld [vmem:[%s11332_s1 + $0xa8] sm:$0xff]  ;;  %v7512_v50 = vld [vmem:[%s11332_s1 + $0x78] sm:$0xff]  ;;  %v7515_v56 = vld [vmem:[%s11332_s1 + $0x90] sm:$0xff] }
  0x81   : > { %2579 = vmatpush.bf16.msra.mxu1 %v7512_v50  ;;  %v7552_v50 = vld [vmem:[%s11332_s1 + $0x1b8] sm:$0xff] }
  0x83   : > { %v267_v21 = vpop.permute.xlu1 %266  ;;  %v263_v22 = vpop.permute.xlu0 %262 }
  0x84   : > { %289 = vst.msk [vmem:[#allocation2 + $0x20] sm:$0x3] %vm288_vm5, %v267_v21 }
  0x85   : > { %291 = vst.msk [vmem:[#allocation2 + $0x28] sm:$0x3] %vm290_vm6, %v267_v21 }
  0x86   : > { %281 = vst.msk [vmem:[#allocation2] sm:$0xfc] %vm280_vm7, %v263_v22 }
  0x87   : > { %283 = vst.msk [vmem:[#allocation2 + $0x8] sm:$0xfc] %vm282_vm8, %v263_v22 }
  0x8b   : > { %v269_v23 = vpop.permute.xlu1 %268  ;;  %v265_v24 = vpop.permute.xlu0 %264  ;;  %v302_v40 = vld [vmem:[#allocation2 + $0x20] sm:$0xf] }
  0x8c   : > { %292 = vst.msk [vmem:[#allocation2 + $0x30] sm:$0xfc] %vm280_vm7, %v269_v23  ;;  %v320_v46 = vrot.slane %v302_v40, 1  ;;  %v351_v58 = vrot.slane %v302_v40, 2  ;;  %v376_v7 = vrot.slane %v302_v40, 3  ;;  %v401_v10 = vrot.slane %v302_v40, 4 }
  0x8d   : > { %293 = vst.msk [vmem:[#allocation2 + $0x38] sm:$0xfc] %vm282_vm8, %v269_v23  ;;  %v8843_v25 = vld [vmem:[#allocation2] sm:$0xff] }
  0x8e   : > { %285 = vst.msk [vmem:[#allocation2 + $0x10] sm:$0xff] %vm284_vm3, %v265_v24  ;;  %v8846_v26 = vld [vmem:[#allocation2 + $0x8] sm:$0xff]  ;;  %v317_v45 = vrot.slane %v8843_v25, 1  ;;  %v348_v59 = vrot.slane %v8843_v25, 2  ;;  %v373_v6 = vrot.slane %v8843_v25, 3  ;;  %v398_v9 = vrot.slane %v8843_v25, 4 }
  0x8f   : > { %287 = vst.msk [vmem:[#allocation2 + $0x18] sm:$0xff] %vm286_vm4, %v265_v24  ;;  %v8851_v27 = vpack.i.bf16 %v8846_v26, %v8843_v25 }
  0x91   : > { %7938 = vrot.lane.b32.xlu1 %v8851_v27, %s8741_s17  ;;  %7928 = vrot.lane.b32.xlu0 %v8851_v27, %s8742_s19 }
  0x93   : > { %v8857_v28 = vld [vmem:[#allocation2 + $0x30] sm:$0xff] }
  0x94   : > { %v8859_v29 = vld [vmem:[#allocation2 + $0x38] sm:$0xff]  ;;  %v322_v43 = vrot.slane %v8857_v28, 1  ;;  %v931_v57 = vpack.c.bf16 %v306_v33, %v8857_v28  ;;  %v353_v60 = vrot.slane %v8857_v28, 2  ;;  %v378_v62 = vrot.slane %v8857_v28, 3 }
  0x95   : > { %v8863_v30 = vpack.i.bf16 %v8859_v29, %v8857_v28  ;;  %v8865_v31 = vld [vmem:[#allocation2 + $0x10] sm:$0xff]  ;;  %v403_v3 = vrot.slane %v8857_v28, 4  ;;  %v337_v28 = vrot.slane %v8846_v26, 1  ;;  %v342_v36 = vrot.slane %v8859_v29, 1 }
  0x96   : > { %v906_v32 = vpack.c.bf16 %v8865_v31, %v8843_v25  ;;  %v8877_v35 = vld [vmem:[#allocation2 + $0x18] sm:$0xff]  ;;  %v318_v42 = vrot.slane %v8865_v31, 1  ;;  %v8905_v54 = vsel %vm316_vm9, %v322_v43, %v323_v39  ;;  %v349_v55 = vrot.slane %v8865_v31, 2 }
  0x97   : > { %7933 = vrot.lane.b32.xlu2 %v8863_v30, %s8742_s19  ;;  %v8884_v38 = vpack.i.bf16 %v8877_v35, %v8865_v31  ;;  %v374_v61 = vrot.slane %v8865_v31, 3  ;;  %v399_v1 = vrot.slane %v8865_v31, 4  ;;  %v936_v2 = vpack.c.bf16 %v8896_v48, %v8905_v54  ;;  %v8984_v31 = vld [vmem:[#allocation2 + $0x28] sm:$0xf] }
  0x98   : > { %2568 = vmatmul.bf16.vlgmr.msra.gmra.mxu0 %v906_v32  ;;  %v8899_v51 = vsel %vm316_vm9, %v317_v45, %v318_v42  ;;  %v8902_v52 = vsel %vm316_vm9, %v318_v42, %v320_v46  ;;  %v8929_v4 = vsel %vm347_vm10, %v349_v55, %v351_v58  ;;  %v8932_v5 = vsel %vm347_vm10, %v348_v59, %v349_v55  ;;  %v8986_v32 = vld [vmem:[#allocation2 + $0x58] sm:$0xf]  ;;  %v7519_v46 = vld [vmem:[%s11332_s1 + $0xb0] sm:$0xff] }
  0x99   : > { %7953 = vrot.lane.b32.xlu1 %v8863_v30, %s8743_s21  ;;  %7943 = vrot.lane.b32.xlu0 %v8863_v30, %s8741_s17  ;;  %v911_v63 = vpack.c.bf16 %v8902_v52, %v8899_v51  ;;  %v8943_v12 = vsel %vm347_vm10, %v353_v60, %v354_v44  ;;  %v8946_v13 = vsel %vm372_vm11, %v373_v6, %v374_v61  ;;  %v338_v25 = vrot.slane %v8877_v35, 1  ;;  %v7511_v55 = vld [vmem:[%s11332_s1 + $0x70] sm:$0xff]  ;;  %v7528_v6 = vld [vmem:[%s11332_s1 + $0xf8] sm:$0xff] }
  0x9a   : > { %v8949_v14 = vsel %vm372_vm11, %v374_v61, %v376_v7  ;;  %v8952_v15 = vsel %vm372_vm11, %v378_v62, %v379_v49  ;;  %v8955_v16 = vsel %vm397_vm12, %v398_v9, %v399_v1  ;;  %v8958_v17 = vsel %vm397_vm12, %v399_v1, %v401_v10  ;;  %v7517_v49 = vld [vmem:[%s11332_s1 + $0xa0] sm:$0xff]  ;;  %2580 = vmatpush.bf16.msra.mxu1 %v7511_v55  ;;  %v7510_v61 = vld [vmem:[%s11332_s1 + $0x68] sm:$0xff]  ;;  %v7523_v55 = vld [vmem:[%s11332_s1 + $0xd0] sm:$0xff] }
  0x9b   : > { %v8961_v18 = vsel %vm397_vm12, %v403_v3, %v404_v53  ;;  %v916_v19 = vpack.c.bf16 %v8929_v4, %v8932_v5  ;;  %v941_v20 = vpack.c.bf16 %v8918_v0, %v8943_v12  ;;  %v921_v21 = vpack.c.bf16 %v8949_v14, %v8946_v13  ;;  %v7516_v53 = vld [vmem:[%s11332_s1 + $0x98] sm:$0xff]  ;;  %v7514_v62 = vld [vmem:[%s11332_s1 + $0x88] sm:$0xff]  ;;  %2617 = vmatpush.bf16.msra.mxu3 %v7528_v6  ;;  %v7509_v10 = vld [vmem:[%s11332_s1 + $0x60] sm:$0xff] }
  0x9c   : > { %v946_v22 = vpack.c.bf16 %v8936_v8, %v8952_v15  ;;  %v926_v23 = vpack.c.bf16 %v8958_v17, %v8955_v16  ;;  %v951_v24 = vpack.c.bf16 %v8940_v11, %v8961_v18  ;;  %v340_v39 = vrot.slane %v8984_v31, 1  ;;  %v7543_v6 = vld [vmem:[%s11332_s1 + $0x170] sm:$0xff] }
  0x9d   : > { %v362_v58 = vrot.slane %v8846_v26, 2  ;;  %v367_v59 = vrot.slane %v8859_v29, 2  ;;  %v368_v60 = vrot.slane %v8875_v34, 2  ;;  %v365_v1 = vrot.slane %v8984_v31, 2 }
  0x9e   : > { %v341_v40 = vsel %vm316_vm9, %v338_v25, %v340_v39  ;;  %2581 = vmatpush.bf16.msra.mxu1 %v7510_v61  ;;  %v7544_v61 = vld [vmem:[%s11332_s1 + $0x178] sm:$0xff] }
  0x9f   : > { %7948 = vrot.lane.b32.xlu2 %v8851_v27, %s8743_s21  ;;  %v8012_v43 = vpack.i.bf16 %v341_v40, %v8902_v52  ;;  %v369_v9 = vsel %vm347_vm10, %v367_v59, %v368_v60  ;;  %v7526_v40 = vld [vmem:[%s11332_s1 + $0xe8] sm:$0xff] }
  0xa0   : > { %v7522_v59 = vld [vmem:[%s11332_s1 + $0xc8] sm:$0xff] }
  0xa1   : > { %7963 = vrot.lane.b32.xlu0 %v8880_v37, %s8742_s19  ;;  %7958 = vrot.lane.b32.xlu1 %v8884_v38, %s8742_s19 }
  0xa2   : > { %2582 = vmatpush.bf16.msra.mxu1 %v7509_v10 }
  0xa7   : > { %7968 = vrot.lane.b32.xlu2 %v8884_v38, %s8741_s17 }
  0xa8   : > { %2573 = vmatmul.bf16.gmra.mxu0 %v931_v57  ;;  %v363_v57 = vrot.slane %v8877_v35, 2 }
  0xa9   : > { %7978 = vrot.lane.b32.xlu0 %v8884_v38, %s8743_s21  ;;  %7973 = vrot.lane.b32.xlu1 %v8880_v37, %s8741_s17 }
  0xaa   : > { %v364_v3 = vsel %vm347_vm10, %v362_v58, %v363_v57  ;;  %v366_v7 = vsel %vm347_vm10, %v363_v57, %v365_v1  ;;  %v7551_v57 = vld [vmem:[%s11332_s1 + $0x1b0] sm:$0xff]  ;;  %v7521_v1 = vld [vmem:[%s11332_s1 + $0xc0] sm:$0xff] }
  0xaf   : > { %7988 = vrot.lane.b32.xlu2 %v8863_v30, %s8744_s22  ;;  %v339_v30 = vsel %vm316_vm9, %v337_v28, %v338_v25  ;;  %v7513_v25 = vld [vmem:[%s11332_s1 + $0x80] sm:$0xff]  ;;  %v7527_v28 = vld [vmem:[%s11332_s1 + $0xf0] sm:$0xff] }
  0xb0   : > { %v8007_v33 = vpack.i.bf16 %v339_v30, %v8899_v51  ;;  %v9070_v30 = vpack.i.bf16 %v364_v3, %v8932_v5  ;;  %2618 = vmatpush.bf16.msra.mxu3 %v7527_v28  ;;  %v7531_v3 = vld [vmem:[%s11332_s1 + $0x110] sm:$0xff]  ;;  %v7530_v28 = vld [vmem:[%s11332_s1 + $0x108] sm:$0xff] }
  0xb1   : > { %7983 = vrot.lane.b32.xlu0 %v8851_v27, %s8744_s22  ;;  %7998 = vrot.lane.b32.xlu1 %v8884_v38, %s8744_s22  ;;  %v343_v27 = vrot.slane %v8875_v34, 1  ;;  %v345_v38 = vrot.slane %v8986_v32, 1 }
  0xb3   : > { %v344_v41 = vsel %vm316_vm9, %v342_v36, %v343_v27  ;;  %v346_v42 = vsel %vm316_vm9, %v343_v27, %v345_v38  ;;  %v9074_v36 = vpack.i.bf16 %v366_v7, %v8929_v4  ;;  %v9079_v27 = vpack.i.bf16 %v369_v9, %v8943_v12  ;;  %v7508_v38 = vld [vmem:[%s11332_s1 + $0x58] sm:$0xff]  ;;  %v7549_v7 = vld [vmem:[%s11332_s1 + $0x1a0] sm:$0xff]  ;;  %v7638_v12 = vld [vmem:[%s11332_s1 + $0x468] sm:$0xff] }
  0xb4   : > { %v8017_v44 = vpack.i.bf16 %v344_v41, %v8905_v54  ;;  %v8022_v45 = vpack.i.bf16 %v346_v42, %v8896_v48  ;;  %v7536_v41 = vld [vmem:[%s11332_s1 + $0x138] sm:$0xff]  ;;  %2583 = vmatpush.bf16.msra.mxu1 %v7508_v38  ;;  %2619 = vmatpush.bf16.msra.mxu3 %v7526_v40  ;;  %v7507_v42 = vld [vmem:[%s11332_s1 + $0x50] sm:$0xff]  ;;  %v7614_v48 = vld [vmem:[%s11332_s1 + $0x3a8] sm:$0xff] }
  0xb5   : > { %2636 = vmatpush.bf16.msrb.mxu0 %v7536_v41  ;;  %v7560_v41 = vld [vmem:[%s11332_s1 + $0x1f8] sm:$0xff] }
  0xb6   : > { %v7632_v54 = vld [vmem:[%s11332_s1 + $0x438] sm:$0xff] }
  0xb7   : > { %7993 = vrot.lane.b32.xlu2 %v8880_v37, %s8743_s21  ;;  %v7612_v4 = vld [vmem:[%s11332_s1 + $0x398] sm:$0xff] }
  0xb8   : > { %2584 = vmatpush.bf16.msra.mxu1 %v7507_v42 }
  0xb9   : > { %8003 = vrot.lane.b32.xlu0 %v8880_v37, %s8744_s22  ;;  %8008 = vrot.lane.b32.xlu1 %v8007_v33, %s8742_s19  ;;  %v7520_v37 = vld [vmem:[%s11332_s1 + $0xb8] sm:$0xff] }
  0xba   : > { %2598 = vmatpush.bf16.msra.mxu2 %v7520_v37 }
  0xbe   : > { %2599 = vmatpush.bf16.msra.mxu2 %v7519_v46  ;;  %v7506_v46 = vld [vmem:[%s11332_s1 + $0x48] sm:$0xff] }
  0xbf   : > { %8013 = vrot.lane.b32.xlu2 %v8012_v43, %s8742_s19  ;;  %2585 = vmatpush.bf16.msra.mxu1 %v7506_v46 }
  0xc1   : > { %8018 = vrot.lane.b32.xlu0 %v8017_v44, %s8742_s19  ;;  %8023 = vrot.lane.b32.xlu1 %v8022_v45, %s8742_s19 }
  0xc2   : > { %2600 = vmatpush.bf16.msra.mxu2 %v7518_v47  ;;  %v7524_v47 = vld [vmem:[%s11332_s1 + $0xd8] sm:$0xff] }
  0xc6   : > { %2601 = vmatpush.bf16.msra.mxu2 %v7517_v49  ;;  %v7534_v49 = vld [vmem:[%s11332_s1 + $0x128] sm:$0xff] }
  0xc7   : > { %8028 = vrot.lane.b32.xlu2 %v8007_v33, %s8741_s17 }
  0xc9   : > { %8033 = vrot.lane.b32.xlu0 %v8012_v43, %s8741_s17  ;;  %8038 = vrot.lane.b32.xlu1 %v8017_v44, %s8741_s17 }
  0xca   : > { %2602 = vmatpush.bf16.msra.mxu2 %v7516_v53  ;;  %v7505_v53 = vld [vmem:[%s11332_s1 + $0x40] sm:$0xff] }
  0xcb   : > { %2586 = vmatpush.bf16.msra.mxu1 %v7505_v53  ;;  %v7547_v53 = vld [vmem:[%s11332_s1 + $0x190] sm:$0xff] }
  0xce   : > { %2603 = vmatpush.bf16.msra.mxu2 %v7515_v56  ;;  %v7533_v56 = vld [vmem:[%s11332_s1 + $0x120] sm:$0xff] }
  0xcf   : > { %8043 = vrot.lane.b32.xlu2 %v8022_v45, %s8741_s17  ;;  %2655 = vmatpush.bf16.msrb.mxu1 %v7544_v61 }
  0xd1   : > { %8048 = vrot.lane.b32.xlu0 %v8007_v33, %s8743_s21  ;;  %8053 = vrot.lane.b32.xlu1 %v8012_v43, %s8743_s21 }
  0xd2   : > { %2604 = vmatpush.bf16.msra.mxu2 %v7514_v62  ;;  %v7550_v62 = vld [vmem:[%s11332_s1 + $0x1a8] sm:$0xff] }
  0xd3   : > { %2656 = vmatpush.bf16.msrb.mxu1 %v7543_v6 }
  0xd6   : > { %2605 = vmatpush.bf16.msra.mxu2 %v7513_v25 }
  0xd7   : > { %8058 = vrot.lane.b32.xlu2 %v8017_v44, %s8743_s21 }
  0xd9   : > { %8063 = vrot.lane.b32.xlu0 %v8022_v45, %s8743_s21  ;;  %8068 = vrot.lane.b32.xlu1 %v8007_v33, %s8744_s22  ;;  %v370_v33 = vrot.slane %v8986_v32, 2 }
  0xda   : > { %2674 = vmatpush.bf16.msrb.mxu2 %v7552_v50 }
  0xdb   : > { %v371_v39 = vsel %vm347_vm10, %v368_v60, %v370_v33  ;;  %v7532_v60 = vld [vmem:[%s11332_s1 + $0x118] sm:$0xff]  ;;  %v7542_v33 = vld [vmem:[%s11332_s1 + $0x168] sm:$0xff] }
  0xdc   : > { %2657 = vmatpush.bf16.msrb.mxu1 %v7542_v33  ;;  %v395_v33 = vrot.slane %v8986_v32, 3 }
  0xde   : > { %2675 = vmatpush.bf16.msrb.mxu2 %v7551_v57 }
  0xdf   : > { %8073 = vrot.lane.b32.xlu2 %v8012_v43, %s8744_s22  ;;  %v7525_v43 = vld [vmem:[%s11332_s1 + $0xe0] sm:$0xff] }
  0xe0   : > { %2620 = vmatpush.bf16.msra.mxu3 %v7525_v43 }
  0xe1   : > { %8078 = vrot.lane.b32.xlu0 %v8017_v44, %s8744_s22  ;;  %8083 = vrot.lane.b32.xlu1 %v8022_v45, %s8744_s22  ;;  %v9102_v44 = vpack.i.bf16 %v371_v39, %v8918_v0  ;;  %v7535_v45 = vld [vmem:[%s11332_s1 + $0x130] sm:$0xff]  ;;  %v7548_v39 = vld [vmem:[%s11332_s1 + $0x198] sm:$0xff] }
  0xe2   : > { %2637 = vmatpush.bf16.msrb.mxu0 %v7535_v45  ;;  %2676 = vmatpush.bf16.msrb.mxu2 %v7550_v62  ;;  %v390_v62 = vrot.slane %v8984_v31, 3  ;;  %v7627_v0 = vld [vmem:[%s11332_s1 + $0x410] sm:$0xff] }
  0xe4   : > { %2621 = vmatpush.bf16.msra.mxu3 %v7524_v47  ;;  %v7529_v47 = vld [vmem:[%s11332_s1 + $0x100] sm:$0xff] }
  0xe6   : > { %2638 = vmatpush.bf16.msrb.mxu0 %v7534_v49  ;;  %2677 = vmatpush.bf16.msrb.mxu2 %v7549_v7  ;;  %v7541_v49 = vld [vmem:[%s11332_s1 + $0x160] sm:$0xff]  ;;  %v393_v7 = vrot.slane %v8875_v34, 3  ;;  %v7567_v34 = vld [vmem:[%s11332_s1 + $0x230] sm:$0xff] }
  0xe7   : > { %8088 = vrot.lane.b32.xlu2 %v9070_v30, %s8742_s19  ;;  %2658 = vmatpush.bf16.msrb.mxu1 %v7541_v49 }
  0xe8   : > { %2622 = vmatpush.bf16.msra.mxu3 %v7523_v55  ;;  %v7559_v55 = vld [vmem:[%s11332_s1 + $0x1f0] sm:$0xff] }
  0xe9   : > { %8093 = vrot.lane.b32.xlu0 %v9074_v36, %s8742_s19  ;;  %8098 = vrot.lane.b32.xlu1 %v9079_v27, %s8742_s19 }
  0xea   : > { %2639 = vmatpush.bf16.msrb.mxu0 %v7533_v56  ;;  %2678 = vmatpush.bf16.msrb.mxu2 %v7548_v39  ;;  %v388_v56 = vrot.slane %v8877_v35, 3 }
  0xec   : > { %2623 = vmatpush.bf16.msra.mxu3 %v7522_v59  ;;  %v7540_v59 = vld [vmem:[%s11332_s1 + $0x158] sm:$0xff]  ;;  %v391_v6 = vsel %vm372_vm11, %v388_v56, %v390_v62 }
  0xed   : > { %2659 = vmatpush.bf16.msrb.mxu1 %v7540_v59 }
  0xee   : > { %2640 = vmatpush.bf16.msrb.mxu0 %v7532_v60  ;;  %2679 = vmatpush.bf16.msrb.mxu2 %v7547_v53  ;;  %v396_v53 = vsel %vm372_vm11, %v393_v7, %v395_v33  ;;  %v7564_v33 = vld [vmem:[%s11332_s1 + $0x218] sm:$0xff] }
  0xef   : > { %8103 = vrot.lane.b32.xlu2 %v9102_v44, %s8742_s19 }
  0xf0   : > { %2624 = vmatpush.bf16.msra.mxu3 %v7521_v1 }
  0xf1   : > { %8108 = vrot.lane.b32.xlu0 %v9070_v30, %s8741_s17  ;;  %8113 = vrot.lane.b32.xlu1 %v9074_v36, %s8741_s17  ;;  %v9113_v37 = vpop.permute.xlu2 %7933 }
  0xf2   : > { %2641 = vmatpush.bf16.msrb.mxu0 %v7531_v3  ;;  %v7558_v3 = vld [vmem:[%s11332_s1 + $0x1e8] sm:$0xff] }
  0xf4   : > { %2693 = vmatpush.bf16.msrb.mxu3 %v7560_v41 }
  0xf6   : > { %2642 = vmatpush.bf16.msrb.mxu0 %v7530_v28  ;;  %v7545_v28 = vld [vmem:[%s11332_s1 + $0x180] sm:$0xff] }
  0xf7   : > { %8118 = vrot.lane.b32.xlu2 %v9079_v27, %s8741_s17 }
  0xf8   : > { %2694 = vmatpush.bf16.msrb.mxu3 %v7559_v55  ;;  %v7556_v55 = vld [vmem:[%s11332_s1 + $0x1d8] sm:$0xff] }
  0xf9   : > { %8123 = vrot.lane.b32.xlu0 %v9102_v44, %s8741_s17  ;;  %8128 = vrot.lane.b32.xlu1 %v9070_v30, %s8743_s21  ;;  %v9145_v58 = vpop.permute.xlu2 %7948 }
  0xfa   : > { %2643 = vmatpush.bf16.msrb.mxu0 %v7529_v47 }
  0xfc   : > { %2695 = vmatpush.bf16.msrb.mxu3 %v7558_v3  ;;  %v7583_v3 = vld [vmem:[%s11332_s1 + $0x2b0] sm:$0xff] }
  0xff   : > { %8133 = vrot.lane.b32.xlu2 %v9074_v36, %s8743_s21 }
 0x101   : > { %8138 = vrot.lane.b32.xlu0 %v9079_v27, %s8743_s21  ;;  %8143 = vrot.lane.b32.xlu1 %v9102_v44, %s8743_s21  ;;  %v7969_v9 = vpop.permute.xlu2 %7968 }
 0x102   : > { %v7971_v10 = vunpack.i.h.bf16 %v7969_v9  ;;  %v7970_v25 = vunpack.i.l.bf16 %v7969_v9  ;;  %v392_v9 = vrot.slane %v8859_v29, 3  ;;  %v9251_v29 = vpack.i.bf16 %v391_v6, %v8949_v14  ;;  %v7555_v6 = vld [vmem:[%s11332_s1 + $0x1d0] sm:$0xff] }
 0x103   : > { %v7939_v38 = vpop.permute.xlu1 %7938  ;;  %v9186_v40 = vpop.permute.xlu0 %7928 }
 0x104   : > { %v7941_v42 = vunpack.i.h.bf16 %v7939_v38  ;;  %v7940_v43 = vunpack.i.l.bf16 %v7939_v38  ;;  %v465_v45 = vsel %vm463_vm13, %v7970_v25, %v7971_v10  ;;  %v7539_v10 = vld [vmem:[%s11332_s1 + $0x150] sm:$0xff]  ;;  %v7931_v38 = vunpack.i.h.bf16 %v9186_v40 }
 0x105   : > { %2660 = vmatpush.bf16.msrb.mxu1 %v7539_v10  ;;  %v7930_v41 = vunpack.i.l.bf16 %v9186_v40  ;;  %v7584_v40 = vld [vmem:[%s11332_s1 + $0x2b8] sm:$0xff]  ;;  %v7950_v10 = vunpack.i.l.bf16 %v9145_v58 }
 0x106   : > { %v464_v46 = vsel %vm463_vm13, %v7940_v43, %v7941_v42  ;;  %v394_v42 = vsel %vm372_vm11, %v392_v9, %v393_v7  ;;  %v7538_v43 = vld [vmem:[%s11332_s1 + $0x148] sm:$0xff]  ;;  %v7951_v9 = vunpack.i.h.bf16 %v9145_v58 }
 0x107   : > { %v908_v50 = vpack.c.bf16 %v465_v45, %v464_v46  ;;  %8148 = vrot.lane.b32.xlu2 %v9070_v30, %s8744_s22  ;;  %v387_v30 = vrot.slane %v8846_v26, 3  ;;  %v7566_v45 = vld [vmem:[%s11332_s1 + $0x228] sm:$0xff]  ;;  %v439_v59 = vsel %vm438_vm14, %v7930_v41, %v7931_v38 }
 0x108   : > { %v7582_v58 = vld [vmem:[%s11332_s1 + $0x2a8] sm:$0xff] }
 0x109   : > { %2606 = vmatmul.bf16.vlgmr.msra.gmra.mxu2 %v908_v50  ;;  %8153 = vrot.lane.b32.xlu0 %v9074_v36, %s8744_s22  ;;  %v9210_v57 = vpop.permute.xlu2 %7988  ;;  %v7546_v36 = vld [vmem:[%s11332_s1 + $0x188] sm:$0xff]  ;;  %v389_v1 = vsel %vm372_vm11, %v387_v30, %v388_v56  ;;  %v7537_v56 = vld [vmem:[%s11332_s1 + $0x140] sm:$0xff]  ;;  %v9285_v30 = vpack.i.bf16 %v394_v42, %v8952_v15 }
 0x10a   : > { %8158 = vrot.lane.b32.xlu1 %v9079_v27, %s8744_s22  ;;  %v7568_v27 = vld [vmem:[%s11332_s1 + $0x238] sm:$0xff]  ;;  %v9240_v25 = vpack.i.bf16 %v389_v1, %v8946_v13  ;;  %2680 = vmatpush.bf16.msrb.mxu2 %v7546_v36  ;;  %v7565_v36 = vld [vmem:[%s11332_s1 + $0x220] sm:$0xff] }
 0x10b   : > { %v9218_v60 = vpop.permute.xlu1 %7953  ;;  %v9220_v61 = vpop.permute.xlu0 %7943  ;;  %2712 = vmatpush.bf16.msra.mxu0 %v7568_v27  ;;  %2661 = vmatpush.bf16.msrb.mxu1 %v7538_v43  ;;  %v9293_v27 = vpack.i.bf16 %v396_v53, %v8936_v8  ;;  %v489_v53 = vsel %vm488_vm15, %v7950_v10, %v7951_v9  ;;  %v7936_v9 = vunpack.i.h.bf16 %v9113_v37  ;;  %v7935_v10 = vunpack.i.l.bf16 %v9113_v37  ;;  %v7592_v37 = vld [vmem:[%s11332_s1 + $0x2f8] sm:$0xff] }
 0x10e   : > { %2681 = vmatpush.bf16.msrb.mxu2 %v7545_v28  ;;  %v7946_v28 = vunpack.i.h.bf16 %v9220_v61 }
 0x10f   : > { %8163 = vrot.lane.b32.xlu2 %v9102_v44, %s8744_s22  ;;  %v7557_v44 = vld [vmem:[%s11332_s1 + $0x1e0] sm:$0xff]  ;;  %2713 = vmatpush.bf16.msra.mxu0 %v7567_v34  ;;  %v7945_v34 = vunpack.i.l.bf16 %v9220_v61 }
 0x110   : > { %2696 = vmatpush.bf16.msrb.mxu3 %v7557_v44  ;;  %2662 = vmatpush.bf16.msrb.mxu1 %v7537_v56  ;;  %v7576_v44 = vld [vmem:[%s11332_s1 + $0x278] sm:$0xff] }
 0x111   : > { %8168 = vrot.lane.b32.xlu0 %v9240_v25, %s8742_s19  ;;  %v9259_v39 = vpop.permute.xlu2 %7993 }
 0x112   : > { %8173 = vrot.lane.b32.xlu1 %v9251_v29, %s8742_s19  ;;  %2750 = vmatpush.bf16.msra.mxu2 %v7584_v40  ;;  %v7575_v40 = vld [vmem:[%s11332_s1 + $0x270] sm:$0xff] }
 0x113   : > { %v7959_v46 = vpop.permute.xlu1 %7958  ;;  %v9272_v47 = vpop.permute.xlu0 %7963  ;;  %2714 = vmatpush.bf16.msra.mxu0 %v7566_v45 }
 0x114   : > { %v7961_v49 = vunpack.i.h.bf16 %v7959_v46  ;;  %v7960_v50 = vunpack.i.l.bf16 %v7959_v46  ;;  %2697 = vmatpush.bf16.msrb.mxu3 %v7556_v55  ;;  %v7554_v46 = vld [vmem:[%s11332_s1 + $0x1c8] sm:$0xff]  ;;  %v7966_v56 = vunpack.i.h.bf16 %v9272_v47 }
 0x116   : > { %v440_v62 = vsel %vm438_vm14, %v7960_v50, %v7961_v49  ;;  %2751 = vmatpush.bf16.msra.mxu2 %v7583_v3  ;;  %v466_v49 = vsel %vm463_vm13, %v7945_v34, %v7946_v28  ;;  %v7581_v3 = vld [vmem:[%s11332_s1 + $0x2a0] sm:$0xff]  ;;  %v7574_v28 = vld [vmem:[%s11332_s1 + $0x268] sm:$0xff] }
 0x117   : > { %8178 = vrot.lane.b32.xlu2 %v9285_v30, %s8742_s19  ;;  %v907_v1 = vpack.c.bf16 %v440_v62, %v439_v59  ;;  %2715 = vmatpush.bf16.msra.mxu0 %v7565_v36  ;;  %v7965_v59 = vunpack.i.l.bf16 %v9272_v47 }
 0x118   : > { %2698 = vmatpush.bf16.msrb.mxu3 %v7555_v6  ;;  %v7553_v6 = vld [vmem:[%s11332_s1 + $0x1c0] sm:$0xff] }
 0x119   : > { %8183 = vrot.lane.b32.xlu0 %v9293_v27, %s8742_s19  ;;  %2587 = vmatmul.bf16.vlgmr.msra.gmra.mxu1 %v907_v1  ;;  %v9305_v7 = vpop.permute.xlu2 %8013  ;;  %v7563_v1 = vld [vmem:[%s11332_s1 + $0x210] sm:$0xff] }
 0x11a   : > { %8188 = vrot.lane.b32.xlu1 %v9240_v25, %s8741_s17  ;;  %2731 = vmatpush.bf16.msra.mxu1 %v7576_v44  ;;  %v442_v44 = vsel %vm438_vm14, %v7965_v59, %v7966_v56  ;;  %v7579_v56 = vld [vmem:[%s11332_s1 + $0x290] sm:$0xff]  ;;  %v7996_v59 = vunpack.i.h.bf16 %v9259_v39 }
 0x11b   : > { %v7974_v38 = vpop.permute.xlu1 %7973  ;;  %v7979_v41 = vpop.permute.xlu0 %7978  ;;  %2716 = vmatpush.bf16.msra.mxu0 %v7564_v33  ;;  %2752 = vmatpush.bf16.msra.mxu2 %v7582_v58 }
 0x11c   : > { %v7976_v61 = vunpack.i.h.bf16 %v7974_v38  ;;  %v7975_v42 = vunpack.i.l.bf16 %v7974_v38  ;;  %v7981_v43 = vunpack.i.h.bf16 %v7979_v41  ;;  %v7980_v45 = vunpack.i.l.bf16 %v7979_v41  ;;  %2699 = vmatpush.bf16.msrb.mxu3 %v7554_v46  ;;  %v7562_v38 = vld [vmem:[%s11332_s1 + $0x208] sm:$0xff] }
 0x11e   : > { %v467_v50 = vsel %vm463_vm13, %v7975_v42, %v7976_v61  ;;  %v490_v55 = vsel %vm488_vm15, %v7980_v45, %v7981_v43  ;;  %2732 = vmatpush.bf16.msra.mxu1 %v7575_v40  ;;  %v7580_v43 = vld [vmem:[%s11332_s1 + $0x298] sm:$0xff]  ;;  %v441_v45 = vsel %vm438_vm14, %v7935_v10, %v7936_v9 }
 0x11f   : > { %8193 = vrot.lane.b32.xlu2 %v9251_v29, %s8741_s17  ;;  %v933_v62 = vpack.c.bf16 %v467_v50, %v466_v49  ;;  %v909_v36 = vpack.c.bf16 %v490_v55, %v489_v53  ;;  %2717 = vmatpush.bf16.msra.mxu0 %v7563_v1  ;;  %v932_v49 = vpack.c.bf16 %v442_v44, %v441_v45  ;;  %v7561_v53 = vld [vmem:[%s11332_s1 + $0x200] sm:$0xff]  ;;  %v8016_v1 = vunpack.i.h.bf16 %v9305_v7  ;;  %v7572_v10 = vld [vmem:[%s11332_s1 + $0x258] sm:$0xff] }
 0x120   : > { %2753 = vmatpush.bf16.msra.mxu2 %v7581_v3  ;;  %2700 = vmatpush.bf16.msrb.mxu3 %v7553_v6  ;;  %v7573_v55 = vld [vmem:[%s11332_s1 + $0x260] sm:$0xff]  ;;  %v8015_v3 = vunpack.i.l.bf16 %v9305_v7  ;;  %v7955_v6 = vunpack.i.l.bf16 %v9218_v60  ;;  %v7600_v7 = vld [vmem:[%s11332_s1 + $0x338] sm:$0xff] }
 0x121   : > { %8198 = vrot.lane.b32.xlu0 %v9240_v25, %s8743_s21  ;;  %2611 = vmatmul.bf16.gmra.mxu2 %v933_v62  ;;  %v9347_v47 = vpop.permute.xlu2 %8028 }
 0x122   : > { %8203 = vrot.lane.b32.xlu1 %v9251_v29, %s8743_s21  ;;  %2625 = vmatmul.bf16.vlgmr.msra.gmra.mxu3 %v909_v36  ;;  %v7591_v36 = vld [vmem:[%s11332_s1 + $0x2f0] sm:$0xff] }
 0x123   : > { %v7999_v34 = vpop.permute.xlu1 %7998  ;;  %v7984_v33 = vpop.permute.xlu0 %7983  ;;  %2733 = vmatpush.bf16.msra.mxu1 %v7574_v28  ;;  %2718 = vmatpush.bf16.msra.mxu0 %v7562_v38 }
 0x124   : > { %v8001_v41 = vunpack.i.h.bf16 %v7999_v34  ;;  %v8000_v58 = vunpack.i.l.bf16 %v7999_v34  ;;  %v7986_v61 = vunpack.i.h.bf16 %v7984_v33  ;;  %v7985_v42 = vunpack.i.l.bf16 %v7984_v33  ;;  %2769 = vmatpush.bf16.msra.mxu3 %v7592_v37  ;;  %2754 = vmatpush.bf16.msra.mxu2 %v7580_v43  ;;  %v7590_v33 = vld [vmem:[%s11332_s1 + $0x2e8] sm:$0xff] }
 0x125   : > { %v539_v37 = vsel %vm438_vm14, %v8015_v3, %v8016_v1 }
 0x126   : > { %v514_v46 = vsel %vm513_vm0, %v7985_v42, %v7986_v61  ;;  %v515_v40 = vsel %vm513_vm0, %v8000_v58, %v8001_v41  ;;  %v7571_v61 = vld [vmem:[%s11332_s1 + $0x250] sm:$0xff] }
 0x127   : > { %8208 = vrot.lane.b32.xlu2 %v9240_v25, %s8744_s22  ;;  %v910_v50 = vpack.c.bf16 %v515_v40, %v514_v46  ;;  %v7995_v25 = vunpack.i.l.bf16 %v9259_v39  ;;  %v7956_v39 = vunpack.i.h.bf16 %v9218_v60  ;;  %2719 = vmatpush.bf16.msra.mxu0 %v7561_v53  ;;  %v7578_v60 = vld [vmem:[%s11332_s1 + $0x288] sm:$0xff]  ;;  %v413_v46 = vrot.slane %v8877_v35, 4  ;;  %v7577_v40 = vld [vmem:[%s11332_s1 + $0x280] sm:$0xff] }
 0x128   : > { %2734 = vmatpush.bf16.msra.mxu1 %v7573_v55  ;;  %2755 = vmatpush.bf16.msra.mxu2 %v7579_v56  ;;  %v7991_v35 = vunpack.i.h.bf16 %v9210_v57  ;;  %v7990_v55 = vunpack.i.l.bf16 %v9210_v57  ;;  %v412_v56 = vrot.slane %v8846_v26, 4  ;;  %v7588_v57 = vld [vmem:[%s11332_s1 + $0x2d8] sm:$0xff]  ;;  %v7598_v26 = vld [vmem:[%s11332_s1 + $0x328] sm:$0xff] }
 0x129   : > { %8213 = vrot.lane.b32.xlu0 %v9251_v29, %s8744_s22  ;;  %2592 = vmatmul.bf16.gmra.mxu1 %v932_v49  ;;  %v9384_v62 = vpop.permute.xlu2 %8043  ;;  %v492_v44 = vsel %vm488_vm15, %v7995_v25, %v7996_v59  ;;  %v491_v41 = vsel %vm488_vm15, %v7955_v6, %v7956_v39  ;;  %v7589_v49 = vld [vmem:[%s11332_s1 + $0x2e0] sm:$0xff] }
 0x12a   : > { %8218 = vrot.lane.b32.xlu1 %v9285_v30, %s8743_s21  ;;  %2644 = vmatmul.bf16.vlgmr.msrb.gmra.mxu0 %v910_v50  ;;  %v934_v45 = vpack.c.bf16 %v492_v44, %v491_v41  ;;  %v7599_v50 = vld [vmem:[%s11332_s1 + $0x330] sm:$0xff]  ;;  %v414_v1 = vsel %vm397_vm12, %v412_v56, %v413_v46  ;;  %v516_v39 = vsel %vm513_vm0, %v7990_v55, %v7991_v35 }
 0x12b   : > { %v8009_v29 = vpop.permute.xlu1 %8008  ;;  %v8004_v9 = vpop.permute.xlu0 %8003  ;;  %2770 = vmatpush.bf16.msra.mxu3 %v7591_v36  ;;  %2788 = vmatpush.bf16.msrb.mxu0 %v7600_v7  ;;  %v7570_v36 = vld [vmem:[%s11332_s1 + $0x248] sm:$0xff]  ;;  %v9450_v6 = vpack.i.bf16 %v414_v1, %v8955_v16  ;;  %v7595_v35 = vld [vmem:[%s11332_s1 + $0x310] sm:$0xff] }
 0x12c   : > { %v8011_v28 = vunpack.i.h.bf16 %v8009_v29  ;;  %v8010_v34 = vunpack.i.l.bf16 %v8009_v29  ;;  %2735 = vmatpush.bf16.msra.mxu1 %v7572_v10  ;;  %v8006_v42 = vunpack.i.h.bf16 %v8004_v9  ;;  %v8005_v43 = vunpack.i.l.bf16 %v8004_v9  ;;  %2756 = vmatpush.bf16.msra.mxu2 %v7578_v60  ;;  %v7569_v10 = vld [vmem:[%s11332_s1 + $0x240] sm:$0xff]  ;;  %v7607_v55 = vld [vmem:[%s11332_s1 + $0x370] sm:$0xff]  ;;  %v7606_v1 = vld [vmem:[%s11332_s1 + $0x368] sm:$0xff] }
 0x12d   : > { %v415_v9 = vrot.slane %v8984_v31, 4 }
 0x12e   : > { %v538_v38 = vsel %vm438_vm14, %v8010_v34, %v8011_v28  ;;  %v517_v3 = vsel %vm513_vm0, %v8005_v43, %v8006_v42  ;;  %v7596_v42 = vld [vmem:[%s11332_s1 + $0x318] sm:$0xff] }
 0x12f   : > { %8223 = vrot.lane.b32.xlu2 %v9293_v27, %s8743_s21  ;;  %v912_v58 = vpack.c.bf16 %v539_v37, %v538_v38  ;;  %2771 = vmatpush.bf16.msra.mxu3 %v7590_v33  ;;  %v935_v29 = vpack.c.bf16 %v517_v3, %v516_v39  ;;  %v7597_v33 = vld [vmem:[%s11332_s1 + $0x320] sm:$0xff]  ;;  %v416_v44 = vsel %vm397_vm12, %v413_v46, %v415_v9  ;;  %v7608_v38 = vld [vmem:[%s11332_s1 + $0x378] sm:$0xff]  ;;  %v8031_v37 = vunpack.i.h.bf16 %v9347_v47 }
 0x130   : > { %2736 = vmatpush.bf16.msra.mxu1 %v7571_v61  ;;  %2789 = vmatpush.bf16.msrb.mxu0 %v7599_v50  ;;  %v7586_v61 = vld [vmem:[%s11332_s1 + $0x2c8] sm:$0xff]  ;;  %v9488_v43 = vpack.i.bf16 %v416_v44, %v8958_v17  ;;  %v7585_v50 = vld [vmem:[%s11332_s1 + $0x2c0] sm:$0xff]  ;;  %v7624_v3 = vld [vmem:[%s11332_s1 + $0x3f8] sm:$0xff] }
 0x131   : > { %8228 = vrot.lane.b32.xlu0 %v9285_v30, %s8744_s22  ;;  %2682 = vmatmul.bf16.vlgmr.msrb.gmra.mxu2 %v912_v58  ;;  %v9428_v53 = vpop.permute.xlu2 %8058  ;;  %v7615_v44 = vld [vmem:[%s11332_s1 + $0x3b0] sm:$0xff] }
 0x132   : > { %8233 = vrot.lane.b32.xlu1 %v9293_v27, %s8744_s22  ;;  %2630 = vmatmul.bf16.gmra.mxu3 %v934_v45 }
 0x133   : > { %v8024_v59 = vpop.permute.xlu1 %8023  ;;  %v8019_v25 = vpop.permute.xlu0 %8018  ;;  %2757 = vmatpush.bf16.msra.mxu2 %v7577_v40  ;;  %2772 = vmatpush.bf16.msra.mxu3 %v7589_v49 }
 0x134   : > { %2737 = vmatpush.bf16.msra.mxu1 %v7570_v36  ;;  %v8026_v7 = vunpack.i.h.bf16 %v8024_v59  ;;  %v8025_v28 = vunpack.i.l.bf16 %v8024_v59  ;;  %v8021_v34 = vunpack.i.h.bf16 %v8019_v25  ;;  %v8020_v60 = vunpack.i.l.bf16 %v8019_v25  ;;  %2790 = vmatpush.bf16.msrb.mxu0 %v7598_v26  ;;  %v7616_v59 = vld [vmem:[%s11332_s1 + $0x3b8] sm:$0xff] }
 0x136   : > { %v541_v58 = vsel %vm438_vm14, %v8025_v28, %v8026_v7 }
 0x137   : > { %8238 = vrot.lane.b32.xlu2 %v9285_v30, %s8741_s17  ;;  %2773 = vmatpush.bf16.msra.mxu3 %v7588_v57  ;;  %v7587_v30 = vld [vmem:[%s11332_s1 + $0x2d0] sm:$0xff] }
 0x138   : > { %2738 = vmatpush.bf16.msra.mxu1 %v7569_v10  ;;  %2791 = vmatpush.bf16.msrb.mxu0 %v7597_v33 }
 0x139   : > { %8243 = vrot.lane.b32.xlu0 %v9293_v27, %s8741_s17  ;;  %2663 = vmatmul.bf16.vlgmr.msrb.gmra.mxu1 %v911_v63  ;;  %v9467_v31 = vpop.permute.xlu2 %8073  ;;  %v8030_v27 = vunpack.i.l.bf16 %v9347_v47  ;;  %v540_v63 = vsel %vm438_vm14, %v8020_v60, %v8021_v34  ;;  %v8729_v34 = vld [vmem:[#allocation2 + $0x38] sm:$0xff] }
 0x13a   : > { %8248 = vrot.lane.b32.xlu1 %v9450_v6, %s8741_s17  ;;  %2649 = vmatmul.bf16.gmra.mxu0 %v935_v29  ;;  %v937_v45 = vpack.c.bf16 %v541_v58, %v540_v63  ;;  %v7594_v29 = vld [vmem:[%s11332_s1 + $0x308] sm:$0xff]  ;;  %v417_v60 = vrot.slane %v8729_v34, 4  ;;  %v420_v63 = vrot.slane %v8986_v32, 4  ;;  %v7623_v58 = vld [vmem:[%s11332_s1 + $0x3f0] sm:$0xff]  ;;  %v7604_v32 = vld [vmem:[%s11332_s1 + $0x358] sm:$0xff] }
 0x13b   : > { %v9477_v41 = vpop.permute.xlu1 %8038  ;;  %v8034_v51 = vpop.permute.xlu0 %8033  ;;  %2774 = vmatpush.bf16.msra.mxu3 %v7587_v30  ;;  %v562_v46 = vsel %vm463_vm13, %v8030_v27, %v8031_v37  ;;  %2826 = vmatpush.bf16.msrb.mxu2 %v7616_v59  ;;  %v8730_v30 = vld [vmem:[#allocation2 + $0x48] sm:$0xff]  ;;  %v7605_v37 = vld [vmem:[%s11332_s1 + $0x360] sm:$0xff] }
 0x13c   : > { %v8036_v52 = vunpack.i.h.bf16 %v8034_v51  ;;  %v8035_v47 = vunpack.i.l.bf16 %v8034_v51  ;;  %2807 = vmatpush.bf16.msrb.mxu1 %v7608_v38  ;;  %2792 = vmatpush.bf16.msrb.mxu0 %v7596_v42  ;;  %v418_v33 = vrot.slane %v8730_v30, 4  ;;  %v7593_v38 = vld [vmem:[%s11332_s1 + $0x300] sm:$0xff]  ;;  %v8041_v27 = vunpack.i.h.bf16 %v9477_v41  ;;  %v7630_v30 = vld [vmem:[%s11332_s1 + $0x428] sm:$0xff] }
 0x13d   : > { %v8040_v51 = vunpack.i.l.bf16 %v9477_v41  ;;  %v8046_v41 = vunpack.i.h.bf16 %v9384_v62 }
 0x13e   : > { %v563_v40 = vsel %vm463_vm13, %v8035_v47, %v8036_v52 }
 0x13f   : > { %8253 = vrot.lane.b32.xlu2 %v9488_v43, %s8741_s17  ;;  %v913_v49 = vpack.c.bf16 %v563_v40, %v562_v46  ;;  %2775 = vmatpush.bf16.msra.mxu3 %v7586_v61  ;;  %v8045_v61 = vunpack.i.l.bf16 %v9384_v62  ;;  %v7622_v62 = vld [vmem:[%s11332_s1 + $0x3e8] sm:$0xff] }
 0x140   : > { %2808 = vmatpush.bf16.msrb.mxu1 %v7607_v55  ;;  %2793 = vmatpush.bf16.msrb.mxu0 %v7595_v35 }
 0x141   : > { %8258 = vrot.lane.b32.xlu0 %v9450_v6, %s8743_s21  ;;  %2687 = vmatmul.bf16.gmra.mxu2 %v937_v45  ;;  %v9505_v56 = vpop.permute.xlu2 %8088  ;;  %v564_v45 = vsel %vm463_vm13, %v8040_v51, %v8041_v27  ;;  %v565_v40 = vsel %vm463_vm13, %v8045_v61, %v8046_v41  ;;  %v7629_v61 = vld [vmem:[%s11332_s1 + $0x420] sm:$0xff] }
 0x142   : > { %8263 = vrot.lane.b32.xlu1 %v9488_v43, %s8743_s21  ;;  %2701 = vmatmul.bf16.vlgmr.msrb.gmra.mxu3 %v913_v49  ;;  %v7613_v49 = vld [vmem:[%s11332_s1 + $0x3a0] sm:$0xff]  ;;  %v938_v59 = vpack.c.bf16 %v565_v40, %v564_v45  ;;  %v8091_v51 = vunpack.i.h.bf16 %v9505_v56  ;;  %v7628_v45 = vld [vmem:[%s11332_s1 + $0x418] sm:$0xff] }
 0x143   : > { %v8054_v25 = vpop.permute.xlu1 %8053  ;;  %v8049_v36 = vpop.permute.xlu0 %8048  ;;  %2776 = vmatpush.bf16.msra.mxu3 %v7585_v50  ;;  %2827 = vmatpush.bf16.msrb.mxu2 %v7615_v44 }
 0x144   : > { %v8056_v57 = vunpack.i.h.bf16 %v8054_v25  ;;  %v8055_v26 = vunpack.i.l.bf16 %v8054_v25  ;;  %v8051_v39 = vunpack.i.h.bf16 %v8049_v36  ;;  %v8050_v9 = vunpack.i.l.bf16 %v8049_v36  ;;  %2809 = vmatpush.bf16.msrb.mxu1 %v7606_v1  ;;  %2794 = vmatpush.bf16.msrb.mxu0 %v7594_v29  ;;  %v7603_v25 = vld [vmem:[%s11332_s1 + $0x350] sm:$0xff] }
 0x145   : > { %v7631_v36 = vld [vmem:[%s11332_s1 + $0x430] sm:$0xff]  ;;  %v8061_v29 = vunpack.i.h.bf16 %v9428_v53 }
 0x146   : > { %v587_v10 = vsel %vm488_vm15, %v8055_v26, %v8056_v57  ;;  %v586_v7 = vsel %vm488_vm15, %v8050_v9, %v8051_v39  ;;  %v8076_v26 = vunpack.i.h.bf16 %v9467_v31  ;;  %v8075_v39 = vunpack.i.l.bf16 %v9467_v31 }
 0x147   : > { %2845 = vmatpush.bf16.msrb.mxu3 %v7624_v3  ;;  %8268 = vrot.lane.b32.xlu2 %v9450_v6, %s8742_s19  ;;  %v914_v28 = vpack.c.bf16 %v587_v10, %v586_v7  ;;  %v8060_v9 = vunpack.i.l.bf16 %v9428_v53  ;;  %v7620_v53 = vld [vmem:[%s11332_s1 + $0x3d8] sm:$0xff] }
 0x148   : > { %2810 = vmatpush.bf16.msrb.mxu1 %v7605_v37  ;;  %2795 = vmatpush.bf16.msrb.mxu0 %v7593_v38  ;;  %v7601_v38 = vld [vmem:[%s11332_s1 + $0x340] sm:$0xff]  ;;  %v7619_v37 = vld [vmem:[%s11332_s1 + $0x3d0] sm:$0xff] }
 0x149   : > { %8273 = vrot.lane.b32.xlu0 %v9488_v43, %s8742_s19  ;;  %2668 = vmatmul.bf16.gmra.mxu1 %v936_v2  ;;  %v9541_v52 = vpop.permute.xlu2 %8103  ;;  %v419_v2 = vsel %vm397_vm12, %v417_v60, %v418_v33  ;;  %v588_v60 = vsel %vm488_vm15, %v8060_v9, %v8061_v29 }
 0x14a   : > { %8278 = vrot.lane.b32.xlu1 %v9450_v6, %s8744_s22  ;;  %2720 = vmatmul.bf16.vlgmr.msra.gmra.mxu0 %v914_v28  ;;  %v421_v6 = vsel %vm397_vm12, %v418_v33, %v420_v63  ;;  %v9567_v46 = vpack.i.bf16 %v419_v2, %v8961_v18  ;;  %v611_v28 = vsel %vm513_vm0, %v8075_v39, %v8076_v26  ;;  %v7611_v33 = vld [vmem:[%s11332_s1 + $0x390] sm:$0xff]  ;;  %v8090_v63 = vunpack.i.l.bf16 %v9505_v56  ;;  %v7610_v56 = vld [vmem:[%s11332_s1 + $0x388] sm:$0xff] }
 0x14b   : > { %v8069_v42 = vpop.permute.xlu1 %8068  ;;  %v8064_v47 = vpop.permute.xlu0 %8063  ;;  %2846 = vmatpush.bf16.msrb.mxu3 %v7623_v58  ;;  %2828 = vmatpush.bf16.msrb.mxu2 %v7614_v48  ;;  %v9576_v55 = vpack.i.bf16 %v421_v6, %v8940_v11  ;;  %v7618_v48 = vld [vmem:[%s11332_s1 + $0x3c8] sm:$0xff] }
 0x14c   : > { %2864 = vmatpush.bf16.msra.mxu0 %v7632_v54  ;;  %v8071_v50 = vunpack.i.h.bf16 %v8069_v42  ;;  %v8070_v35 = vunpack.i.l.bf16 %v8069_v42  ;;  %2811 = vmatpush.bf16.msrb.mxu1 %v7604_v32  ;;  %v8066_v1 = vunpack.i.h.bf16 %v8064_v47  ;;  %v8065_v3 = vunpack.i.l.bf16 %v8064_v47  ;;  %v7640_v42 = vld [vmem:[%s11332_s1 + $0x478] sm:$0xff] }
 0x14d   : > { %v634_v2 = vsel %vm438_vm14, %v8090_v63, %v8091_v51  ;;  %v7625_v63 = vld [vmem:[%s11332_s1 + $0x400] sm:$0xff] }
 0x14e   : > { %v610_v5 = vsel %vm513_vm0, %v8070_v35, %v8071_v50  ;;  %v589_v31 = vsel %vm488_vm15, %v8065_v3, %v8066_v1  ;;  %v7609_v35 = vld [vmem:[%s11332_s1 + $0x380] sm:$0xff] }
 0x14f   : > { %8283 = vrot.lane.b32.xlu2 %v9488_v43, %s8744_s22  ;;  %2847 = vmatpush.bf16.msrb.mxu3 %v7622_v62  ;;  %v7621_v43 = vld [vmem:[%s11332_s1 + $0x3e0] sm:$0xff]  ;;  %v915_v34 = vpack.c.bf16 %v611_v28, %v610_v5  ;;  %v939_v44 = vpack.c.bf16 %v589_v31, %v588_v60  ;;  %v7626_v5 = vld [vmem:[%s11332_s1 + $0x408] sm:$0xff] }
 0x150   : > { %2829 = vmatpush.bf16.msrb.mxu2 %v7613_v49  ;;  %2865 = vmatpush.bf16.msra.mxu0 %v7631_v36  ;;  %v7648_v36 = vld [vmem:[%s11332_s1 + $0x4b8] sm:$0xff]  ;;  %v7637_v31 = vld [vmem:[%s11332_s1 + $0x460] sm:$0xff] }
 0x151   : > { %8288 = vrot.lane.b32.xlu0 %v9567_v46, %s8741_s17  ;;  %2758 = vmatmul.bf16.vlgmr.msra.gmra.mxu2 %v916_v19  ;;  %v9592_v57 = vpop.permute.xlu2 %8118  ;;  %v7602_v19 = vld [vmem:[%s11332_s1 + $0x348] sm:$0xff] }
 0x152   : > { %8293 = vrot.lane.b32.xlu1 %v9576_v55, %s8741_s17  ;;  %2706 = vmatmul.bf16.gmra.mxu3 %v938_v59  ;;  %v7617_v59 = vld [vmem:[%s11332_s1 + $0x3c0] sm:$0xff] }
 0x153   : > { %v9600_v10 = vpop.permute.xlu1 %8083  ;;  %v9602_v7 = vpop.permute.xlu0 %8078  ;;  %2812 = vmatpush.bf16.msrb.mxu1 %v7603_v25  ;;  %2848 = vmatpush.bf16.msrb.mxu3 %v7621_v43  ;;  %v7639_v25 = vld [vmem:[%s11332_s1 + $0x470] sm:$0xff] }
 0x154   : > { %2830 = vmatpush.bf16.msrb.mxu2 %v7612_v4  ;;  %2866 = vmatpush.bf16.msra.mxu0 %v7630_v30  ;;  %v8081_v32 = vunpack.i.h.bf16 %v9602_v7  ;;  %v8080_v62 = vunpack.i.l.bf16 %v9602_v7  ;;  %v8086_v40 = vunpack.i.h.bf16 %v9600_v10  ;;  %v8085_v49 = vunpack.i.l.bf16 %v9600_v10  ;;  %v7655_v30 = vld [vmem:[%s11332_s1 + $0x4f0] sm:$0xff] }
 0x156   : > { %v612_v26 = vsel %vm513_vm0, %v8080_v62, %v8081_v32  ;;  %v613_v29 = vsel %vm513_vm0, %v8085_v49, %v8086_v40  ;;  %v7653_v32 = vld [vmem:[%s11332_s1 + $0x4e0] sm:$0xff]  ;;  %v7663_v40 = vld [vmem:[%s11332_s1 + $0x530] sm:$0xff] }
 0x157   : > { %8298 = vrot.lane.b32.xlu2 %v9567_v46, %s8743_s21  ;;  %2813 = vmatpush.bf16.msrb.mxu1 %v7602_v19  ;;  %v940_v4 = vpack.c.bf16 %v613_v29, %v612_v26  ;;  %v7652_v26 = vld [vmem:[%s11332_s1 + $0x4d8] sm:$0xff]  ;;  %v7633_v29 = vld [vmem:[%s11332_s1 + $0x440] sm:$0xff] }
 0x158   : > { %2849 = vmatpush.bf16.msrb.mxu3 %v7620_v53  ;;  %2831 = vmatpush.bf16.msrb.mxu2 %v7611_v33  ;;  %v7647_v53 = vld [vmem:[%s11332_s1 + $0x4b0] sm:$0xff]  ;;  %v7646_v33 = vld [vmem:[%s11332_s1 + $0x4a8] sm:$0xff] }
 0x159   : > { %8303 = vrot.lane.b32.xlu0 %v9576_v55, %s8743_s21  ;;  %2739 = vmatmul.bf16.vlgmr.msra.gmra.mxu1 %v915_v34  ;;  %v9633_v27 = vpop.permute.xlu2 %8133 }
 0x15a   : > { %8308 = vrot.lane.b32.xlu1 %v9567_v46, %s8742_s19  ;;  %2725 = vmatmul.bf16.gmra.mxu0 %v939_v44  ;;  %v8106_v44 = vunpack.i.h.bf16 %v9541_v52  ;;  %v8136_v49 = vunpack.i.h.bf16 %v9633_v27 }
 0x15b   : > { %v9639_v58 = vpop.permute.xlu1 %8098  ;;  %v8094_v41 = vpop.permute.xlu0 %8093  ;;  %2814 = vmatpush.bf16.msrb.mxu1 %v7601_v38  ;;  %2867 = vmatpush.bf16.msra.mxu0 %v7629_v61  ;;  %v8105_v38 = vunpack.i.l.bf16 %v9541_v52  ;;  %v7664_v52 = vld [vmem:[%s11332_s1 + $0x538] sm:$0xff] }
 0x15c   : > { %v8096_v47 = vunpack.i.h.bf16 %v8094_v41  ;;  %2850 = vmatpush.bf16.msrb.mxu3 %v7619_v37  ;;  %v8095_v54 = vunpack.i.l.bf16 %v8094_v41  ;;  %2832 = vmatpush.bf16.msrb.mxu2 %v7610_v56  ;;  %v8101_v28 = vunpack.i.h.bf16 %v9639_v58  ;;  %v8100_v34 = vunpack.i.l.bf16 %v9639_v58  ;;  %v7636_v58 = vld [vmem:[%s11332_s1 + $0x458] sm:$0xff]  ;;  %v7654_v41 = vld [vmem:[%s11332_s1 + $0x4e8] sm:$0xff] }
 0x15e   : > { %v635_v6 = vsel %vm438_vm14, %v8095_v54, %v8096_v47  ;;  %v636_v61 = vsel %vm438_vm14, %v8100_v34, %v8101_v28  ;;  %v7645_v54 = vld [vmem:[%s11332_s1 + $0x4a0] sm:$0xff] }
 0x15f   : > { %2883 = vmatpush.bf16.msra.mxu1 %v7640_v42  ;;  %8313 = vrot.lane.b32.xlu2 %v9576_v55, %s8742_s19  ;;  %v917_v50 = vpack.c.bf16 %v635_v6, %v634_v2  ;;  %v637_v42 = vsel %vm438_vm14, %v8105_v38, %v8106_v44  ;;  %v7635_v2 = vld [vmem:[%s11332_s1 + $0x450] sm:$0xff] }
 0x160   : > { %2851 = vmatpush.bf16.msrb.mxu3 %v7618_v48  ;;  %2868 = vmatpush.bf16.msra.mxu0 %v7628_v45  ;;  %v942_v48 = vpack.c.bf16 %v637_v42, %v636_v61  ;;  %v7649_v61 = vld [vmem:[%s11332_s1 + $0x4c0] sm:$0xff]  ;;  %v7659_v42 = vld [vmem:[%s11332_s1 + $0x510] sm:$0xff] }
 0x161   : > { %8318 = vrot.lane.b32.xlu0 %v9567_v46, %s8744_s22  ;;  %2763 = vmatmul.bf16.gmra.mxu2 %v941_v20  ;;  %v9678_v43 = vpop.permute.xlu2 %8148  ;;  %v7656_v20 = vld [vmem:[%s11332_s1 + $0x4f8] sm:$0xff] }
 0x162   : > { %8323 = vrot.lane.b32.xlu1 %v9576_v55, %s8744_s22  ;;  %2777 = vmatmul.bf16.vlgmr.msra.gmra.mxu3 %v917_v50  ;;  %v8135_v50 = vunpack.i.l.bf16 %v9633_v27 }
 0x163   : > { %v8114_v1 = vpop.permute.xlu1 %8113  ;;  %v8109_v3 = vpop.permute.xlu0 %8108  ;;  %2884 = vmatpush.bf16.msra.mxu1 %v7639_v25  ;;  %2833 = vmatpush.bf16.msrb.mxu2 %v7609_v35  ;;  %v7644_v35 = vld [vmem:[%s11332_s1 + $0x498] sm:$0xff]  ;;  %v8120_v25 = vunpack.i.l.bf16 %v9592_v57 }
 0x164   : > { %v8116_v46 = vunpack.i.h.bf16 %v8114_v1  ;;  %v8115_v55 = vunpack.i.l.bf16 %v8114_v1  ;;  %v8111_v39 = vunpack.i.h.bf16 %v8109_v3  ;;  %2852 = vmatpush.bf16.msrb.mxu3 %v7617_v59  ;;  %v8110_v9 = vunpack.i.l.bf16 %v8109_v3  ;;  %2869 = vmatpush.bf16.msra.mxu0 %v7627_v0  ;;  %v7634_v3 = vld [vmem:[%s11332_s1 + $0x448] sm:$0xff] }
 0x165   : > { %v8121_v59 = vunpack.i.h.bf16 %v9592_v57  ;;  %v7662_v57 = vld [vmem:[%s11332_s1 + $0x528] sm:$0xff] }
 0x166   : > { %v659_v10 = vsel %vm463_vm13, %v8115_v55, %v8116_v46  ;;  %v658_v7 = vsel %vm463_vm13, %v8110_v9, %v8111_v39  ;;  %v7643_v39 = vld [vmem:[%s11332_s1 + $0x490] sm:$0xff] }
 0x167   : > { %2902 = vmatpush.bf16.msra.mxu2 %v7648_v36  ;;  %2885 = vmatpush.bf16.msra.mxu1 %v7638_v12  ;;  %v918_v19 = vpack.c.bf16 %v659_v10, %v658_v7  ;;  %v683_v12 = vsel %vm488_vm15, %v8135_v50, %v8136_v49  ;;  %v660_v46 = vsel %vm463_vm13, %v8120_v25, %v8121_v59  ;;  %v7651_v9 = vld [vmem:[%s11332_s1 + $0x4d0] sm:$0xff]  ;;  %v7661_v7 = vld [vmem:[%s11332_s1 + $0x520] sm:$0xff] }
 0x168   : > { %2921 = vmatpush.bf16.msra.mxu3 %v7656_v20  ;;  %2870 = vmatpush.bf16.msra.mxu0 %v7626_v5  ;;  %v8150_v5 = vunpack.i.l.bf16 %v9678_v43 }
 0x169   : > { %2744 = vmatmul.bf16.gmra.mxu1 %v940_v4  ;;  %v9709_v60 = vpop.permute.xlu2 %8163  ;;  %v8151_v4 = vunpack.i.h.bf16 %v9678_v43  ;;  %v7660_v43 = vld [vmem:[%s11332_s1 + $0x518] sm:$0xff] }
 0x16a   : > { %2796 = vmatmul.bf16.vlgmr.msrb.gmra.mxu0 %v918_v19  ;;  %v7642_v19 = vld [vmem:[%s11332_s1 + $0x488] sm:$0xff] }
 0x16b   : > { %2903 = vmatpush.bf16.msra.mxu2 %v7647_v53  ;;  %v8129_v37 = vpop.permute.xlu1 %8128  ;;  %v8124_v51 = vpop.permute.xlu0 %8123  ;;  %2886 = vmatpush.bf16.msra.mxu1 %v7637_v31 }
 0x16c   : > { %2922 = vmatpush.bf16.msra.mxu3 %v7655_v30  ;;  %2871 = vmatpush.bf16.msra.mxu0 %v7625_v63  ;;  %v8131_v47 = vunpack.i.h.bf16 %v8129_v37  ;;  %v8130_v56 = vunpack.i.l.bf16 %v8129_v37  ;;  %v8126_v62 = vunpack.i.h.bf16 %v8124_v51  ;;  %v8125_v6 = vunpack.i.l.bf16 %v8124_v51  ;;  %v7650_v30 = vld [vmem:[%s11332_s1 + $0x4c8] sm:$0xff]  ;;  %v7641_v37 = vld [vmem:[%s11332_s1 + $0x480] sm:$0xff]  ;;  %v9803_v51 = vpop.f32.mrf.mxu0 }
 0x16e   : > { %v682_v27 = vsel %vm488_vm15, %v8130_v56, %v8131_v47  ;;  %v661_v0 = vsel %vm463_vm13, %v8125_v6, %v8126_v62  ;;  %v7680_v56 = vld [vmem:[%s11332_s1 + $0x5b8] sm:$0xff] }
 0x16f   : > { %2904 = vmatpush.bf16.msra.mxu2 %v7646_v33  ;;  %2887 = vmatpush.bf16.msra.mxu1 %v7636_v58  ;;  %v919_v20 = vpack.c.bf16 %v683_v12, %v682_v27  ;;  %v943_v55 = vpack.c.bf16 %v661_v0, %v660_v46  ;;  %v706_v33 = vsel %vm513_vm0, %v8150_v5, %v8151_v4  ;;  %v7657_v27 = vld [vmem:[%s11332_s1 + $0x500] sm:$0xff]  ;;  %v8166_v12 = vunpack.i.h.bf16 %v9709_v60  ;;  %v7678_v46 = vld [vmem:[%s11332_s1 + $0x5a8] sm:$0xff] }
 0x170   : > { %2923 = vmatpush.bf16.msra.mxu3 %v7654_v41  ;;  %2940 = vmatpush.bf16.msrb.mxu0 %v7664_v52 }
 0x171   : > { %v9742_v45 = vpop.permute.xlu2 %8178 }
 0x172   : > { %2782 = vmatmul.bf16.gmra.mxu3 %v942_v48  ;;  %v7672_v48 = vld [vmem:[%s11332_s1 + $0x578] sm:$0xff] }
 0x173   : > { %2905 = vmatpush.bf16.msra.mxu2 %v7645_v54  ;;  %v9754_v36 = vpop.permute.xlu1 %8143  ;;  %v9756_v1 = vpop.permute.xlu0 %8138  ;;  %2888 = vmatpush.bf16.msra.mxu1 %v7635_v2  ;;  %v7688_v2 = vld [vmem:[%s11332_s1 + $0x5f8] sm:$0xff] }
 0x174   : > { %2924 = vmatpush.bf16.msra.mxu3 %v7653_v32  ;;  %2941 = vmatpush.bf16.msrb.mxu0 %v7663_v40  ;;  %v8146_v63 = vunpack.i.h.bf16 %v9754_v36  ;;  %v8145_v58 = vunpack.i.l.bf16 %v9754_v36  ;;  %v8141_v41 = vunpack.i.h.bf16 %v9756_v1  ;;  %v8140_v52 = vunpack.i.l.bf16 %v9756_v1  ;;  %v9850_v0 = vpop.f32.mrf.mxu0 }
 0x176   : > { %v684_v13 = vsel %vm488_vm15, %v8140_v52, %v8141_v41  ;;  %v685_v14 = vsel %vm488_vm15, %v8145_v58, %v8146_v63  ;;  %v8180_v63 = vunpack.i.l.bf16 %v9742_v45 }
 0x177   : > { %2906 = vmatpush.bf16.msra.mxu2 %v7644_v35  ;;  %2889 = vmatpush.bf16.msra.mxu1 %v7634_v3  ;;  %v7679_v35 = vld [vmem:[%s11332_s1 + $0x5b0] sm:$0xff]  ;;  %v944_v25 = vpack.c.bf16 %v685_v14, %v684_v13 }
 0x178   : > { %2925 = vmatpush.bf16.msra.mxu3 %v7652_v26  ;;  %2942 = vmatpush.bf16.msrb.mxu0 %v7662_v57  ;;  %v7671_v26 = vld [vmem:[%s11332_s1 + $0x570] sm:$0xff] }
 0x179   : > { %2815 = vmatmul.bf16.vlgmr.msrb.gmra.mxu1 %v919_v20  ;;  %v9780_v10 = vpop.permute.xlu2 %8193  ;;  %v7687_v57 = vld [vmem:[%s11332_s1 + $0x5f0] sm:$0xff]  ;;  %v8165_v20 = vunpack.i.l.bf16 %v9709_v60  ;;  %v7696_v60 = vld [vmem:[%s11332_s1 + $0x638] sm:$0xff] }
 0x17a   : > { %2801 = vmatmul.bf16.gmra.mxu0 %v943_v55  ;;  %v7670_v55 = vld [vmem:[%s11332_s1 + $0x568] sm:$0xff]  ;;  %v8196_v58 = vunpack.i.h.bf16 %v9780_v10  ;;  %v8195_v41 = vunpack.i.l.bf16 %v9780_v10  ;;  %v7684_v10 = vld [vmem:[%s11332_s1 + $0x5d8] sm:$0xff] }
 0x17b   : > { %2907 = vmatpush.bf16.msra.mxu2 %v7643_v39  ;;  %v8154_v53 = vpop.permute.xlu0 %8153  ;;  %2890 = vmatpush.bf16.msra.mxu1 %v7633_v29  ;;  %v709_v5 = vsel %vm513_vm0, %v8165_v20, %v8166_v12  ;;  %v7666_v12 = vld [vmem:[%s11332_s1 + $0x548] sm:$0xff] }
 0x17c   : > { %v9790_v31 = vpop.permute.xlu1 %8158  ;;  %v8156_v28 = vunpack.i.h.bf16 %v8154_v53  ;;  %v8155_v34 = vunpack.i.l.bf16 %v8154_v53  ;;  %2926 = vmatpush.bf16.msra.mxu3 %v7651_v9  ;;  %2943 = vmatpush.bf16.msrb.mxu0 %v7661_v7  ;;  %v7686_v9 = vld [vmem:[%s11332_s1 + $0x5e8] sm:$0xff] }
 0x17d   : > { %v8161_v36 = vunpack.i.h.bf16 %v9790_v31  ;;  %v8160_v1 = vunpack.i.l.bf16 %v9790_v31  ;;  %v7682_v20 = vld [vmem:[%s11332_s1 + $0x5c8] sm:$0xff] }
 0x17e   : > { %v707_v44 = vsel %vm513_vm0, %v8155_v34, %v8156_v28 }
 0x17f   : > { %2908 = vmatpush.bf16.msra.mxu2 %v7642_v19  ;;  %v920_v38 = vpack.c.bf16 %v707_v44, %v706_v33  ;;  %2959 = vmatpush.bf16.msrb.mxu1 %v7672_v48  ;;  %v708_v4 = vsel %vm513_vm0, %v8160_v1, %v8161_v36  ;;  %v7685_v33 = vld [vmem:[%s11332_s1 + $0x5e0] sm:$0xff] }
 0x180   : > { %2927 = vmatpush.bf16.msra.mxu3 %v7650_v30  ;;  %2944 = vmatpush.bf16.msrb.mxu0 %v7660_v43  ;;  %v945_v19 = vpack.c.bf16 %v709_v5, %v708_v4  ;;  %v7677_v30 = vld [vmem:[%s11332_s1 + $0x5a0] sm:$0xff] }
 0x181   : > { %2834 = vmatmul.bf16.vlgmr.msrb.gmra.mxu2 %v920_v38  ;;  %v9815_v47 = vpop.permute.xlu2 %8208  ;;  %v7669_v43 = vld [vmem:[%s11332_s1 + $0x560] sm:$0xff]  ;;  %v7695_v38 = vld [vmem:[%s11332_s1 + $0x630] sm:$0xff] }
 0x182   : > { %2853 = vmatmul.bf16.vlgmr.msrb.gmra.mxu3 %v921_v21  ;;  %v7658_v21 = vld [vmem:[%s11332_s1 + $0x508] sm:$0xff]  ;;  %v9882_v44 = vld [vmem:[%s11333_s2] ss:$0 sm:$0xff] }
 0x183   : > { %2909 = vmatpush.bf16.msra.mxu2 %v7641_v37  ;;  %v8169_v54 = vpop.permute.xlu0 %8168  ;;  %2960 = vmatpush.bf16.msrb.mxu1 %v7671_v26  ;;  %v8181_v37 = vunpack.i.h.bf16 %v9742_v45  ;;  %v7668_v45 = vld [vmem:[%s11332_s1 + $0x558] sm:$0xff]  ;;  %v2570_v48 = vadd.f32 %v9882_v44, %v9803_v51  ;;  %v7675_v51 = vld [vmem:[%s11332_s1 + $0x590] sm:$0xff]  ;;  %v7693_v1 = vld [vmem:[%s11332_s1 + $0x620] sm:$0xff] }
 0x184   : > { %v8174_v32 = vpop.permute.xlu1 %8173  ;;  %v8171_v62 = vunpack.i.h.bf16 %v8169_v54  ;;  %v8170_v6 = vunpack.i.l.bf16 %v8169_v54  ;;  %2928 = vmatpush.bf16.msra.mxu3 %v7649_v61  ;;  %2945 = vmatpush.bf16.msrb.mxu0 %v7659_v42  ;;  %v7676_v61 = vld [vmem:[%s11332_s1 + $0x598] sm:$0xff]  ;;  %v9910_v54 = vpop.f32.mrf.mxu0  ;;  %v7674_v26 = vld [vmem:[%s11332_s1 + $0x588] sm:$0xff] }
 0x185   : > { %v8176_v40 = vunpack.i.h.bf16 %v8174_v32  ;;  %v8175_v49 = vunpack.i.l.bf16 %v8174_v32  ;;  %v755_v32 = vsel %vm463_vm13, %v8195_v41, %v8196_v58  ;;  %v7690_v41 = vld [vmem:[%s11332_s1 + $0x608] sm:$0xff] }
 0x186   : > { %v730_v50 = vsel %vm438_vm14, %v8170_v6, %v8171_v62  ;;  %v732_v6 = vsel %vm438_vm14, %v8180_v63, %v8181_v37 }
 0x187   : > { %2978 = vmatpush.bf16.msrb.mxu2 %v7680_v56  ;;  %v731_v59 = vsel %vm438_vm14, %v8175_v49, %v8176_v40  ;;  %2961 = vmatpush.bf16.msrb.mxu1 %v7670_v55 }
 0x188   : > { %2997 = vmatpush.bf16.msrb.mxu3 %v7688_v2  ;;  %v922_v3 = vpack.c.bf16 %v731_v59, %v730_v50  ;;  %2946 = vmatpush.bf16.msrb.mxu0 %v7658_v21  ;;  %v7667_v59 = vld [vmem:[%s11332_s1 + $0x550] sm:$0xff] }
 0x189   : > { %2820 = vmatmul.bf16.gmra.mxu1 %v944_v25  ;;  %v9860_v39 = vpop.permute.xlu2 %8223  ;;  %v7683_v25 = vld [vmem:[%s11332_s1 + $0x5d0] sm:$0xff] }
 0x18a   : > { %2872 = vmatmul.bf16.vlgmr.msra.gmra.mxu0 %v922_v3  ;;  %v8211_v3 = vunpack.i.h.bf16 %v9815_v47 }
 0x18b   : > { %2979 = vmatpush.bf16.msrb.mxu2 %v7679_v35  ;;  %v8184_v29 = vpop.permute.xlu0 %8183  ;;  %2962 = vmatpush.bf16.msrb.mxu1 %v7669_v43  ;;  %v7665_v43 = vld [vmem:[%s11332_s1 + $0x540] sm:$0xff] }
 0x18c   : > { %2998 = vmatpush.bf16.msrb.mxu3 %v7687_v57  ;;  %v8189_v7 = vpop.permute.xlu1 %8188  ;;  %2947 = vmatpush.bf16.msrb.mxu0 %v7657_v27  ;;  %v8186_v28 = vunpack.i.h.bf16 %v8184_v29  ;;  %v8185_v34 = vunpack.i.l.bf16 %v8184_v29  ;;  %v2607_v52 = vpop.f32.mrf.mxu2  ;;  %v8210_v27 = vunpack.i.l.bf16 %v9815_v47 }
 0x18d   : > { %v8191_v53 = vunpack.i.h.bf16 %v8189_v7  ;;  %v8190_v31 = vunpack.i.l.bf16 %v8189_v7  ;;  %v7692_v7 = vld [vmem:[%s11332_s1 + $0x618] sm:$0xff] }
 0x18e   : > { %v733_v15 = vsel %vm438_vm14, %v8185_v34, %v8186_v28  ;;  %v802_v4 = vsel %vm513_vm0, %v8210_v27, %v8211_v3 }
 0x18f   : > { %2980 = vmatpush.bf16.msrb.mxu2 %v7678_v46  ;;  %v754_v56 = vsel %vm463_vm13, %v8190_v31, %v8191_v53  ;;  %v947_v21 = vpack.c.bf16 %v733_v15, %v732_v6  ;;  %2963 = vmatpush.bf16.msrb.mxu1 %v7668_v45  ;;  %v9950_v53 = vpop.f32.mrf.mxu0 }
 0x190   : > { %3016 = vmatpush.bf16.msra.mxu0 %v7696_v60  ;;  %2999 = vmatpush.bf16.msrb.mxu3 %v7686_v9  ;;  %v923_v13 = vpack.c.bf16 %v755_v32, %v754_v56  ;;  %v7689_v32 = vld [vmem:[%s11332_s1 + $0x600] sm:$0xff] }
 0x191   : > { %2839 = vmatmul.bf16.gmra.mxu2 %v945_v19  ;;  %v9912_v2 = vpop.permute.xlu2 %8238 }
 0x192   : > { %2858 = vmatmul.bf16.gmra.mxu3 %v946_v22  ;;  %v7694_v22 = vld [vmem:[%s11332_s1 + $0x628] sm:$0xff] }
 0x193   : > { %2981 = vmatpush.bf16.msrb.mxu2 %v7677_v30  ;;  %v8199_v42 = vpop.permute.xlu0 %8198  ;;  %2964 = vmatpush.bf16.msrb.mxu1 %v7667_v59  ;;  %v7673_v30 = vld [vmem:[%s11332_s1 + $0x580] sm:$0xff] }
 0x194   : > { %3000 = vmatpush.bf16.msrb.mxu3 %v7685_v33  ;;  %v8204_v8 = vpop.permute.xlu1 %8203  ;;  %3017 = vmatpush.bf16.msra.mxu0 %v7695_v38  ;;  %v8201_v50 = vunpack.i.h.bf16 %v8199_v42  ;;  %v8200_v35 = vunpack.i.l.bf16 %v8199_v42  ;;  %v9941_v55 = vpop.f32.mrf.mxu2  ;;  %v7681_v33 = vld [vmem:[%s11332_s1 + $0x5c0] sm:$0xff]  ;;  %v7691_v38 = vld [vmem:[%s11332_s1 + $0x610] sm:$0xff] }
 0x195   : > { %v8206_v40 = vunpack.i.h.bf16 %v8204_v8  ;;  %v8205_v49 = vunpack.i.l.bf16 %v8204_v8 }
 0x196   : > { %v2588_v62 = vpop.f32.mrf.mxu1  ;;  %v778_v47 = vsel %vm488_vm15, %v8200_v35, %v8201_v50  ;;  %v8240_v50 = vunpack.i.l.bf16 %v9912_v2 }
 0x197   : > { %2982 = vmatpush.bf16.msrb.mxu2 %v7676_v61  ;;  %v2589_v14 = vadd.f32 %v2588_v62, %v2570_v48  ;;  %v779_v46 = vsel %vm488_vm15, %v8205_v49, %v8206_v40  ;;  %2965 = vmatpush.bf16.msrb.mxu1 %v7666_v12  ;;  %v8225_v40 = vunpack.i.l.bf16 %v9860_v39  ;;  %v8241_v49 = vunpack.i.h.bf16 %v9912_v2 }
 0x198   : > { %3001 = vmatpush.bf16.msrb.mxu3 %v7684_v10  ;;  %3018 = vmatpush.bf16.msra.mxu0 %v7694_v22  ;;  %v924_v31 = vpack.c.bf16 %v779_v46, %v778_v47 }
 0x199   : > { %2891 = vmatmul.bf16.vlgmr.msra.gmra.mxu1 %v923_v13  ;;  %v2608_v36 = vadd.f32 %v2607_v52, %v2589_v14  ;;  %v9952_v28 = vpop.permute.xlu2 %8253  ;;  %v2575_v52 = vadd.f32 %v9882_v44, %v9910_v54  ;;  %v756_v16 = vsel %vm463_vm13, %v8240_v50, %v8241_v49 }
 0x19a   : > { %2877 = vmatmul.bf16.gmra.mxu0 %v947_v21  ;;  %v8226_v21 = vunpack.i.h.bf16 %v9860_v39 }
 0x19b   : > { %2983 = vmatpush.bf16.msrb.mxu2 %v7675_v51  ;;  %v8214_v57 = vpop.permute.xlu0 %8213  ;;  %2966 = vmatpush.bf16.msrb.mxu1 %v7665_v43 }
 0x19c   : > { %3002 = vmatpush.bf16.msrb.mxu3 %v7683_v25  ;;  %v8219_v29 = vpop.permute.xlu1 %8218  ;;  %v8216_v9 = vunpack.i.h.bf16 %v8214_v57  ;;  %v8215_v60 = vunpack.i.l.bf16 %v8214_v57  ;;  %3019 = vmatpush.bf16.msra.mxu0 %v7693_v1 }
 0x19d   : > { %v8221_v8 = vunpack.i.h.bf16 %v8219_v29  ;;  %v8220_v15 = vunpack.i.l.bf16 %v8219_v29 }
 0x19e   : > { %v803_v5 = vsel %vm513_vm0, %v8215_v60, %v8216_v9  ;;  %v9948_v19 = vpop.f32.mrf.mxu1 }
 0x19f   : > { %2984 = vmatpush.bf16.msrb.mxu2 %v7674_v26  ;;  %v925_v34 = vpack.c.bf16 %v803_v5, %v802_v4  ;;  %v780_v1 = vsel %vm488_vm15, %v8220_v15, %v8221_v8 }
 0x1a0   : > { %3003 = vmatpush.bf16.msrb.mxu3 %v7682_v20  ;;  %3020 = vmatpush.bf16.msra.mxu0 %v7692_v7 }
 0x1a1   : > { %2910 = vmatmul.bf16.vlgmr.msra.gmra.mxu2 %v924_v31  ;;  %v9974_v62 = vpop.permute.xlu2 %8268 }
 0x1a2   : > { %2929 = vmatmul.bf16.vlgmr.msra.gmra.mxu3 %v925_v34 }
 0x1a3   : > { %2985 = vmatpush.bf16.msrb.mxu2 %v7673_v30  ;;  %v8229_v37 = vpop.permute.xlu0 %8228 }
 0x1a4   : > { %3004 = vmatpush.bf16.msrb.mxu3 %v7681_v33  ;;  %v8234_v63 = vpop.permute.xlu1 %8233  ;;  %v2612_v58 = vpop.f32.mrf.mxu2  ;;  %3021 = vmatpush.bf16.msra.mxu0 %v7691_v38  ;;  %v8231_v22 = vunpack.i.h.bf16 %v8229_v37  ;;  %v8230_v14 = vunpack.i.l.bf16 %v8229_v37 }
 0x1a5   : > { %v2626_v61 = vpop.f32.mrf.mxu3  ;;  %v8236_v6 = vunpack.i.h.bf16 %v8234_v63  ;;  %v8235_v13 = vunpack.i.l.bf16 %v8234_v63 }
 0x1a6   : > { %v2627_v42 = vadd.f32 %v2626_v61, %v2608_v36  ;;  %v2593_v45 = vpop.f32.mrf.mxu1  ;;  %v804_v39 = vsel %vm513_vm0, %v8230_v14, %v8231_v22  ;;  %v8271_v61 = vunpack.i.h.bf16 %v9974_v62 }
 0x1a7   : > { %v2594_v10 = vadd.f32 %v2593_v45, %v2575_v52  ;;  %v2645_v56 = vpop.f32.mrf.mxu0  ;;  %v805_v27 = vsel %vm513_vm0, %v8235_v13, %v8236_v6  ;;  %v8255_v52 = vunpack.i.l.bf16 %v9952_v28 }
 0x1a8   : > { %v2646_v48 = vadd.f32 %v2645_v56, %v2627_v42  ;;  %3022 = vmatpush.bf16.msra.mxu0 %v7690_v41  ;;  %v950_v20 = vpack.c.bf16 %v805_v27, %v804_v39  ;;  %v8256_v41 = vunpack.i.h.bf16 %v9952_v28  ;;  %v8270_v42 = vunpack.i.l.bf16 %v9974_v62 }
 0x1a9   : > { %v2613_v54 = vadd.f32 %v2612_v58, %v2594_v10  ;;  %v8284_v46 = vpop.permute.xlu2 %8283 }
 0x1aa   : > { %2948 = vmatmul.bf16.vlgmr.msrb.gmra.mxu0 %v926_v23  ;;  %v781_v23 = vsel %vm488_vm15, %v8225_v40, %v8226_v21  ;;  %v851_v62 = vsel %vm463_vm13, %v8255_v52, %v8256_v41  ;;  %v826_v6 = vsel %vm438_vm14, %v8270_v42, %v8271_v61  ;;  %v8286_v50 = vunpack.i.h.bf16 %v8284_v46 }
 0x1ab   : > { %v8244_v35 = vpop.permute.xlu0 %8243  ;;  %v949_v12 = vpack.c.bf16 %v781_v23, %v780_v1 }
 0x1ac   : > { %v8249_v51 = vpop.permute.xlu1 %8248  ;;  %v8246_v59 = vunpack.i.h.bf16 %v8244_v35  ;;  %v8245_v25 = vunpack.i.l.bf16 %v8244_v35  ;;  %v9983_v36 = vpop.f32.mrf.mxu2  ;;  %3023 = vmatpush.bf16.msra.mxu0 %v7689_v32  ;;  %v8285_v35 = vunpack.i.l.bf16 %v8284_v46 }
 0x1ad   : > { %v9986_v3 = vpop.f32.mrf.mxu3  ;;  %v8251_v34 = vunpack.i.h.bf16 %v8249_v51  ;;  %v8250_v30 = vunpack.i.l.bf16 %v8249_v51 }
 0x1ae   : > { %v9990_v2 = vpop.f32.mrf.mxu1  ;;  %v757_v17 = vsel %vm463_vm13, %v8245_v25, %v8246_v59  ;;  %v899_v27 = vsel %vm513_vm0, %v8285_v35, %v8286_v50 }
 0x1af   : > { %v9995_v26 = vpop.f32.mrf.mxu0  ;;  %v948_v57 = vpack.c.bf16 %v757_v17, %v756_v16  ;;  %v850_v10 = vsel %vm463_vm13, %v8250_v30, %v8251_v34 }
 0x1b0   : > { %v928_v13 = vpack.c.bf16 %v851_v62, %v850_v10 }
 0x1b1   : > { %2896 = vmatmul.bf16.gmra.mxu1 %v948_v57  ;;  %2915 = vmatmul.bf16.gmra.mxu2 %v949_v12  ;;  %v8299_v11 = vpop.permute.xlu2 %8298 }
 0x1b2   : > { %2934 = vmatmul.bf16.gmra.mxu3 %v950_v20 }
 0x1b3   : > { %v8259_v47 = vpop.permute.xlu0 %8258 }
 0x1b4   : > { %v8264_v29 = vpop.permute.xlu1 %8263  ;;  %v2683_v9 = vpop.f32.mrf.mxu2  ;;  %v8261_v43 = vunpack.i.h.bf16 %v8259_v47  ;;  %v8260_v63 = vunpack.i.l.bf16 %v8259_v47 }
 0x1b5   : > { %v2631_v60 = vpop.f32.mrf.mxu3  ;;  %v8266_v38 = vunpack.i.h.bf16 %v8264_v29  ;;  %v8265_v37 = vunpack.i.l.bf16 %v8264_v29 }
 0x1b6   : > { %v2632_v7 = vadd.f32 %v2631_v60, %v2613_v54  ;;  %v2664_v4 = vpop.f32.mrf.mxu1  ;;  %v874_v28 = vsel %vm488_vm15, %v8260_v63, %v8261_v43 }
 0x1b7   : > { %v2650_v5 = vpop.f32.mrf.mxu0  ;;  %v2665_v31 = vadd.f32 %v2664_v4, %v2646_v48  ;;  %v875_v48 = vsel %vm488_vm15, %v8265_v37, %v8266_v38  ;;  %v8301_v4 = vunpack.i.h.bf16 %v8299_v11 }
 0x1b8   : > { %v2651_v33 = vadd.f32 %v2650_v5, %v2632_v7  ;;  %v929_v21 = vpack.c.bf16 %v875_v48, %v874_v28  ;;  %v8300_v5 = vunpack.i.l.bf16 %v8299_v11 }
 0x1b9   : > { %v2684_v58 = vadd.f32 %v2683_v9, %v2665_v31  ;;  %v8314_v47 = vpop.permute.xlu2 %8313 }
 0x1ba   : > { %2953 = vmatmul.bf16.gmra.mxu0 %v951_v24  ;;  %v8316_v31 = vunpack.i.h.bf16 %v8314_v47  ;;  %v8315_v34 = vunpack.i.l.bf16 %v8314_v47 }
 0x1bb   : > { %v8274_v45 = vpop.permute.xlu0 %8273 }
 0x1bc   : > { %v8279_v56 = vpop.permute.xlu1 %8278  ;;  %v8276_v8 = vunpack.i.h.bf16 %v8274_v45  ;;  %v8275_v15 = vunpack.i.l.bf16 %v8274_v45  ;;  %v10005_v22 = vpop.f32.mrf.mxu2  ;;  %v876_v45 = vsel %vm488_vm15, %v8300_v5, %v8301_v4 }
 0x1bd   : > { %v10009_v32 = vpop.f32.mrf.mxu3  ;;  %v8281_v40 = vunpack.i.h.bf16 %v8279_v56  ;;  %v8280_v49 = vunpack.i.l.bf16 %v8279_v56 }
 0x1be   : > { %v827_v18 = vsel %vm438_vm14, %v8275_v15, %v8276_v8  ;;  %v10014_v24 = vpop.f32.mrf.mxu1  ;;  %v829_v15 = vsel %vm438_vm14, %v8315_v34, %v8316_v31 }
 0x1bf   : > { %v927_v14 = vpack.c.bf16 %v827_v18, %v826_v6  ;;  %v10016_v54 = vpop.f32.mrf.mxu0  ;;  %v898_v59 = vsel %vm513_vm0, %v8280_v49, %v8281_v40 }
 0x1c0   : > { %v930_v23 = vpack.c.bf16 %v899_v27, %v898_v59 }
 0x1c1   : > { %2967 = vmatmul.bf16.vlgmr.msrb.gmra.mxu1 %v927_v14  ;;  %2986 = vmatmul.bf16.vlgmr.msrb.gmra.mxu2 %v928_v13 }
 0x1c2   : > { %3005 = vmatmul.bf16.vlgmr.msrb.gmra.mxu3 %v929_v21 }
 0x1c3   : > { %v8289_v51 = vpop.permute.xlu0 %8288 }
 0x1c4   : > { %v8294_v25 = vpop.permute.xlu1 %8293  ;;  %v2688_v1 = vpop.f32.mrf.mxu2  ;;  %v8291_v57 = vunpack.i.h.bf16 %v8289_v51  ;;  %v8290_v60 = vunpack.i.l.bf16 %v8289_v51 }
 0x1c5   : > { %v2702_v39 = vpop.f32.mrf.mxu3  ;;  %v8296_v29 = vunpack.i.h.bf16 %v8294_v25  ;;  %v8295_v9 = vunpack.i.l.bf16 %v8294_v25 }
 0x1c6   : > { %v2703_v16 = vadd.f32 %v2702_v39, %v2684_v58  ;;  %v2669_v17 = vpop.f32.mrf.mxu1 }
 0x1c7   : > { %v2670_v12 = vadd.f32 %v2669_v17, %v2651_v33  ;;  %v2721_v20 = vpop.f32.mrf.mxu0  ;;  %v852_v33 = vsel %vm463_vm13, %v8290_v60, %v8291_v57  ;;  %v853_v58 = vsel %vm463_vm13, %v8295_v9, %v8296_v29 }
 0x1c8   : > { %v2722_v46 = vadd.f32 %v2721_v20, %v2703_v16  ;;  %v953_v48 = vpack.c.bf16 %v853_v58, %v852_v33 }
 0x1c9   : > { %v2689_v7 = vadd.f32 %v2688_v1, %v2670_v12 }
 0x1ca   : > { %3024 = vmatmul.bf16.vlgmr.msra.gmra.mxu0 %v930_v23 }
 0x1cb   : > { %v8304_v30 = vpop.permute.xlu0 %8303 }
 0x1cc   : > { %v8309_v43 = vpop.permute.xlu1 %8308  ;;  %v8306_v38 = vunpack.i.h.bf16 %v8304_v30  ;;  %v8305_v37 = vunpack.i.l.bf16 %v8304_v30  ;;  %v10020_v63 = vpop.f32.mrf.mxu2 }
 0x1cd   : > { %v8311_v41 = vunpack.i.h.bf16 %v8309_v43  ;;  %v8310_v52 = vunpack.i.l.bf16 %v8309_v43  ;;  %v10024_v61 = vpop.f32.mrf.mxu3 }
 0x1ce   : > { %v10026_v42 = vpop.f32.mrf.mxu1  ;;  %v877_v10 = vsel %vm488_vm15, %v8305_v37, %v8306_v38 }
 0x1cf   : > { %v10030_v56 = vpop.f32.mrf.mxu0  ;;  %v828_v8 = vsel %vm438_vm14, %v8310_v52, %v8311_v41  ;;  %v954_v28 = vpack.c.bf16 %v877_v10, %v876_v45 }
 0x1d0   : > { %v952_v62 = vpack.c.bf16 %v829_v15, %v828_v8 }
 0x1d1   : > { %2991 = vmatmul.bf16.gmra.mxu2 %v953_v48 }
 0x1d2   : > { %2972 = vmatmul.bf16.gmra.mxu1 %v952_v62  ;;  %3010 = vmatmul.bf16.gmra.mxu3 %v954_v28  ;;  %v2572_v62 = vadd.f32 %v9882_v44, %v9850_v0 }
 0x1d3   : > { %v8319_v6 = vpop.permute.xlu0 %8318 }
 0x1d4   : > { %v8324_v11 = vpop.permute.xlu1 %8323  ;;  %v8321_v18 = vunpack.i.h.bf16 %v8319_v6  ;;  %v8320_v13 = vunpack.i.l.bf16 %v8319_v6  ;;  %v2759_v14 = vpop.f32.mrf.mxu2 }
 0x1d5   : > { %v8326_v21 = vunpack.i.h.bf16 %v8324_v11  ;;  %v8325_v40 = vunpack.i.l.bf16 %v8324_v11  ;;  %v2707_v49 = vpop.f32.mrf.mxu3  ;;  %v2591_v11 = vadd.f32 %v9948_v19, %v2572_v62  ;;  %v2577_v19 = vadd.f32 %v9882_v44, %v9950_v53 }
 0x1d6   : > { %v2708_v50 = vadd.f32 %v2707_v49, %v2689_v7  ;;  %v2740_v35 = vpop.f32.mrf.mxu1  ;;  %v900_v51 = vsel %vm513_vm0, %v8320_v13, %v8321_v18 }
 0x1d7   : > { %v2726_v59 = vpop.f32.mrf.mxu0  ;;  %v2741_v25 = vadd.f32 %v2740_v35, %v2722_v46  ;;  %v901_v1 = vsel %vm513_vm0, %v8325_v40, %v8326_v21 }
 0x1d8   : > { %v2727_v39 = vadd.f32 %v2726_v59, %v2708_v50  ;;  %v955_v27 = vpack.c.bf16 %v901_v1, %v900_v51  ;;  %v2596_v1 = vadd.f32 %v9990_v2, %v2577_v19 }
 0x1d9   : > { %v2760_v16 = vadd.f32 %v2759_v14, %v2741_v25  ;;  %v2610_v14 = vadd.f32 %v9941_v55, %v2591_v11 }
 0x1da   : > { %3029 = vmatmul.bf16.gmra.mxu0 %v955_v27  ;;  %v2615_v27 = vadd.f32 %v9983_v36, %v2596_v1 }
 0x1db   : > { %v2629_v40 = vadd.f32 %v9986_v3, %v2610_v14 }
 0x1dc   : > { %v2761_v23 = vpop.f32.mrf.mxu2 }
 0x1dd   : > { %v10036_v17 = vpop.f32.mrf.mxu3  ;;  %v2648_v35 = vadd.f32 %v9995_v26, %v2629_v40 }
 0x1de   : > { %v2742_v57 = vpop.f32.mrf.mxu1 }
 0x1df   : > { %v10038_v12 = vpop.f32.mrf.mxu0  ;;  %v2667_v51 = vadd.f32 %v10014_v24, %v2648_v35  ;;  %v2634_v24 = vadd.f32 %v10009_v32, %v2615_v27 }
 0x1e1   : > { %v2686_v55 = vadd.f32 %v10005_v22, %v2667_v51 }
 0x1e3   : > { %v2705_v3 = vadd.f32 %v10024_v61, %v2686_v55 }
 0x1e4   : > { %v2764_v7 = vpop.f32.mrf.mxu2 }
 0x1e5   : > { %v2778_v20 = vpop.f32.mrf.mxu3 }
 0x1e6   : > { %v2779_v47 = vadd.f32 %v2778_v20, %v2760_v16  ;;  %v2745_v29 = vpop.f32.mrf.mxu1  ;;  %v2724_v16 = vadd.f32 %v10030_v56, %v2705_v3 }
 0x1e7   : > { %v2746_v9 = vadd.f32 %v2745_v29, %v2727_v39  ;;  %v2797_v60 = vpop.f32.mrf.mxu0  ;;  %v2653_v29 = vadd.f32 %v10016_v54, %v2634_v24 }
 0x1e8   : > { %v2798_v4 = vadd.f32 %v2797_v60, %v2779_v47  ;;  %v2743_v44 = vadd.f32 %v2742_v57, %v2724_v16 }
 0x1e9   : > { %v2765_v46 = vadd.f32 %v2764_v7, %v2746_v9  ;;  %v2672_v2 = vadd.f32 %v10026_v42, %v2653_v29 }
 0x1ea   : > { %v2762_v22 = vadd.f32 %v2761_v23, %v2743_v44 }
 0x1ec   : > { %v10044_v58 = vpop.f32.mrf.mxu2 }
 0x1ed   : > { %v2780_v5 = vpop.f32.mrf.mxu3 }
 0x1ee   : > { %v10040_v31 = vpop.f32.mrf.mxu1  ;;  %v2781_v7 = vadd.f32 %v2780_v5, %v2762_v22 }
 0x1ef   : > { %v2799_v34 = vpop.f32.mrf.mxu0 }
 0x1f5   : > { %v2783_v30 = vpop.f32.mrf.mxu3 }
 0x1f6   : > { %v2784_v43 = vadd.f32 %v2783_v30, %v2765_v46  ;;  %v2816_v38 = vpop.f32.mrf.mxu1  ;;  %v2691_v30 = vadd.f32 %v10020_v63, %v2672_v2 }
 0x1f7   : > { %v2802_v37 = vpop.f32.mrf.mxu0  ;;  %v2817_v9 = vadd.f32 %v2816_v38, %v2798_v4 }
 0x1f8   : > { %v10042_v33 = vadd.f32 %v2802_v37, %v2784_v43  ;;  %v2710_v56 = vadd.f32 %v10036_v17, %v2691_v30  ;;  %v2800_v43 = vadd.f32 %v2799_v34, %v2781_v7 }
 0x1fa   : > { %v2729_v54 = vadd.f32 %v10038_v12, %v2710_v56 }
 0x1fc   : > { %v2748_v5 = vadd.f32 %v10040_v31, %v2729_v54 }
 0x1fd   : > { %v10046_v41 = vpop.f32.mrf.mxu3 }
 0x1fe   : > { %v2818_v52 = vpop.f32.mrf.mxu1  ;;  %v2767_v63 = vadd.f32 %v10044_v58, %v2748_v5 }
 0x1ff   : > { %v10048_v45 = vpop.f32.mrf.mxu0  ;;  %v2819_v57 = vadd.f32 %v2818_v52, %v2800_v43 }
 0x200   : > { %v2786_v52 = vadd.f32 %v10046_v41, %v2767_v63 }
 0x202   : > { %v2805_v31 = vadd.f32 %v10048_v45, %v2786_v52 }
 0x204   : > { %v2835_v10 = vpop.f32.mrf.mxu2 }
 0x205   : > { %v2854_v8 = vpop.f32.mrf.mxu3  ;;  %v2836_v61 = vadd.f32 %v2835_v10, %v2817_v9 }
 0x206   : > { %v2821_v48 = vpop.f32.mrf.mxu1 }
 0x207   : > { %v2873_v15 = vpop.f32.mrf.mxu0  ;;  %v2855_v37 = vadd.f32 %v2854_v8, %v2836_v61  ;;  %v2822_v17 = vadd.f32 %v2821_v48, %v10042_v33 }
 0x209   : > { %v2874_v11 = vadd.f32 %v2873_v15, %v2855_v37 }
 0x20c   : > { %v2837_v28 = vpop.f32.mrf.mxu2 }
 0x20d   : > { %v2856_v6 = vpop.f32.mrf.mxu3  ;;  %v2838_v42 = vadd.f32 %v2837_v28, %v2819_v57 }
 0x20e   : > { %v10053_v13 = vpop.f32.mrf.mxu1 }
 0x20f   : > { %v2875_v18 = vpop.f32.mrf.mxu0  ;;  %v2857_v14 = vadd.f32 %v2856_v6, %v2838_v42  ;;  %v2824_v55 = vadd.f32 %v10053_v13, %v2805_v31  ;;  %v7700_v31 = vld [vmem:[%s11334_s3 + $0x18] sm:$0xff] }
 0x211   : > { %v2876_v8 = vadd.f32 %v2875_v18, %v2857_v14 }
 0x214   : > { %v2840_v21 = vpop.f32.mrf.mxu2 }
 0x215   : > { %v2859_v49 = vpop.f32.mrf.mxu3  ;;  %v2841_v35 = vadd.f32 %v2840_v21, %v2822_v17 }
 0x216   : > { %v2892_v59 = vpop.f32.mrf.mxu1 }
 0x217   : > { %v10057_v50 = vpop.f32.mrf.mxu0  ;;  %v2893_v38 = vadd.f32 %v2892_v59, %v2874_v11  ;;  %v2860_v59 = vadd.f32 %v2859_v49, %v2841_v35 }
 0x219   : > { %v2879_v33 = vadd.f32 %v10057_v50, %v2860_v59 }
 0x21c   : > { %v2842_v0 = vpop.f32.mrf.mxu2 }
 0x21d   : > { %v10063_v25 = vpop.f32.mrf.mxu3  ;;  %v2843_v48 = vadd.f32 %v2842_v0, %v2824_v55 }
 0x21e   : > { %v2894_v47 = vpop.f32.mrf.mxu1 }
 0x21f   : > { %v10067_v39 = vpop.f32.mrf.mxu0  ;;  %v2895_v51 = vadd.f32 %v2894_v47, %v2876_v8 }
 0x224   : > { %v2911_v26 = vpop.f32.mrf.mxu2 }
 0x225   : > { %v2930_v20 = vpop.f32.mrf.mxu3  ;;  %v2912_v40 = vadd.f32 %v2911_v26, %v2893_v38 }
 0x227   : > { %v2949_v53 = vpop.f32.mrf.mxu0  ;;  %v2931_v12 = vadd.f32 %v2930_v20, %v2912_v40  ;;  %v2862_v20 = vadd.f32 %v10063_v25, %v2843_v48 }
 0x229   : > { %v2950_v1 = vadd.f32 %v2949_v53, %v2931_v12  ;;  %v2881_v29 = vadd.f32 %v10067_v39, %v2862_v20 }
 0x22c   : > { %v2913_v60 = vpop.f32.mrf.mxu2 }
 0x22d   : > { %v2932_v46 = vpop.f32.mrf.mxu3  ;;  %v2914_v6 = vadd.f32 %v2913_v60, %v2895_v51  ;;  %v7702_v51 = vld [vmem:[%s11334_s3 + $0x28] sm:$0xff] }
 0x22e   : > { %v2897_v36 = vpop.f32.mrf.mxu1 }
 0x22f   : > { %v2951_v32 = vpop.f32.mrf.mxu0  ;;  %v2933_v41 = vadd.f32 %v2932_v46, %v2914_v6  ;;  %v2898_v26 = vadd.f32 %v2897_v36, %v2879_v33  ;;  %v7698_v6 = vld [vmem:[%s11334_s3 + $0x8] sm:$0xff] }
 0x231   : > { %v2952_v45 = vadd.f32 %v2951_v32, %v2933_v41 }
 0x234   : > { %v2916_v62 = vpop.f32.mrf.mxu2 }
 0x235   : > { %v2935_v23 = vpop.f32.mrf.mxu3  ;;  %v2917_v49 = vadd.f32 %v2916_v62, %v2898_v26 }
 0x236   : > { %v2899_v4 = vpop.f32.mrf.mxu1 }
 0x237   : > { %v2954_v10 = vpop.f32.mrf.mxu0  ;;  %v2936_v2 = vadd.f32 %v2935_v23, %v2917_v49  ;;  %v2900_v9 = vadd.f32 %v2899_v4, %v2881_v29 }
 0x239   : > { %v2955_v46 = vadd.f32 %v2954_v10, %v2936_v2 }
 0x23c   : > { %v2918_v34 = vpop.f32.mrf.mxu2 }
 0x23d   : > { %v2937_v15 = vpop.f32.mrf.mxu3  ;;  %v2919_v25 = vadd.f32 %v2918_v34, %v2900_v9 }
 0x23e   : > { %v2968_v28 = vpop.f32.mrf.mxu1 }
 0x23f   : > { %v2956_v19 = vpop.f32.mrf.mxu0  ;;  %v2969_v58 = vadd.f32 %v2968_v28, %v2950_v1  ;;  %v2938_v43 = vadd.f32 %v2937_v15, %v2919_v25  ;;  %v7704_v15 = vld [vmem:[%s11334_s3 + $0x38] sm:$0xff]  ;;  %v7703_v28 = vld [vmem:[%s11334_s3 + $0x30] sm:$0xff] }
 0x240   : > { %5337 = vmatpush.bf16.msra.mxu1 %v7704_v15  ;;  %v7699_v1 = vld [vmem:[%s11334_s3 + $0x10] sm:$0xff] }
 0x241   : > { %v2957_v23 = vadd.f32 %v2956_v19, %v2938_v43  ;;  %v7701_v19 = vld [vmem:[%s11334_s3 + $0x20] sm:$0xff] }
 0x244   : > { %v2987_v3 = vpop.f32.mrf.mxu2  ;;  %5338 = vmatpush.bf16.msra.mxu1 %v7703_v28 }
 0x245   : > { %v2988_v18 = vadd.f32 %v2987_v3, %v2969_v58  ;;  %v3006_v21 = vpop.f32.mrf.mxu3  ;;  %v7697_v3 = vld [vmem:[%s11334_s3] sm:$0xff] }
 0x246   : > { %v2970_v27 = vpop.f32.mrf.mxu1 }
 0x247   : > { %v3007_v24 = vadd.f32 %v3006_v21, %v2988_v18  ;;  %v3025_v16 = vpop.f32.mrf.mxu0  ;;  %v2971_v44 = vadd.f32 %v2970_v27, %v2952_v45 }
 0x248   : > { %5339 = vmatpush.bf16.msra.mxu1 %v7702_v51 }
 0x249   : > { %v3026_v47 = vadd.f32 %v3025_v16, %v3007_v24 }
 0x24b   : > { %v3035_v53 = vmax.f32 %v3026_v47, 0.0 }
 0x24c   : > { %v2989_v13 = vpop.f32.mrf.mxu2  ;;  %5340 = vmatpush.bf16.msra.mxu1 %v7701_v19 }
 0x24d   : > { %v3043_v50 = vrot.slane %v3035_v53, 6  ;;  %v2990_v0 = vadd.f32 %v2989_v13, %v2971_v44  ;;  %v3008_v22 = vpop.f32.mrf.mxu3 }
 0x24f   : > { %v3009_v60 = vadd.f32 %v3008_v22, %v2990_v0  ;;  %v2973_v7 = vpop.f32.mrf.mxu1  ;;  %v3027_v61 = vpop.f32.mrf.mxu0  ;;  %3049 = vrot.lane.b32.xlu2 %v3043_v50, %s8740_s6 }
 0x250   : > { %v2974_v30 = vadd.f32 %v2973_v7, %v2955_v46  ;;  %5341 = vmatpush.bf16.msra.mxu1 %v7700_v31 }
 0x251   : > { %v3028_v36 = vadd.f32 %v3027_v61, %v3009_v60 }
 0x253   : > { %v3036_v32 = vmax.f32 %v3028_v36, 0.0 }
 0x254   : > { %v2992_v56 = vpop.f32.mrf.mxu2  ;;  %5342 = vmatpush.bf16.msra.mxu1 %v7699_v1 }
 0x255   : > { %v3044_v37 = vrot.slane %v3036_v32, 6  ;;  %v2993_v57 = vadd.f32 %v2992_v56, %v2974_v30  ;;  %v3011_v39 = vpop.f32.mrf.mxu3 }
 0x257   : > { %v3012_v62 = vadd.f32 %v3011_v39, %v2993_v57  ;;  %v3030_v54 = vpop.f32.mrf.mxu0  ;;  %3053 = vrot.lane.b32.xlu1 %v3044_v37, %s8740_s6  ;;  %v3045_v11 = vsel %vm255_vm1, %v3043_v50, %v3044_v37  ;;  %v2975_v42 = vpop.f32.mrf.mxu1 }
 0x258   : > { %3051 = vrot.lane.b32.xlu0 %v3045_v11, %s8740_s6  ;;  %v2976_v5 = vadd.f32 %v2975_v42, %v2957_v23  ;;  %5343 = vmatpush.bf16.msra.mxu1 %v7698_v6 }
 0x259   : > { %v3031_v4 = vadd.f32 %v3030_v54, %v3012_v62 }
 0x25b   : > { %v3037_v38 = vmax.f32 %v3031_v4, 0.0 }
 0x25c   : > { %v2994_v10 = vpop.f32.mrf.mxu2  ;;  %5344 = vmatpush.bf16.msra.mxu1 %v7697_v3 }
 0x25d   : > { %v3046_v14 = vrot.slane %v3037_v38, 6  ;;  %v2995_v40 = vadd.f32 %v2994_v10, %v2976_v5  ;;  %v3013_v63 = vpop.f32.mrf.mxu3 }
 0x25f   : > { %v3014_v17 = vadd.f32 %v3013_v63, %v2995_v40  ;;  %3055 = vrot.lane.b32.xlu2 %v3046_v14, %s8740_s6  ;;  %v3032_v34 = vpop.f32.mrf.mxu0 }
 0x261   : > { %v3033_v52 = vadd.f32 %v3032_v34, %v3014_v17 }
 0x263   : > { %v3038_v8 = vmax.f32 %v3033_v52, 0.0 }
 0x265   : > { %v3047_v35 = vrot.slane %v3038_v8, 6 }
 0x267   : > { %3059 = vrot.lane.b32.xlu1 %v3047_v35, %s8740_s6  ;;  %v3048_v12 = vsel %vm255_vm1, %v3046_v14, %v3047_v35 }
 0x268   : > { %3057 = vrot.lane.b32.xlu0 %v3048_v12, %s8740_s6 }
 0x2a9   : > { %v3050_v59 = vpop.permute.xlu2 %3049 }
 0x2aa   : > { %3067 = vst.msk [vmem:[#allocation2] sm:$0xfc] %vm280_vm7, %v3050_v59 }
 0x2ab   : > { %3068 = vst.msk [vmem:[#allocation2 + $0x8] sm:$0xfc] %vm282_vm8, %v3050_v59 }
 0x2b1   : > { %v10118_v55 = vld [vmem:[#allocation2] sm:$0xff] }
 0x2b2   : > { %v10120_v58 = vld [vmem:[#allocation2 + $0x8] sm:$0xff]  ;;  %v3097_v27 = vrot.slane %v10118_v55, 1  ;;  %v3127_v26 = vrot.slane %v10118_v55, 2  ;;  %v3151_v24 = vrot.slane %v10118_v55, 3  ;;  %v3175_v49 = vrot.slane %v10118_v55, 4 }
 0x2b3   : > { %v10127_v33 = vpack.i.bf16 %v10120_v58, %v10118_v55  ;;  %v3117_v20 = vrot.slane %v10120_v58, 1  ;;  %v3141_v22 = vrot.slane %v10120_v58, 2  ;;  %v3165_v61 = vrot.slane %v10120_v58, 3 }
 0x2b4   : > { %v3189_v46 = vrot.slane %v10120_v58, 4 }
 0x2b5   : > { %8328 = vrot.lane.b32.xlu2 %v10127_v33, %s8742_s19  ;;  %8333 = vrot.lane.b32.xlu0 %v10127_v33, %s8741_s17 }
 0x2b9   : > { %v3056_v48 = vpop.permute.xlu2 %3055 }
 0x2ba   : > { %3073 = vst.msk [vmem:[#allocation2 + $0x30] sm:$0xfc] %vm280_vm7, %v3056_v48 }
 0x2bb   : > { %3074 = vst.msk [vmem:[#allocation2 + $0x38] sm:$0xfc] %vm282_vm8, %v3056_v48 }
 0x2c1   : > { %v10147_v53 = vld [vmem:[#allocation2 + $0x30] sm:$0xff] }
 0x2c2   : > { %v10149_v13 = vld [vmem:[#allocation2 + $0x38] sm:$0xff]  ;;  %v3102_v6 = vrot.slane %v10147_v53, 1 }
 0x2c3   : > { %v10169_v25 = vpack.i.bf16 %v10149_v13, %v10147_v53 }
 0x2c9   : > { %v3054_v41 = vpop.permute.xlu1 %3053 }
 0x2ca   : > { %3071 = vst.msk [vmem:[#allocation2 + $0x20] sm:$0x3] %vm288_vm5, %v3054_v41  ;;  %v3052_v18 = vpop.permute.xlu0 %3051 }
 0x2cb   : > { %3072 = vst.msk [vmem:[#allocation2 + $0x28] sm:$0x3] %vm290_vm6, %v3054_v41 }
 0x2cc   : > { %3069 = vst.msk [vmem:[#allocation2 + $0x10] sm:$0xff] %vm284_vm3, %v3052_v18 }
 0x2cd   : > { %3070 = vst.msk [vmem:[#allocation2 + $0x18] sm:$0xff] %vm286_vm4, %v3052_v18  ;;  %v3156_v18 = vrot.slane %v10147_v53, 3 }
 0x2d1   : > { %v3083_v21 = vld [vmem:[#allocation2 + $0x20] sm:$0xf] }
 0x2d2   : > { %v3154_v45 = vrot.slane %v3083_v21, 3  ;;  %v10155_v9 = vld [vmem:[#allocation2 + $0x28] sm:$0xf]  ;;  %v3100_v36 = vrot.slane %v3083_v21, 1  ;;  %v3130_v37 = vrot.slane %v3083_v21, 2  ;;  %v3178_v4 = vrot.slane %v3083_v21, 4 }
 0x2d3   : > { %v3081_v16 = vld [vmem:[#allocation2 + $0x10] sm:$0xff]  ;;  %v3168_v11 = vrot.slane %v10155_v9, 3  ;;  %v3120_v14 = vrot.slane %v10155_v9, 1  ;;  %v3192_v40 = vrot.slane %v10155_v9, 4 }
 0x2d4   : > { %v10144_v47 = vld [vmem:[#allocation2 + $0x18] sm:$0xff]  ;;  %v3679_v44 = vpack.c.bf16 %v3081_v16, %v10118_v55  ;;  %v3098_v29 = vrot.slane %v3081_v16, 1  ;;  %v3128_v2 = vrot.slane %v3081_v16, 2  ;;  %v3152_v50 = vrot.slane %v3081_v16, 3 }
 0x2d5   : > { %v10152_v0 = vpack.i.bf16 %v10144_v47, %v3081_v16  ;;  %v3118_v60 = vrot.slane %v10144_v47, 1  ;;  %v3142_v30 = vrot.slane %v10144_v47, 2  ;;  %v3166_v54 = vrot.slane %v10144_v47, 3 }
 0x2d6   : > { %5345 = vmatmul.bf16.vlgmr.msra.gmra.mxu1 %v3679_v44  ;;  %v10159_v7 = vsel %vm316_vm9, %v3097_v27, %v3098_v29  ;;  %v10173_v32 = vsel %vm372_vm11, %v3152_v50, %v3154_v45  ;;  %v10181_v43 = vsel %vm347_vm10, %v3127_v26, %v3128_v2  ;;  %v10184_v57 = vsel %vm372_vm11, %v3151_v24, %v3152_v50 }
 0x2d7   : > { %8353 = vrot.lane.b32.xlu2 %v10152_v0, %s8743_s21  ;;  %8343 = vrot.lane.b32.xlu1 %v10152_v0, %s8741_s17  ;;  %v3119_v56 = vsel %vm316_vm9, %v3117_v20, %v3118_v60  ;;  %v3143_v23 = vsel %vm347_vm10, %v3141_v22, %v3142_v30  ;;  %v3176_v38 = vrot.slane %v3081_v16, 4  ;;  %v10201_v10 = vsel %vm316_vm9, %v3098_v29, %v3100_v36 }
 0x2d8   : > { %8338 = vrot.lane.b32.xlu0 %v10152_v0, %s8742_s19  ;;  %v10187_v62 = vpack.i.bf16 %v3119_v56, %v10159_v7  ;;  %v10197_v5 = vpack.i.bf16 %v3143_v23, %v10181_v43  ;;  %v10207_v63 = vsel %vm347_vm10, %v3128_v2, %v3130_v37  ;;  %v3169_v17 = vsel %vm372_vm11, %v3166_v54, %v3168_v11 }
 0x2d9   : > { %v3060_v39 = vpop.permute.xlu1 %3059  ;;  %v3167_v34 = vsel %vm372_vm11, %v3165_v61, %v3166_v54  ;;  %v10212_v52 = vpack.i.bf16 %v3169_v17, %v10173_v32  ;;  %v10222_v35 = vsel %vm397_vm12, %v3176_v38, %v3178_v4  ;;  %v3190_v12 = vrot.slane %v10144_v47, 4  ;;  %v7710_v47 = vld [vmem:[%s11334_s3 + $0x68] sm:$0xff] }
 0x2da   : > { %3077 = vst.msk [vmem:[#allocation2 + $0x50] sm:$0x3] %vm288_vm5, %v3060_v39  ;;  %v3058_v42 = vpop.permute.xlu0 %3057  ;;  %v10215_v8 = vpack.i.bf16 %v3167_v34, %v10184_v57  ;;  %v10228_v15 = vsel %vm397_vm12, %v3175_v49, %v3176_v38  ;;  %v3684_v28 = vpack.c.bf16 %v10201_v10, %v10159_v7  ;;  %v3689_v59 = vpack.c.bf16 %v10207_v63, %v10181_v43  ;;  %v7777_v7 = vld [vmem:[%s11334_s3 + $0x280] sm:$0xff] }
 0x2db   : > { %3078 = vst.msk [vmem:[#allocation2 + $0x58] sm:$0x3] %vm290_vm6, %v3060_v39  ;;  %v3193_v19 = vsel %vm397_vm12, %v3190_v12, %v3192_v40  ;;  %v3191_v31 = vsel %vm397_vm12, %v3189_v46, %v3190_v12  ;;  %v3694_v1 = vpack.c.bf16 %v10173_v32, %v10184_v57  ;;  %v3132_v55 = vrot.slane %v10147_v53, 2  ;;  %v7809_v43 = vld [vmem:[%s11334_s3 + $0x380] sm:$0xff]  ;;  %v7888_v57 = vld [vmem:[%s11334_s3 + $0x5f8] sm:$0xff] }
 0x2dc   : > { %3075 = vst.msk [vmem:[#allocation2 + $0x40] sm:$0xff] %vm284_vm3, %v3058_v42  ;;  %v10241_v58 = vpack.i.bf16 %v3193_v19, %v10222_v35  ;;  %v10247_v21 = vpack.i.bf16 %v3191_v31, %v10228_v15  ;;  %v3180_v27 = vrot.slane %v10147_v53, 4  ;;  %v3121_v49 = vsel %vm316_vm9, %v3118_v60, %v3120_v14 }
 0x2dd   : > { %3076 = vst.msk [vmem:[#allocation2 + $0x48] sm:$0xff] %vm286_vm4, %v3058_v42  ;;  %v3146_v36 = vrot.slane %v10149_v13, 2  ;;  %v3170_v39 = vrot.slane %v10149_v13, 3  ;;  %v3194_v54 = vrot.slane %v10149_v13, 4  ;;  %v8402_v11 = vpack.i.bf16 %v3121_v49, %v10201_v10  ;;  %v7816_v10 = vld [vmem:[%s11334_s3 + $0x3b8] sm:$0xff] }
 0x2df   : > { %8363 = vrot.lane.b32.xlu2 %v10169_v25, %s8741_s17  ;;  %8348 = vrot.lane.b32.xlu1 %v10127_v33, %s8743_s21 }
 0x2e0   : > { %8368 = vrot.lane.b32.xlu0 %v10169_v25, %s8743_s21 }
 0x2e1   : > { %v3089_v51 = vld [vmem:[#allocation2 + $0x50] sm:$0xf] }
 0x2e2   : > { %v10243_v48 = vld [vmem:[#allocation2 + $0x58] sm:$0xf]  ;;  %v3159_v41 = vrot.slane %v3089_v51, 3  ;;  %v3135_v44 = vrot.slane %v3089_v51, 2  ;;  %v3105_v2 = vrot.slane %v3089_v51, 1 }
 0x2e3   : > { %v3087_v3 = vld [vmem:[#allocation2 + $0x40] sm:$0xff]  ;;  %v3149_v22 = vrot.slane %v10243_v48, 2  ;;  %v3173_v46 = vrot.slane %v10243_v48, 3 }
 0x2e4   : > { %v10250_v26 = vld [vmem:[#allocation2 + $0x48] sm:$0xff]  ;;  %v3704_v24 = vpack.c.bf16 %v3087_v3, %v10147_v53  ;;  %v3133_v16 = vrot.slane %v3087_v3, 2  ;;  %v3157_v20 = vrot.slane %v3087_v3, 3  ;;  %v3103_v29 = vrot.slane %v3087_v3, 1 }
 0x2e5   : > { %v8382_v45 = vpack.i.bf16 %v10250_v26, %v3087_v3  ;;  %v3147_v53 = vrot.slane %v10250_v26, 2  ;;  %v3171_v60 = vrot.slane %v10250_v26, 3  ;;  %v3181_v31 = vrot.slane %v3087_v3, 4 }
 0x2e6   : > { %5350 = vmatmul.bf16.gmra.mxu1 %v3704_v24  ;;  %v10258_v50 = vsel %vm347_vm10, %v3132_v55, %v3133_v16  ;;  %v10266_v61 = vsel %vm372_vm11, %v3157_v20, %v3159_v41  ;;  %v10273_v56 = vsel %vm372_vm11, %v3156_v18, %v3157_v20  ;;  %v10276_v37 = vsel %vm347_vm10, %v3133_v16, %v3135_v44 }
 0x2e7   : > { %8358 = vrot.lane.b32.xlu1 %v10169_v25, %s8742_s19  ;;  %8373 = vrot.lane.b32.xlu2 %v8382_v45, %s8742_s19  ;;  %v10282_v42 = vsel %vm316_vm9, %v3103_v29, %v3105_v2  ;;  %v10285_v23 = vsel %vm316_vm9, %v3102_v6, %v3103_v29  ;;  %v3148_v4 = vsel %vm347_vm10, %v3146_v36, %v3147_v53  ;;  %v3183_v6 = vrot.slane %v3089_v51, 4  ;;  %v7719_v36 = vld [vmem:[%s11334_s3 + $0xb0] sm:$0xff] }
 0x2e8   : > { %8383 = vrot.lane.b32.xlu0 %v8382_v45, %s8741_s17  ;;  %v3150_v38 = vsel %vm347_vm10, %v3147_v53, %v3149_v22  ;;  %v3174_v14 = vsel %vm372_vm11, %v3171_v60, %v3173_v46  ;;  %v3172_v40 = vsel %vm372_vm11, %v3170_v39, %v3171_v60  ;;  %v10292_v17 = vpack.i.bf16 %v3148_v4, %v10258_v50  ;;  %v7727_v4 = vld [vmem:[%s11334_s3 + $0xf0] sm:$0xff] }
 0x2e9   : > { %v10295_v34 = vpack.i.bf16 %v3150_v38, %v10276_v37  ;;  %v10298_v12 = vpack.i.bf16 %v3174_v14, %v10266_v61  ;;  %v10301_v19 = vpack.i.bf16 %v3172_v40, %v10273_v56  ;;  %v3195_v55 = vrot.slane %v10250_v26, 4  ;;  %v7708_v38 = vld [vmem:[%s11334_s3 + $0x58] sm:$0xff]  ;;  %v7726_v40 = vld [vmem:[%s11334_s3 + $0xe8] sm:$0xff] }
 0x2ea   : > { %v3197_v41 = vrot.slane %v10243_v48, 4  ;;  %v3709_v18 = vpack.c.bf16 %v10282_v42, %v10285_v23  ;;  %v10314_v24 = vsel %vm397_vm12, %v3180_v27, %v3181_v31  ;;  %v3714_v16 = vpack.c.bf16 %v10276_v37, %v10258_v50  ;;  %v7716_v14 = vld [vmem:[%s11334_s3 + $0x98] sm:$0xff]  ;;  %v7845_v50 = vld [vmem:[%s11334_s3 + $0x4a0] sm:$0xff] }
 0x2eb   : > { %v3196_v3 = vsel %vm397_vm12, %v3194_v54, %v3195_v55  ;;  %v3719_v27 = vpack.c.bf16 %v10266_v61, %v10273_v56  ;;  %v3699_v20 = vpack.c.bf16 %v10222_v35, %v10228_v15  ;;  %v3123_v44 = vrot.slane %v10250_v26, 1  ;;  %v7720_v26 = vld [vmem:[%s11334_s3 + $0xb8] sm:$0xff] }
 0x2ec   : > { %v10325_v51 = vpack.i.bf16 %v3196_v3, %v10314_v24  ;;  %v3125_v29 = vrot.slane %v10243_v48, 1  ;;  %v3122_v2 = vrot.slane %v10149_v13, 1  ;;  %v3144_v13 = vrot.slane %v10155_v9, 2  ;;  %v7712_v48 = vld [vmem:[%s11334_s3 + $0x78] sm:$0xff]  ;;  %5375 = vmatpush.bf16.msra.mxu3 %v7720_v26  ;;  %v7711_v9 = vld [vmem:[%s11334_s3 + $0x70] sm:$0xff]  ;;  %v7734_v26 = vld [vmem:[%s11334_s3 + $0x128] sm:$0xff] }
 0x2ed   : > { %5356 = vmatpush.bf16.msra.mxu2 %v7712_v48  ;;  %v7728_v54 = vld [vmem:[%s11334_s3 + $0xf8] sm:$0xff]  ;;  %v7722_v48 = vld [vmem:[%s11334_s3 + $0xc8] sm:$0xff] }
 0x2ee   : > { %v3124_v22 = vsel %vm316_vm9, %v3122_v2, %v3123_v44  ;;  %v3126_v53 = vsel %vm316_vm9, %v3123_v44, %v3125_v29  ;;  %5394 = vmatpush.bf16.msrb.mxu0 %v7728_v54  ;;  %v7724_v3 = vld [vmem:[%s11334_s3 + $0xd8] sm:$0xff]  ;;  %v7705_v2 = vld [vmem:[%s11334_s3 + $0x40] sm:$0xff]  ;;  %v7742_v54 = vld [vmem:[%s11334_s3 + $0x168] sm:$0xff] }
 0x2ef   : > { %8393 = vrot.lane.b32.xlu1 %v10169_v25, %s8744_s22  ;;  %8378 = vrot.lane.b32.xlu2 %v10127_v33, %s8744_s22  ;;  %v10317_v25 = vsel %vm397_vm12, %v3181_v31, %v3183_v6  ;;  %v3198_v33 = vsel %vm397_vm12, %v3195_v55, %v3197_v41  ;;  %v8427_v60 = vpack.i.bf16 %v3124_v22, %v10285_v23  ;;  %v7707_v31 = vld [vmem:[%s11334_s3 + $0x50] sm:$0xff]  ;;  %v7725_v55 = vld [vmem:[%s11334_s3 + $0xe0] sm:$0xff] }
 0x2f0   : > { %8388 = vrot.lane.b32.xlu0 %v10152_v0, %s8744_s22  ;;  %v10322_v0 = vpack.i.bf16 %v3198_v33, %v10317_v25  ;;  %v3724_v49 = vpack.c.bf16 %v10317_v25, %v10314_v24  ;;  %v8447_v46 = vpack.i.bf16 %v3126_v53, %v10282_v42  ;;  %5376 = vmatpush.bf16.msra.mxu3 %v7719_v36  ;;  %v7715_v6 = vld [vmem:[%s11334_s3 + $0x90] sm:$0xff]  ;;  %v7706_v41 = vld [vmem:[%s11334_s3 + $0x48] sm:$0xff]  ;;  %v7736_v29 = vld [vmem:[%s11334_s3 + $0x138] sm:$0xff] }
 0x2f1   : > { %5357 = vmatpush.bf16.msra.mxu2 %v7711_v9  ;;  %v7714_v33 = vld [vmem:[%s11334_s3 + $0x88] sm:$0xff]  ;;  %5413 = vmatpush.bf16.msrb.mxu1 %v7736_v29  ;;  %v7713_v22 = vld [vmem:[%s11334_s3 + $0x80] sm:$0xff]  ;;  %v7723_v53 = vld [vmem:[%s11334_s3 + $0xd0] sm:$0xff] }
 0x2f2   : > { %5395 = vmatpush.bf16.msrb.mxu0 %v7727_v4  ;;  %v7721_v9 = vld [vmem:[%s11334_s3 + $0xc0] sm:$0xff]  ;;  %v7788_v23 = vld [vmem:[%s11334_s3 + $0x2d8] sm:$0xff] }
 0x2f3   : > { %v7733_v36 = vld [vmem:[%s11334_s3 + $0x120] sm:$0xff] }
 0x2f4   : > { %v7749_v4 = vld [vmem:[%s11334_s3 + $0x1a0] sm:$0xff] }
 0x2f5   : > { %5358 = vmatpush.bf16.msra.mxu2 %v7710_v47  ;;  %v7743_v47 = vld [vmem:[%s11334_s3 + $0x170] sm:$0xff]  ;;  %v7813_v42 = vld [vmem:[%s11334_s3 + $0x3a0] sm:$0xff] }
 0x2f6   : > { %5396 = vmatpush.bf16.msrb.mxu0 %v7726_v40  ;;  %v7740_v40 = vld [vmem:[%s11334_s3 + $0x158] sm:$0xff] }
 0x2f7   : > { %8403 = vrot.lane.b32.xlu1 %v8402_v11, %s8742_s19  ;;  %8413 = vrot.lane.b32.xlu2 %v8402_v11, %s8741_s17 }
 0x2f8   : > { %8398 = vrot.lane.b32.xlu0 %v10187_v62, %s8742_s19 }
 0x2fa   : > { %5397 = vmatpush.bf16.msrb.mxu0 %v7725_v55  ;;  %v7730_v55 = vld [vmem:[%s11334_s3 + $0x108] sm:$0xff] }
 0x2fe   : > { %5398 = vmatpush.bf16.msrb.mxu0 %v7724_v3  ;;  %v7747_v3 = vld [vmem:[%s11334_s3 + $0x190] sm:$0xff] }
 0x2ff   : > { %8408 = vrot.lane.b32.xlu1 %v10187_v62, %s8741_s17  ;;  %8423 = vrot.lane.b32.xlu2 %v8382_v45, %s8744_s22 }
 0x300   : > { %8438 = vrot.lane.b32.xlu0 %v8402_v11, %s8743_s21 }
 0x302   : > { %5399 = vmatpush.bf16.msrb.mxu0 %v7723_v53 }
 0x306   : > { %5400 = vmatpush.bf16.msrb.mxu0 %v7722_v48 }
 0x307   : > { %8418 = vrot.lane.b32.xlu1 %v8382_v45, %s8743_s21  ;;  %8428 = vrot.lane.b32.xlu2 %v8427_v60, %s8742_s19  ;;  %v3145_v45 = vsel %vm347_vm10, %v3142_v30, %v3144_v13  ;;  %v7718_v30 = vld [vmem:[%s11334_s3 + $0xa8] sm:$0xff] }
 0x308   : > { %8448 = vrot.lane.b32.xlu0 %v8447_v46, %s8742_s19  ;;  %v10375_v39 = vpack.i.bf16 %v3145_v45, %v10207_v63  ;;  %5377 = vmatpush.bf16.msra.mxu3 %v7718_v30  ;;  %v7752_v45 = vld [vmem:[%s11334_s3 + $0x1b8] sm:$0xff]  ;;  %v7751_v30 = vld [vmem:[%s11334_s3 + $0x1b0] sm:$0xff] }
 0x309   : > { %v7840_v63 = vld [vmem:[%s11334_s3 + $0x478] sm:$0xff] }
 0x30a   : > { %5401 = vmatpush.bf16.msrb.mxu0 %v7721_v9 }
 0x30f   : > { %8458 = vrot.lane.b32.xlu1 %v10197_v5, %s8742_s19  ;;  %8433 = vrot.lane.b32.xlu2 %v10187_v62, %s8743_s21  ;;  %v10435_v44 = vpop.permute.xlu2 %8328 }
 0x310   : > { %8453 = vrot.lane.b32.xlu0 %v8402_v11, %s8744_s22  ;;  %v7717_v11 = vld [vmem:[%s11334_s3 + $0xa0] sm:$0xff]  ;;  %v8330_v53 = vunpack.i.l.bf16 %v10435_v44 }
 0x311   : > { %5378 = vmatpush.bf16.msra.mxu3 %v7717_v11  ;;  %v7750_v11 = vld [vmem:[%s11334_s3 + $0x1a8] sm:$0xff] }
 0x315   : > { %5379 = vmatpush.bf16.msra.mxu3 %v7716_v14 }
 0x317   : > { %8473 = vrot.lane.b32.xlu1 %v10197_v5, %s8744_s22  ;;  %8443 = vrot.lane.b32.xlu2 %v10187_v62, %s8744_s22  ;;  %v7709_v62 = vld [vmem:[%s11334_s3 + $0x60] sm:$0xff] }
 0x318   : > { %8468 = vrot.lane.b32.xlu0 %v10375_v39, %s8743_s21  ;;  %5359 = vmatpush.bf16.msra.mxu2 %v7709_v62 }
 0x319   : > { %5380 = vmatpush.bf16.msra.mxu3 %v7715_v6 }
 0x31c   : > { %5360 = vmatpush.bf16.msra.mxu2 %v7708_v38  ;;  %v7731_v38 = vld [vmem:[%s11334_s3 + $0x110] sm:$0xff] }
 0x31d   : > { %5381 = vmatpush.bf16.msra.mxu3 %v7714_v33  ;;  %v7739_v33 = vld [vmem:[%s11334_s3 + $0x150] sm:$0xff] }
 0x31f   : > { %8483 = vrot.lane.b32.xlu1 %v8447_v46, %s8741_s17  ;;  %8463 = vrot.lane.b32.xlu2 %v10197_v5, %s8743_s21 }
 0x320   : > { %8478 = vrot.lane.b32.xlu0 %v8427_v60, %s8741_s17  ;;  %5361 = vmatpush.bf16.msra.mxu2 %v7707_v31  ;;  %v7748_v31 = vld [vmem:[%s11334_s3 + $0x198] sm:$0xff] }
 0x321   : > { %5382 = vmatpush.bf16.msra.mxu3 %v7713_v22  ;;  %v8331_v22 = vunpack.i.h.bf16 %v10435_v44 }
 0x324   : > { %5362 = vmatpush.bf16.msra.mxu2 %v7706_v41  ;;  %v7729_v41 = vld [vmem:[%s11334_s3 + $0x100] sm:$0xff] }
 0x325   : > { %5451 = vmatpush.bf16.msrb.mxu3 %v7752_v45  ;;  %v7768_v45 = vld [vmem:[%s11334_s3 + $0x238] sm:$0xff] }
 0x327   : > { %8488 = vrot.lane.b32.xlu1 %v8427_v60, %s8743_s21  ;;  %8498 = vrot.lane.b32.xlu2 %v8427_v60, %s8744_s22  ;;  %v7735_v60 = vld [vmem:[%s11334_s3 + $0x130] sm:$0xff]  ;;  %v8334_v6 = vpop.permute.xlu0 %8333 }
 0x328   : > { %8508 = vrot.lane.b32.xlu0 %v8447_v46, %s8744_s22  ;;  %5363 = vmatpush.bf16.msra.mxu2 %v7705_v2  ;;  %v8336_v29 = vunpack.i.h.bf16 %v8334_v6  ;;  %v8335_v2 = vunpack.i.l.bf16 %v8334_v6  ;;  %v7767_v6 = vld [vmem:[%s11334_s3 + $0x230] sm:$0xff] }
 0x329   : > { %5414 = vmatpush.bf16.msrb.mxu1 %v7735_v60  ;;  %5452 = vmatpush.bf16.msrb.mxu3 %v7751_v30 }
 0x32d   : > { %5415 = vmatpush.bf16.msrb.mxu1 %v7734_v26  ;;  %5453 = vmatpush.bf16.msrb.mxu3 %v7750_v11  ;;  %v7746_v26 = vld [vmem:[%s11334_s3 + $0x188] sm:$0xff] }
 0x32f   : > { %8493 = vrot.lane.b32.xlu1 %v8447_v46, %s8743_s21  ;;  %8503 = vrot.lane.b32.xlu2 %v10375_v39, %s8744_s22  ;;  %v7744_v46 = vld [vmem:[%s11334_s3 + $0x178] sm:$0xff] }
 0x330   : > { %8513 = vrot.lane.b32.xlu0 %v10375_v39, %s8742_s19  ;;  %5432 = vmatpush.bf16.msrb.mxu2 %v7744_v46  ;;  %v7738_v46 = vld [vmem:[%s11334_s3 + $0x148] sm:$0xff] }
 0x331   : > { %v10457_v13 = vpop.permute.xlu2 %8353  ;;  %5416 = vmatpush.bf16.msrb.mxu1 %v7733_v36  ;;  %5454 = vmatpush.bf16.msrb.mxu3 %v7749_v4 }
 0x334   : > { %5433 = vmatpush.bf16.msrb.mxu2 %v7743_v47 }
 0x335   : > { %5455 = vmatpush.bf16.msrb.mxu3 %v7748_v31  ;;  %v7745_v31 = vld [vmem:[%s11334_s3 + $0x180] sm:$0xff] }
 0x337   : > { %8518 = vrot.lane.b32.xlu1 %v10197_v5, %s8741_s17  ;;  %8523 = vrot.lane.b32.xlu2 %v10375_v39, %s8741_s17  ;;  %v7732_v5 = vld [vmem:[%s11334_s3 + $0x118] sm:$0xff]  ;;  %v7741_v39 = vld [vmem:[%s11334_s3 + $0x160] sm:$0xff] }
 0x338   : > { %8528 = vrot.lane.b32.xlu0 %v10292_v17, %s8743_s21  ;;  %5434 = vmatpush.bf16.msrb.mxu2 %v7742_v54  ;;  %v3239_v54 = vsel %vm463_vm13, %v8335_v2, %v8336_v29  ;;  %v7776_v29 = vld [vmem:[%s11334_s3 + $0x278] sm:$0xff] }
 0x339   : > { %v10492_v62 = vpop.permute.xlu2 %8363  ;;  %5417 = vmatpush.bf16.msrb.mxu1 %v7732_v5  ;;  %5456 = vmatpush.bf16.msrb.mxu3 %v7747_v3  ;;  %v3215_v5 = vsel %vm438_vm14, %v8330_v53, %v8331_v22  ;;  %v7784_v53 = vld [vmem:[%s11334_s3 + $0x2b8] sm:$0xff] }
 0x33c   : > { %5435 = vmatpush.bf16.msrb.mxu2 %v7741_v39 }
 0x33d   : > { %5418 = vmatpush.bf16.msrb.mxu1 %v7731_v38  ;;  %5457 = vmatpush.bf16.msrb.mxu3 %v7746_v26 }
 0x33f   : > { %8533 = vrot.lane.b32.xlu1 %v10295_v34, %s8743_s21  ;;  %8538 = vrot.lane.b32.xlu2 %v10292_v17, %s8744_s22 }
 0x340   : > { %8543 = vrot.lane.b32.xlu0 %v10295_v34, %s8744_s22  ;;  %5436 = vmatpush.bf16.msrb.mxu2 %v7740_v40  ;;  %v7737_v40 = vld [vmem:[%s11334_s3 + $0x140] sm:$0xff] }
 0x341   : > { %v10515_v14 = vpop.permute.xlu2 %8373  ;;  %5419 = vmatpush.bf16.msrb.mxu1 %v7730_v55  ;;  %v8356_v55 = vunpack.i.h.bf16 %v10457_v13  ;;  %5458 = vmatpush.bf16.msrb.mxu3 %v7745_v31 }
 0x344   : > { %5437 = vmatpush.bf16.msrb.mxu2 %v7739_v33 }
 0x345   : > { %5420 = vmatpush.bf16.msrb.mxu1 %v7729_v41  ;;  %v8355_v41 = vunpack.i.l.bf16 %v10457_v13 }
 0x347   : > { %8548 = vrot.lane.b32.xlu1 %v10292_v17, %s8742_s19  ;;  %8553 = vrot.lane.b32.xlu2 %v10295_v34, %s8742_s19 }
 0x348   : > { %8563 = vrot.lane.b32.xlu0 %v10212_v52, %s8741_s17  ;;  %5438 = vmatpush.bf16.msrb.mxu2 %v7738_v46 }
 0x349   : > { %v8344_v60 = vpop.permute.xlu1 %8343  ;;  %v10543_v48 = vpop.permute.xlu2 %8378  ;;  %5489 = vmatpush.bf16.msra.mxu1 %v7768_v45  ;;  %v7759_v45 = vld [vmem:[%s11334_s3 + $0x1f0] sm:$0xff] }
 0x34a   : > { %v8346_v9 = vunpack.i.h.bf16 %v8344_v60  ;;  %v8345_v36 = vunpack.i.l.bf16 %v8344_v60  ;;  %v8339_v47 = vpop.permute.xlu0 %8338  ;;  %v3264_v60 = vsel %vm488_vm15, %v8355_v41, %v8356_v55 }
 0x34b   : > { %v8341_v44 = vunpack.i.h.bf16 %v8339_v47  ;;  %v8340_v30 = vunpack.i.l.bf16 %v8339_v47  ;;  %v7783_v47 = vld [vmem:[%s11334_s3 + $0x2b0] sm:$0xff] }
 0x34c   : > { %v3240_v11 = vsel %vm463_vm13, %v8345_v36, %v8346_v9  ;;  %5439 = vmatpush.bf16.msrb.mxu2 %v7737_v40  ;;  %v7765_v9 = vld [vmem:[%s11334_s3 + $0x220] sm:$0xff]  ;;  %v7775_v36 = vld [vmem:[%s11334_s3 + $0x270] sm:$0xff] }
 0x34d   : > { %v3681_v39 = vpack.c.bf16 %v3240_v11, %v3239_v54  ;;  %v3216_v4 = vsel %vm438_vm14, %v8340_v30, %v8341_v44  ;;  %5490 = vmatpush.bf16.msra.mxu1 %v7767_v6  ;;  %v8376_v44 = vunpack.i.h.bf16 %v10515_v14  ;;  %v8375_v30 = vunpack.i.l.bf16 %v10515_v14  ;;  %v7774_v14 = vld [vmem:[%s11334_s3 + $0x268] sm:$0xff] }
 0x34e   : > { %v3680_v38 = vpack.c.bf16 %v3216_v4, %v3215_v5  ;;  %v8366_v54 = vunpack.i.h.bf16 %v10492_v62  ;;  %v8365_v11 = vunpack.i.l.bf16 %v10492_v62  ;;  %v7758_v4 = vld [vmem:[%s11334_s3 + $0x1e8] sm:$0xff]  ;;  %v7764_v62 = vld [vmem:[%s11334_s3 + $0x218] sm:$0xff] }
 0x34f   : > { %8573 = vrot.lane.b32.xlu1 %v10295_v34, %s8741_s17  ;;  %8558 = vrot.lane.b32.xlu2 %v10215_v8, %s8741_s17  ;;  %v7760_v34 = vld [vmem:[%s11334_s3 + $0x1f8] sm:$0xff]  ;;  %v7782_v6 = vld [vmem:[%s11334_s3 + $0x2a8] sm:$0xff] }
 0x350   : > { %8568 = vrot.lane.b32.xlu0 %v10292_v17, %s8741_s17  ;;  %5364 = vmatmul.bf16.vlgmr.msra.gmra.mxu2 %v3680_v38  ;;  %v7766_v17 = vld [vmem:[%s11334_s3 + $0x228] sm:$0xff] }
 0x351   : > { %5383 = vmatmul.bf16.vlgmr.msra.gmra.mxu3 %v3681_v39  ;;  %v8349_v33 = vpop.permute.xlu1 %8348  ;;  %v10575_v3 = vpop.permute.xlu2 %8413  ;;  %5470 = vmatpush.bf16.msra.mxu0 %v7760_v34  ;;  %v3218_v34 = vsel %vm438_vm14, %v8375_v30, %v8376_v44  ;;  %v7756_v30 = vld [vmem:[%s11334_s3 + $0x1d8] sm:$0xff] }
 0x352   : > { %v8351_v2 = vunpack.i.h.bf16 %v8349_v33  ;;  %v8350_v22 = vunpack.i.l.bf16 %v8349_v33  ;;  %v10583_v13 = vpop.permute.xlu0 %8368  ;;  %5508 = vmatpush.bf16.msra.mxu2 %v7776_v29  ;;  %5527 = vmatpush.bf16.msra.mxu3 %v7784_v53  ;;  %v7757_v53 = vld [vmem:[%s11334_s3 + $0x1e0] sm:$0xff] }
 0x353   : > { %5491 = vmatpush.bf16.msra.mxu1 %v7766_v17 }
 0x354   : > { %v3263_v46 = vsel %vm488_vm15, %v8350_v22, %v8351_v2  ;;  %v3241_v2 = vsel %vm463_vm13, %v8365_v11, %v8366_v54  ;;  %v7762_v54 = vld [vmem:[%s11334_s3 + $0x208] sm:$0xff] }
 0x355   : > { %v3682_v26 = vpack.c.bf16 %v3264_v60, %v3263_v46  ;;  %5471 = vmatpush.bf16.msra.mxu0 %v7759_v45  ;;  %v7763_v60 = vld [vmem:[%s11334_s3 + $0x210] sm:$0xff]  ;;  %v7773_v46 = vld [vmem:[%s11334_s3 + $0x260] sm:$0xff]  ;;  %v8381_v45 = vunpack.i.h.bf16 %v10543_v48 }
 0x356   : > { %5509 = vmatpush.bf16.msra.mxu2 %v7775_v36  ;;  %5528 = vmatpush.bf16.msra.mxu3 %v7783_v47 }
 0x357   : > { %5402 = vmatmul.bf16.vlgmr.msrb.gmra.mxu0 %v3682_v26  ;;  %8578 = vrot.lane.b32.xlu1 %v10215_v8, %s8743_s21  ;;  %v7781_v26 = vld [vmem:[%s11334_s3 + $0x2a0] sm:$0xff] }
 0x358   : > { %8588 = vrot.lane.b32.xlu0 %v10215_v8, %s8742_s19  ;;  %8583 = vrot.lane.b32.xlu2 %v10212_v52, %s8743_s21 }
 0x359   : > { %v8359_v5 = vpop.permute.xlu1 %8358  ;;  %v10615_v39 = vpop.permute.xlu2 %8423  ;;  %5492 = vmatpush.bf16.msra.mxu1 %v7765_v9  ;;  %5472 = vmatpush.bf16.msra.mxu0 %v7758_v4  ;;  %v8380_v9 = vunpack.i.l.bf16 %v10543_v48  ;;  %v7772_v48 = vld [vmem:[%s11334_s3 + $0x258] sm:$0xff] }
 0x35a   : > { %v8361_v38 = vunpack.i.h.bf16 %v8359_v5  ;;  %v8360_v40 = vunpack.i.l.bf16 %v8359_v5  ;;  %v8384_v31 = vpop.permute.xlu0 %8383  ;;  %5510 = vmatpush.bf16.msra.mxu2 %v7774_v14  ;;  %5529 = vmatpush.bf16.msra.mxu3 %v7782_v6  ;;  %v7771_v6 = vld [vmem:[%s11334_s3 + $0x250] sm:$0xff] }
 0x35b   : > { %v8386_v55 = vunpack.i.h.bf16 %v8384_v31  ;;  %v8385_v41 = vunpack.i.l.bf16 %v8384_v31  ;;  %v3287_v4 = vsel %vm513_vm0, %v8380_v9, %v8381_v45  ;;  %v7755_v31 = vld [vmem:[%s11334_s3 + $0x1d0] sm:$0xff]  ;;  %v7778_v9 = vld [vmem:[%s11334_s3 + $0x288] sm:$0xff] }
 0x35c   : > { %v3217_v33 = vsel %vm438_vm14, %v8360_v40, %v8361_v38  ;;  %v7780_v38 = vld [vmem:[%s11334_s3 + $0x298] sm:$0xff] }
 0x35d   : > { %v3705_v29 = vpack.c.bf16 %v3218_v34, %v3217_v33  ;;  %v3242_v22 = vsel %vm463_vm13, %v8385_v41, %v8386_v55  ;;  %5493 = vmatpush.bf16.msra.mxu1 %v7764_v62  ;;  %5473 = vmatpush.bf16.msra.mxu0 %v7757_v53  ;;  %v7761_v62 = vld [vmem:[%s11334_s3 + $0x200] sm:$0xff]  ;;  %v7779_v33 = vld [vmem:[%s11334_s3 + $0x290] sm:$0xff] }
 0x35e   : > { %v3706_v17 = vpack.c.bf16 %v3242_v22, %v3241_v2  ;;  %5511 = vmatpush.bf16.msra.mxu2 %v7773_v46  ;;  %5530 = vmatpush.bf16.msra.mxu3 %v7781_v26  ;;  %v7754_v22 = vld [vmem:[%s11334_s3 + $0x1c8] sm:$0xff] }
 0x35f   : > { %8593 = vrot.lane.b32.xlu1 %v10212_v52, %s8742_s19 }
 0x360   : > { %8603 = vrot.lane.b32.xlu0 %v10298_v12, %s8741_s17  ;;  %8598 = vrot.lane.b32.xlu2 %v10301_v19, %s8741_s17 }
 0x361   : > { %5369 = vmatmul.bf16.gmra.mxu2 %v3705_v29  ;;  %5388 = vmatmul.bf16.gmra.mxu3 %v3706_v17  ;;  %v10653_v36 = vpop.permute.xlu1 %8393  ;;  %v10655_v47 = vpop.permute.xlu2 %8428 }
 0x362   : > { %v8389_v44 = vpop.permute.xlu0 %8388  ;;  %5494 = vmatpush.bf16.msra.mxu1 %v7763_v60  ;;  %5474 = vmatpush.bf16.msra.mxu0 %v7756_v30  ;;  %v7770_v60 = vld [vmem:[%s11334_s3 + $0x248] sm:$0xff]  ;;  %v7769_v30 = vld [vmem:[%s11334_s3 + $0x240] sm:$0xff] }
 0x363   : > { %v8391_v11 = vunpack.i.h.bf16 %v8389_v44  ;;  %v8390_v5 = vunpack.i.l.bf16 %v8389_v44  ;;  %5512 = vmatpush.bf16.msra.mxu2 %v7772_v48  ;;  %5531 = vmatpush.bf16.msra.mxu3 %v7780_v38  ;;  %v7753_v44 = vld [vmem:[%s11334_s3 + $0x1c0] sm:$0xff]  ;;  %v8425_v38 = vunpack.i.l.bf16 %v10615_v39 }
 0x365   : > { %v3288_v14 = vsel %vm513_vm0, %v8390_v5, %v8391_v11  ;;  %v8395_v11 = vunpack.i.l.bf16 %v10653_v36 }
 0x366   : > { %v3683_v40 = vpack.c.bf16 %v3288_v14, %v3287_v4  ;;  %5495 = vmatpush.bf16.msra.mxu1 %v7762_v54  ;;  %5475 = vmatpush.bf16.msra.mxu0 %v7755_v31  ;;  %v8396_v54 = vunpack.i.h.bf16 %v10653_v36  ;;  %v7792_v4 = vld [vmem:[%s11334_s3 + $0x2f8] sm:$0xff]  ;;  %v8426_v14 = vunpack.i.h.bf16 %v10615_v39  ;;  %v7791_v39 = vld [vmem:[%s11334_s3 + $0x2f0] sm:$0xff] }
 0x367   : > { %8608 = vrot.lane.b32.xlu1 %v10301_v19, %s8743_s21  ;;  %5513 = vmatpush.bf16.msra.mxu2 %v7771_v6  ;;  %v7808_v36 = vld [vmem:[%s11334_s3 + $0x378] sm:$0xff] }
 0x368   : > { %8623 = vrot.lane.b32.xlu0 %v10241_v58, %s8742_s19  ;;  %8613 = vrot.lane.b32.xlu2 %v10298_v12, %s8743_s21  ;;  %v3290_v31 = vsel %vm513_vm0, %v8425_v38, %v8426_v14  ;;  %v7814_v14 = vld [vmem:[%s11334_s3 + $0x3a8] sm:$0xff]  ;;  %v7789_v38 = vld [vmem:[%s11334_s3 + $0x2e0] sm:$0xff] }
 0x369   : > { %5421 = vmatmul.bf16.vlgmr.msrb.gmra.mxu1 %v3683_v40  ;;  %v8404_v55 = vpop.permute.xlu1 %8403  ;;  %v10686_v41 = vpop.permute.xlu2 %8433  ;;  %5532 = vmatpush.bf16.msra.mxu3 %v7779_v33  ;;  %v8371_v33 = vunpack.i.h.bf16 %v10583_v13 }
 0x36a   : > { %v8406_v34 = vunpack.i.h.bf16 %v8404_v55  ;;  %v8405_v29 = vunpack.i.l.bf16 %v8404_v55  ;;  %v8399_v2 = vpop.permute.xlu0 %8398  ;;  %5496 = vmatpush.bf16.msra.mxu1 %v7761_v62  ;;  %5476 = vmatpush.bf16.msra.mxu0 %v7754_v22  ;;  %v7807_v62 = vld [vmem:[%s11334_s3 + $0x370] sm:$0xff]  ;;  %v8430_v22 = vunpack.i.l.bf16 %v10655_v47 }
 0x36b   : > { %v8401_v17 = vunpack.i.h.bf16 %v8399_v2  ;;  %v8400_v53 = vunpack.i.l.bf16 %v8399_v2  ;;  %5514 = vmatpush.bf16.msra.mxu2 %v7770_v60  ;;  %v7815_v55 = vld [vmem:[%s11334_s3 + $0x3b0] sm:$0xff]  ;;  %v8431_v2 = vunpack.i.h.bf16 %v10655_v47 }
 0x36c   : > { %v3312_v46 = vsel %vm438_vm14, %v8405_v29, %v8406_v34  ;;  %v8370_v34 = vunpack.i.l.bf16 %v10583_v13  ;;  %v7800_v29 = vld [vmem:[%s11334_s3 + $0x338] sm:$0xff] }
 0x36d   : > { %v3311_v26 = vsel %vm438_vm14, %v8400_v53, %v8401_v17  ;;  %5533 = vmatpush.bf16.msra.mxu3 %v7778_v9  ;;  %v7799_v9 = vld [vmem:[%s11334_s3 + $0x330] sm:$0xff] }
 0x36e   : > { %v3685_v45 = vpack.c.bf16 %v3312_v46, %v3311_v26  ;;  %5477 = vmatpush.bf16.msra.mxu0 %v7753_v44  ;;  %5565 = vmatpush.bf16.msrb.mxu1 %v7800_v29  ;;  %v7806_v26 = vld [vmem:[%s11334_s3 + $0x368] sm:$0xff]  ;;  %v3265_v44 = vsel %vm488_vm15, %v8370_v34, %v8371_v33  ;;  %v7812_v29 = vld [vmem:[%s11334_s3 + $0x398] sm:$0xff] }
 0x36f   : > { %8633 = vrot.lane.b32.xlu1 %v10298_v12, %s8742_s19  ;;  %5515 = vmatpush.bf16.msra.mxu2 %v7769_v30 }
 0x370   : > { %8628 = vrot.lane.b32.xlu0 %v10301_v19, %s8742_s19  ;;  %8618 = vrot.lane.b32.xlu2 %v10247_v21, %s8742_s19 }
 0x371   : > { %5440 = vmatmul.bf16.vlgmr.msrb.gmra.mxu2 %v3684_v28  ;;  %5459 = vmatmul.bf16.vlgmr.msrb.gmra.mxu3 %v3685_v45  ;;  %v10719_v5 = vpop.permute.xlu1 %8408  ;;  %v10721_v48 = vpop.permute.xlu2 %8443  ;;  %v3289_v28 = vsel %vm513_vm0, %v8395_v11, %v8396_v54  ;;  %v3313_v11 = vsel %vm438_vm14, %v8430_v22, %v8431_v2  ;;  %v7787_v2 = vld [vmem:[%s11334_s3 + $0x2d0] sm:$0xff] }
 0x372   : > { %v10731_v40 = vpop.permute.xlu0 %8438  ;;  %5546 = vmatpush.bf16.msrb.mxu0 %v7792_v4  ;;  %5534 = vmatpush.bf16.msra.mxu3 %v7777_v7  ;;  %v3708_v6 = vpack.c.bf16 %v3290_v31, %v3289_v28  ;;  %v7805_v7 = vld [vmem:[%s11334_s3 + $0x360] sm:$0xff]  ;;  %v7798_v31 = vld [vmem:[%s11334_s3 + $0x328] sm:$0xff]  ;;  %v8411_v33 = vunpack.i.h.bf16 %v10719_v5  ;;  %v8410_v34 = vunpack.i.l.bf16 %v10719_v5  ;;  %v7803_v5 = vld [vmem:[%s11334_s3 + $0x350] sm:$0xff] }
 0x373   : > { %5584 = vmatpush.bf16.msrb.mxu2 %v7808_v36  ;;  %5566 = vmatpush.bf16.msrb.mxu1 %v7799_v9  ;;  %v8440_v28 = vunpack.i.l.bf16 %v10731_v40  ;;  %v8446_v9 = vunpack.i.h.bf16 %v10721_v48 }
 0x376   : > { %5603 = vmatpush.bf16.msrb.mxu3 %v7816_v10  ;;  %5547 = vmatpush.bf16.msrb.mxu0 %v7791_v39  ;;  %v8441_v10 = vunpack.i.h.bf16 %v10731_v40  ;;  %v8436_v40 = vunpack.i.h.bf16 %v10686_v41 }
 0x377   : > { %8638 = vrot.lane.b32.xlu1 %v10247_v21, %s8741_s17  ;;  %5585 = vmatpush.bf16.msrb.mxu2 %v7807_v62  ;;  %v8435_v62 = vunpack.i.l.bf16 %v10686_v41 }
 0x378   : > { %8648 = vrot.lane.b32.xlu0 %v10215_v8, %s8744_s22  ;;  %8643 = vrot.lane.b32.xlu2 %v10241_v58, %s8741_s17  ;;  %v7790_v8 = vld [vmem:[%s11334_s3 + $0x2e8] sm:$0xff] }
 0x379   : > { %5426 = vmatmul.bf16.gmra.mxu1 %v3708_v6  ;;  %v8419_v17 = vpop.permute.xlu1 %8418  ;;  %v10763_v53 = vpop.permute.xlu2 %8463  ;;  %v3359_v41 = vsel %vm488_vm15, %v8435_v62, %v8436_v40  ;;  %v7795_v62 = vld [vmem:[%s11334_s3 + $0x310] sm:$0xff] }
 0x37a   : > { %v8421_v13 = vunpack.i.h.bf16 %v8419_v17  ;;  %v8420_v60 = vunpack.i.l.bf16 %v8419_v17  ;;  %v8449_v46 = vpop.permute.xlu0 %8448  ;;  %5604 = vmatpush.bf16.msrb.mxu3 %v7815_v55  ;;  %5548 = vmatpush.bf16.msrb.mxu0 %v7790_v8  ;;  %v3360_v55 = vsel %vm488_vm15, %v8440_v28, %v8441_v10  ;;  %v7797_v17 = vld [vmem:[%s11334_s3 + $0x320] sm:$0xff]  ;;  %v8416_v8 = vunpack.i.h.bf16 %v10575_v3 }
 0x37b   : > { %v8451_v45 = vunpack.i.h.bf16 %v8449_v46  ;;  %v8450_v47 = vunpack.i.l.bf16 %v8449_v46  ;;  %5586 = vmatpush.bf16.msrb.mxu2 %v7806_v26  ;;  %5567 = vmatpush.bf16.msrb.mxu1 %v7798_v31  ;;  %v3687_v22 = vpack.c.bf16 %v3360_v55, %v3359_v41  ;;  %v7785_v10 = vld [vmem:[%s11334_s3 + $0x2c0] sm:$0xff]  ;;  %v7824_v31 = vld [vmem:[%s11334_s3 + $0x3f8] sm:$0xff]  ;;  %v7794_v41 = vld [vmem:[%s11334_s3 + $0x308] sm:$0xff] }
 0x37c   : > { %v3266_v30 = vsel %vm488_vm15, %v8420_v60, %v8421_v13  ;;  %v8415_v13 = vunpack.i.l.bf16 %v10575_v3 }
 0x37d   : > { %v3707_v54 = vpack.c.bf16 %v3266_v30, %v3265_v44  ;;  %v3314_v4 = vsel %vm438_vm14, %v8450_v47, %v8451_v45  ;;  %v3335_v47 = vsel %vm463_vm13, %v8410_v34, %v8411_v33  ;;  %v8445_v44 = vunpack.i.l.bf16 %v10721_v48  ;;  %v7786_v30 = vld [vmem:[%s11334_s3 + $0x2c8] sm:$0xff]  ;;  %v7823_v33 = vld [vmem:[%s11334_s3 + $0x3f0] sm:$0xff] }
 0x37e   : > { %v3710_v36 = vpack.c.bf16 %v3314_v4, %v3313_v11  ;;  %5605 = vmatpush.bf16.msrb.mxu3 %v7814_v14  ;;  %5549 = vmatpush.bf16.msrb.mxu0 %v7789_v38  ;;  %v7802_v14 = vld [vmem:[%s11334_s3 + $0x348] sm:$0xff] }
 0x37f   : > { %8653 = vrot.lane.b32.xlu1 %v10212_v52, %s8744_s22  ;;  %5407 = vmatmul.bf16.gmra.mxu0 %v3707_v54  ;;  %v3336_v54 = vsel %vm463_vm13, %v8415_v13, %v8416_v8  ;;  %v3383_v48 = vsel %vm513_vm0, %v8445_v44, %v8446_v9  ;;  %v7822_v13 = vld [vmem:[%s11334_s3 + $0x3e8] sm:$0xff] }
 0x380   : > { %8663 = vrot.lane.b32.xlu0 %v10322_v0, %s8742_s19  ;;  %8658 = vrot.lane.b32.xlu2 %v10325_v51, %s8742_s19  ;;  %v3686_v4 = vpack.c.bf16 %v3336_v54, %v3335_v47  ;;  %v7838_v54 = vld [vmem:[%s11334_s3 + $0x468] sm:$0xff] }
 0x381   : > { %5445 = vmatmul.bf16.gmra.mxu2 %v3709_v18  ;;  %5464 = vmatmul.bf16.gmra.mxu3 %v3710_v36  ;;  %v10798_v52 = vpop.permute.xlu1 %8458  ;;  %v10800_v39 = vpop.permute.xlu2 %8498  ;;  %v7804_v18 = vld [vmem:[%s11334_s3 + $0x358] sm:$0xff] }
 0x382   : > { %v8454_v6 = vpop.permute.xlu0 %8453  ;;  %5587 = vmatpush.bf16.msrb.mxu2 %v7805_v7  ;;  %5606 = vmatpush.bf16.msrb.mxu3 %v7813_v42  ;;  %v7796_v36 = vld [vmem:[%s11334_s3 + $0x318] sm:$0xff]  ;;  %v7810_v7 = vld [vmem:[%s11334_s3 + $0x388] sm:$0xff]  ;;  %v8501_v34 = vunpack.i.h.bf16 %v10800_v39 }
 0x383   : > { %5550 = vmatpush.bf16.msrb.mxu0 %v7788_v23  ;;  %v8456_v60 = vunpack.i.h.bf16 %v8454_v6  ;;  %v8455_v46 = vunpack.i.l.bf16 %v8454_v6  ;;  %5568 = vmatpush.bf16.msrb.mxu1 %v7797_v17  ;;  %v7801_v6 = vld [vmem:[%s11334_s3 + $0x340] sm:$0xff]  ;;  %v7847_v17 = vld [vmem:[%s11334_s3 + $0x4b0] sm:$0xff] }
 0x385   : > { %v3384_v11 = vsel %vm513_vm0, %v8455_v46, %v8456_v60 }
 0x386   : > { %5588 = vmatpush.bf16.msrb.mxu2 %v7804_v18  ;;  %5607 = vmatpush.bf16.msrb.mxu3 %v7812_v29  ;;  %v3688_v38 = vpack.c.bf16 %v3384_v11, %v3383_v48  ;;  %v8500_v29 = vunpack.i.l.bf16 %v10800_v39  ;;  %v7793_v39 = vld [vmem:[%s11334_s3 + $0x300] sm:$0xff]  ;;  %v7846_v11 = vld [vmem:[%s11334_s3 + $0x4a8] sm:$0xff] }
 0x387   : > { %8668 = vrot.lane.b32.xlu1 %v10325_v51, %s8741_s17  ;;  %5551 = vmatpush.bf16.msrb.mxu0 %v7787_v2 }
 0x388   : > { %8678 = vrot.lane.b32.xlu0 %v10301_v19, %s8744_s22  ;;  %8673 = vrot.lane.b32.xlu2 %v10322_v0, %s8741_s17  ;;  %v7811_v19 = vld [vmem:[%s11334_s3 + $0x390] sm:$0xff]  ;;  %v3385_v9 = vsel %vm513_vm0, %v8500_v29, %v8501_v34 }
 0x389   : > { %5497 = vmatmul.bf16.vlgmr.msra.gmra.mxu1 %v3687_v22  ;;  %v10840_v26 = vpop.permute.xlu1 %8473  ;;  %v10842_v45 = vpop.permute.xlu2 %8503 }
 0x38a   : > { %v10847_v3 = vpop.permute.xlu0 %8468  ;;  %5589 = vmatpush.bf16.msrb.mxu2 %v7803_v5  ;;  %5608 = vmatpush.bf16.msrb.mxu3 %v7811_v19 }
 0x38b   : > { %5552 = vmatpush.bf16.msrb.mxu0 %v7786_v30  ;;  %5569 = vmatpush.bf16.msrb.mxu1 %v7796_v36  ;;  %v7832_v30 = vld [vmem:[%s11334_s3 + $0x438] sm:$0xff]  ;;  %v8471_v34 = vunpack.i.h.bf16 %v10847_v3  ;;  %v8470_v29 = vunpack.i.l.bf16 %v10847_v3  ;;  %v7835_v3 = vld [vmem:[%s11334_s3 + $0x450] sm:$0xff] }
 0x38e   : > { %5590 = vmatpush.bf16.msrb.mxu2 %v7802_v14  ;;  %5609 = vmatpush.bf16.msrb.mxu3 %v7810_v7 }
 0x38f   : > { %8688 = vrot.lane.b32.xlu1 %v10298_v12, %s8744_s22  ;;  %5478 = vmatmul.bf16.vlgmr.msra.gmra.mxu0 %v3686_v4  ;;  %v7821_v4 = vld [vmem:[%s11334_s3 + $0x3e0] sm:$0xff] }
 0x390   : > { %8683 = vrot.lane.b32.xlu0 %v10247_v21, %s8743_s21  ;;  %8693 = vrot.lane.b32.xlu2 %v10325_v51, %s8743_s21 }
 0x391   : > { %5516 = vmatmul.bf16.vlgmr.msra.gmra.mxu2 %v3688_v38  ;;  %5535 = vmatmul.bf16.vlgmr.msra.gmra.mxu3 %v3689_v59  ;;  %v8484_v12 = vpop.permute.xlu1 %8483  ;;  %v10879_v28 = vpop.permute.xlu2 %8523  ;;  %v7848_v59 = vld [vmem:[%s11334_s3 + $0x4b8] sm:$0xff] }
 0x392   : > { %v8479_v40 = vpop.permute.xlu0 %8478  ;;  %5553 = vmatpush.bf16.msrb.mxu0 %v7785_v10  ;;  %v8486_v42 = vunpack.i.h.bf16 %v8484_v12  ;;  %v8485_v23 = vunpack.i.l.bf16 %v8484_v12  ;;  %5570 = vmatpush.bf16.msrb.mxu1 %v7795_v62 }
 0x393   : > { %v8481_v18 = vunpack.i.h.bf16 %v8479_v40  ;;  %v8480_v55 = vunpack.i.l.bf16 %v8479_v40  ;;  %5591 = vmatpush.bf16.msrb.mxu2 %v7801_v6  ;;  %5610 = vmatpush.bf16.msrb.mxu3 %v7809_v43  ;;  %v7830_v43 = vld [vmem:[%s11334_s3 + $0x428] sm:$0xff] }
 0x394   : > { %v3338_v8 = vsel %vm463_vm13, %v8485_v23, %v8486_v42  ;;  %v8460_v42 = vunpack.i.l.bf16 %v10798_v52  ;;  %v8476_v23 = vunpack.i.h.bf16 %v10840_v26 }
 0x396   : > { %5622 = vmatpush.bf16.msra.mxu0 %v7824_v31  ;;  %5571 = vmatpush.bf16.msrb.mxu1 %v7794_v41  ;;  %v7820_v31 = vld [vmem:[%s11334_s3 + $0x3d8] sm:$0xff]  ;;  %v8506_v41 = vunpack.i.h.bf16 %v10842_v45 }
 0x397   : > { %8703 = vrot.lane.b32.xlu1 %v10325_v51, %s8744_s22  ;;  %5660 = vmatpush.bf16.msra.mxu2 %v7840_v63  ;;  %v7839_v51 = vld [vmem:[%s11334_s3 + $0x470] sm:$0xff]  ;;  %v7836_v63 = vld [vmem:[%s11334_s3 + $0x458] sm:$0xff] }
 0x398   : > { %8698 = vrot.lane.b32.xlu0 %v10322_v0, %s8743_s21  ;;  %8708 = vrot.lane.b32.xlu2 %v10322_v0, %s8744_s22  ;;  %v3337_v0 = vsel %vm463_vm13, %v8480_v55, %v8481_v18  ;;  %v8475_v18 = vunpack.i.l.bf16 %v10840_v26  ;;  %v7844_v55 = vld [vmem:[%s11334_s3 + $0x498] sm:$0xff] }
 0x399   : > { %v8489_v2 = vpop.permute.xlu1 %8488  ;;  %v10913_v22 = vpop.permute.xlu2 %8538  ;;  %5679 = vmatpush.bf16.msra.mxu3 %v7848_v59  ;;  %v3711_v47 = vpack.c.bf16 %v3338_v8, %v3337_v0  ;;  %v8461_v59 = vunpack.i.h.bf16 %v10798_v52  ;;  %v7819_v52 = vld [vmem:[%s11334_s3 + $0x3d0] sm:$0xff] }
 0x39a   : > { %v8509_v5 = vpop.permute.xlu0 %8508  ;;  %5623 = vmatpush.bf16.msra.mxu0 %v7823_v33  ;;  %5572 = vmatpush.bf16.msrb.mxu1 %v7793_v39  ;;  %v8491_v48 = vunpack.i.h.bf16 %v8489_v2  ;;  %v8490_v36 = vunpack.i.l.bf16 %v8489_v2  ;;  %v8505_v33 = vunpack.i.l.bf16 %v10842_v45  ;;  %v7829_v45 = vld [vmem:[%s11334_s3 + $0x420] sm:$0xff]  ;;  %v7843_v8 = vld [vmem:[%s11334_s3 + $0x490] sm:$0xff]  ;;  %v3479_v39 = vsel %vm513_vm0, %v8475_v18, %v8476_v23 }
 0x39b   : > { %v8511_v60 = vunpack.i.h.bf16 %v8509_v5  ;;  %v8510_v46 = vunpack.i.l.bf16 %v8509_v5  ;;  %5661 = vmatpush.bf16.msra.mxu2 %v7839_v51  ;;  %v8466_v51 = vunpack.i.h.bf16 %v10763_v53 }
 0x39c   : > { %v3361_v37 = vsel %vm488_vm15, %v8490_v36, %v8491_v48  ;;  %v7842_v48 = vld [vmem:[%s11334_s3 + $0x488] sm:$0xff]  ;;  %v8526_v36 = vunpack.i.h.bf16 %v10879_v28 }
 0x39d   : > { %v3386_v44 = vsel %vm513_vm0, %v8510_v46, %v8511_v60  ;;  %5680 = vmatpush.bf16.msra.mxu3 %v7847_v17  ;;  %v8465_v17 = vunpack.i.l.bf16 %v10763_v53  ;;  %v3407_v53 = vsel %vm438_vm14, %v8460_v42, %v8461_v59  ;;  %v3456_v60 = vsel %vm488_vm15, %v8470_v29, %v8471_v34  ;;  %v7818_v46 = vld [vmem:[%s11334_s3 + $0x3c8] sm:$0xff]  ;;  %v7856_v29 = vld [vmem:[%s11334_s3 + $0x4f8] sm:$0xff] }
 0x39e   : > { %v3713_v19 = vpack.c.bf16 %v3386_v44, %v3385_v9  ;;  %5624 = vmatpush.bf16.msra.mxu0 %v7822_v13  ;;  %5641 = vmatpush.bf16.msra.mxu1 %v7832_v30  ;;  %v3480_v13 = vsel %vm513_vm0, %v8505_v33, %v8506_v41  ;;  %v7828_v30 = vld [vmem:[%s11334_s3 + $0x418] sm:$0xff]  ;;  %v7879_v41 = vld [vmem:[%s11334_s3 + $0x5b0] sm:$0xff]  ;;  %v8541_v33 = vunpack.i.h.bf16 %v10913_v22 }
 0x39f   : > { %8713 = vrot.lane.b32.xlu1 %v10241_v58, %s8743_s21  ;;  %5483 = vmatmul.bf16.gmra.mxu0 %v3711_v47  ;;  %v3455_v9 = vsel %vm488_vm15, %v8465_v17, %v8466_v51 }
 0x3a0   : > { %8723 = vrot.lane.b32.xlu0 %v10241_v58, %s8744_s22  ;;  %8718 = vrot.lane.b32.xlu2 %v10247_v21, %s8744_s22  ;;  %v7831_v58 = vld [vmem:[%s11334_s3 + $0x430] sm:$0xff]  ;;  %v7837_v21 = vld [vmem:[%s11334_s3 + $0x460] sm:$0xff] }
 0x3a1   : > { %5521 = vmatmul.bf16.gmra.mxu2 %v3713_v19  ;;  %5540 = vmatmul.bf16.gmra.mxu3 %v3714_v16  ;;  %v8494_v14 = vpop.permute.xlu1 %8493  ;;  %v10952_v38 = vpop.permute.xlu2 %8553 }
 0x3a2   : > { %v8496_v7 = vunpack.i.h.bf16 %v8494_v14  ;;  %v8495_v10 = vunpack.i.l.bf16 %v8494_v14  ;;  %v8514_v12 = vpop.permute.xlu0 %8513  ;;  %5662 = vmatpush.bf16.msra.mxu2 %v7838_v54  ;;  %5681 = vmatpush.bf16.msra.mxu3 %v7846_v11  ;;  %v7834_v54 = vld [vmem:[%s11334_s3 + $0x448] sm:$0xff]  ;;  %v3693_v11 = vpack.c.bf16 %v3480_v13, %v3479_v39  ;;  %v8525_v14 = vunpack.i.l.bf16 %v10879_v28  ;;  %v7833_v28 = vld [vmem:[%s11334_s3 + $0x440] sm:$0xff] }
 0x3a3   : > { %5625 = vmatpush.bf16.msra.mxu0 %v7821_v4  ;;  %v8516_v62 = vunpack.i.h.bf16 %v8514_v12  ;;  %v8515_v6 = vunpack.i.l.bf16 %v8514_v12  ;;  %5642 = vmatpush.bf16.msra.mxu1 %v7831_v58  ;;  %v3692_v4 = vpack.c.bf16 %v3456_v60, %v3455_v9  ;;  %v7870_v13 = vld [vmem:[%s11334_s3 + $0x568] sm:$0xff] }
 0x3a4   : > { %v3362_v16 = vsel %vm488_vm15, %v8495_v10, %v8496_v7  ;;  %v7817_v7 = vld [vmem:[%s11334_s3 + $0x3c0] sm:$0xff]  ;;  %v7878_v60 = vld [vmem:[%s11334_s3 + $0x5a8] sm:$0xff] }
 0x3a5   : > { %v3712_v40 = vpack.c.bf16 %v3362_v16, %v3361_v37  ;;  %v3408_v5 = vsel %vm438_vm14, %v8515_v6, %v8516_v62  ;;  %v7841_v37 = vld [vmem:[%s11334_s3 + $0x480] sm:$0xff]  ;;  %v3432_v16 = vsel %vm463_vm13, %v8525_v14, %v8526_v36  ;;  %v7826_v6 = vld [vmem:[%s11334_s3 + $0x408] sm:$0xff] }
 0x3a6   : > { %5663 = vmatpush.bf16.msra.mxu2 %v7837_v21  ;;  %5682 = vmatpush.bf16.msra.mxu3 %v7845_v50  ;;  %v3690_v47 = vpack.c.bf16 %v3408_v5, %v3407_v53  ;;  %v7827_v50 = vld [vmem:[%s11334_s3 + $0x410] sm:$0xff] }
 0x3a7   : > { %5502 = vmatmul.bf16.gmra.mxu1 %v3712_v40  ;;  %5626 = vmatpush.bf16.msra.mxu0 %v7820_v31  ;;  %v7872_v31 = vld [vmem:[%s11334_s3 + $0x578] sm:$0xff] }
 0x3a8   : > { %5643 = vmatpush.bf16.msra.mxu1 %v7830_v43  ;;  %v7880_v40 = vld [vmem:[%s11334_s3 + $0x5b8] sm:$0xff]  ;;  %v8556_v43 = vunpack.i.h.bf16 %v10952_v38 }
 0x3a9   : > { %v8519_v26 = vpop.permute.xlu1 %8518  ;;  %v10988_v2 = vpop.permute.xlu2 %8558 }
 0x3aa   : > { %v10993_v0 = vpop.permute.xlu0 %8528  ;;  %5664 = vmatpush.bf16.msra.mxu2 %v7836_v63  ;;  %5683 = vmatpush.bf16.msra.mxu3 %v7844_v55  ;;  %v8521_v44 = vunpack.i.h.bf16 %v8519_v26  ;;  %v8520_v19 = vunpack.i.l.bf16 %v8519_v26  ;;  %v8555_v63 = vunpack.i.l.bf16 %v10952_v38  ;;  %v7871_v55 = vld [vmem:[%s11334_s3 + $0x570] sm:$0xff]  ;;  %v8540_v38 = vunpack.i.l.bf16 %v10913_v22 }
 0x3ab   : > { %5627 = vmatpush.bf16.msra.mxu0 %v7819_v52  ;;  %v8531_v52 = vunpack.i.h.bf16 %v10993_v0  ;;  %v8530_v26 = vunpack.i.l.bf16 %v10993_v0 }
 0x3ac   : > { %5644 = vmatpush.bf16.msra.mxu1 %v7829_v45  ;;  %v3431_v12 = vsel %vm463_vm13, %v8520_v19, %v8521_v44  ;;  %v7825_v45 = vld [vmem:[%s11334_s3 + $0x400] sm:$0xff]  ;;  %v3410_v22 = vsel %vm438_vm14, %v8555_v63, %v8556_v43  ;;  %v3481_v9 = vsel %vm513_vm0, %v8540_v38, %v8541_v33  ;;  %v7855_v44 = vld [vmem:[%s11334_s3 + $0x4f0] sm:$0xff] }
 0x3ad   : > { %v3691_v62 = vpack.c.bf16 %v3432_v16, %v3431_v12  ;;  %v7854_v12 = vld [vmem:[%s11334_s3 + $0x4e8] sm:$0xff]  ;;  %v7868_v16 = vld [vmem:[%s11334_s3 + $0x558] sm:$0xff]  ;;  %v7853_v43 = vld [vmem:[%s11334_s3 + $0x4e0] sm:$0xff] }
 0x3ae   : > { %5665 = vmatpush.bf16.msra.mxu2 %v7835_v3  ;;  %5684 = vmatpush.bf16.msra.mxu3 %v7843_v8  ;;  %v7864_v8 = vld [vmem:[%s11334_s3 + $0x538] sm:$0xff]  ;;  %v7861_v63 = vld [vmem:[%s11334_s3 + $0x520] sm:$0xff]  ;;  %v7875_v33 = vld [vmem:[%s11334_s3 + $0x590] sm:$0xff] }
 0x3af   : > { %5554 = vmatmul.bf16.vlgmr.msrb.gmra.mxu0 %v3690_v47  ;;  %v3457_v47 = vsel %vm488_vm15, %v8530_v26, %v8531_v52 }
 0x3b0   : > { %5628 = vmatpush.bf16.msra.mxu0 %v7818_v46  ;;  %5645 = vmatpush.bf16.msra.mxu1 %v7828_v30 }
 0x3b1   : > { %5592 = vmatmul.bf16.vlgmr.msrb.gmra.mxu2 %v3692_v4  ;;  %5611 = vmatmul.bf16.vlgmr.msrb.gmra.mxu3 %v3693_v11  ;;  %v8534_v10 = vpop.permute.xlu1 %8533  ;;  %v7863_v11 = vld [vmem:[%s11334_s3 + $0x530] sm:$0xff]  ;;  %v7869_v4 = vld [vmem:[%s11334_s3 + $0x560] sm:$0xff] }
 0x3b2   : > { %v11027_v58 = vpop.permute.xlu2 %8583  ;;  %v8544_v21 = vpop.permute.xlu0 %8543  ;;  %5666 = vmatpush.bf16.msra.mxu2 %v7834_v54  ;;  %5685 = vmatpush.bf16.msra.mxu3 %v7842_v48  ;;  %v8536_v59 = vunpack.i.h.bf16 %v8534_v10  ;;  %v8535_v42 = vunpack.i.l.bf16 %v8534_v10  ;;  %v7877_v48 = vld [vmem:[%s11334_s3 + $0x5a0] sm:$0xff] }
 0x3b3   : > { %v8546_v23 = vunpack.i.h.bf16 %v8544_v21  ;;  %v8545_v18 = vunpack.i.l.bf16 %v8544_v21  ;;  %v11088_v54 = vpop.f32.mrf.mxu1 }
 0x3b4   : > { %5629 = vmatpush.bf16.msra.mxu0 %v7817_v7  ;;  %5646 = vmatpush.bf16.msra.mxu1 %v7827_v50  ;;  %v3458_v53 = vsel %vm488_vm15, %v8535_v42, %v8536_v59  ;;  %v8586_v59 = vunpack.i.h.bf16 %v11027_v58  ;;  %v8585_v42 = vunpack.i.l.bf16 %v11027_v58  ;;  %v8561_v58 = vunpack.i.h.bf16 %v10988_v2 }
 0x3b5   : > { %v3482_v39 = vsel %vm513_vm0, %v8545_v18, %v8546_v23  ;;  %v3717_v19 = vpack.c.bf16 %v3458_v53, %v3457_v47  ;;  %v7859_v47 = vld [vmem:[%s11334_s3 + $0x510] sm:$0xff] }
 0x3b6   : > { %5667 = vmatpush.bf16.msra.mxu2 %v7833_v28  ;;  %5686 = vmatpush.bf16.msra.mxu3 %v7841_v37  ;;  %v3718_v30 = vpack.c.bf16 %v3482_v39, %v3481_v9  ;;  %v7862_v28 = vld [vmem:[%s11334_s3 + $0x528] sm:$0xff] }
 0x3b7   : > { %5573 = vmatmul.bf16.vlgmr.msrb.gmra.mxu1 %v3691_v62  ;;  %v7876_v62 = vld [vmem:[%s11334_s3 + $0x598] sm:$0xff]  ;;  %v7874_v39 = vld [vmem:[%s11334_s3 + $0x588] sm:$0xff] }
 0x3b8   : > { %5647 = vmatpush.bf16.msra.mxu1 %v7826_v6  ;;  %5698 = vmatpush.bf16.msrb.mxu0 %v7856_v29 }
 0x3b9   : > { %v8549_v34 = vpop.permute.xlu1 %8548 }
 0x3ba   : > { %5736 = vmatpush.bf16.msrb.mxu2 %v7872_v31  ;;  %5755 = vmatpush.bf16.msrb.mxu3 %v7880_v40  ;;  %v8551_v51 = vunpack.i.h.bf16 %v8549_v34  ;;  %v8550_v17 = vunpack.i.l.bf16 %v8549_v34  ;;  %v11063_v5 = vpop.permute.xlu0 %8563  ;;  %v11068_v3 = vpop.permute.xlu2 %8598  ;;  %v8560_v34 = vunpack.i.l.bf16 %v10988_v2  ;;  %v7866_v2 = vld [vmem:[%s11334_s3 + $0x548] sm:$0xff] }
 0x3bb   : > { %v8566_v23 = vunpack.i.h.bf16 %v11063_v5  ;;  %v8565_v18 = vunpack.i.l.bf16 %v11063_v5  ;;  %v11131_v38 = vpop.f32.mrf.mxu1  ;;  %v3552_v5 = vsel %vm488_vm15, %v8585_v42, %v8586_v59  ;;  %v7887_v59 = vld [vmem:[%s11334_s3 + $0x5f0] sm:$0xff] }
 0x3bc   : > { %v3409_v0 = vsel %vm438_vm14, %v8550_v17, %v8551_v51  ;;  %5648 = vmatpush.bf16.msra.mxu1 %v7825_v45  ;;  %5699 = vmatpush.bf16.msrb.mxu0 %v7855_v44  ;;  %v7852_v51 = vld [vmem:[%s11334_s3 + $0x4d8] sm:$0xff]  ;;  %v3527_v53 = vsel %vm463_vm13, %v8560_v34, %v8561_v58  ;;  %v7886_v58 = vld [vmem:[%s11334_s3 + $0x5e8] sm:$0xff]  ;;  %v8601_v34 = vunpack.i.h.bf16 %v11068_v3 }
 0x3bd   : > { %v3715_v46 = vpack.c.bf16 %v3410_v22, %v3409_v0  ;;  %v7860_v17 = vld [vmem:[%s11334_s3 + $0x518] sm:$0xff]  ;;  %v3528_v45 = vsel %vm463_vm13, %v8565_v18, %v8566_v23  ;;  %v11150_v0 = vld [vmem:[%s11335_s4] ss:$0 sm:$0xff] }
 0x3be   : > { %5737 = vmatpush.bf16.msrb.mxu2 %v7871_v55  ;;  %5756 = vmatpush.bf16.msrb.mxu3 %v7879_v41  ;;  %v7867_v55 = vld [vmem:[%s11334_s3 + $0x550] sm:$0xff] }
 0x3bf   : > { %5559 = vmatmul.bf16.gmra.mxu0 %v3715_v46  ;;  %v7851_v46 = vld [vmem:[%s11334_s3 + $0x4d0] sm:$0xff] }
 0x3c0   : > { %5717 = vmatpush.bf16.msrb.mxu1 %v7864_v8  ;;  %5700 = vmatpush.bf16.msrb.mxu0 %v7854_v12 }
 0x3c1   : > { %5597 = vmatmul.bf16.gmra.mxu2 %v3717_v19  ;;  %5616 = vmatmul.bf16.gmra.mxu3 %v3718_v30  ;;  %v8574_v36 = vpop.permute.xlu1 %8573  ;;  %v7865_v19 = vld [vmem:[%s11334_s3 + $0x540] sm:$0xff] }
 0x3c2   : > { %5738 = vmatpush.bf16.msrb.mxu2 %v7870_v13  ;;  %5757 = vmatpush.bf16.msrb.mxu3 %v7878_v60  ;;  %v8576_v14 = vunpack.i.h.bf16 %v8574_v36  ;;  %v8575_v7 = vunpack.i.l.bf16 %v8574_v36  ;;  %v8569_v10 = vpop.permute.xlu0 %8568  ;;  %v11109_v31 = vpop.permute.xlu2 %8613  ;;  %v3696_v13 = vpack.c.bf16 %v3528_v45, %v3527_v53  ;;  %v7850_v36 = vld [vmem:[%s11334_s3 + $0x4c8] sm:$0xff] }
 0x3c3   : > { %v8571_v21 = vunpack.i.h.bf16 %v8569_v10  ;;  %v8570_v50 = vunpack.i.l.bf16 %v8569_v10  ;;  %v11187_v10 = vpop.f32.mrf.mxu1 }
 0x3c4   : > { %5718 = vmatpush.bf16.msrb.mxu1 %v7863_v11  ;;  %v3434_v37 = vsel %vm463_vm13, %v8575_v7, %v8576_v14  ;;  %5701 = vmatpush.bf16.msrb.mxu0 %v7853_v43  ;;  %v7858_v7 = vld [vmem:[%s11334_s3 + $0x508] sm:$0xff]  ;;  %v7849_v43 = vld [vmem:[%s11334_s3 + $0x4c0] sm:$0xff] }
 0x3c5   : > { %v3433_v40 = vsel %vm463_vm13, %v8570_v50, %v8571_v21 }
 0x3c6   : > { %5739 = vmatpush.bf16.msrb.mxu2 %v7869_v4  ;;  %5758 = vmatpush.bf16.msrb.mxu3 %v7877_v48  ;;  %v3716_v6 = vpack.c.bf16 %v3434_v37, %v3433_v40  ;;  %v7873_v48 = vld [vmem:[%s11334_s3 + $0x580] sm:$0xff] }
 0x3c8   : > { %5719 = vmatpush.bf16.msrb.mxu1 %v7862_v28  ;;  %5702 = vmatpush.bf16.msrb.mxu0 %v7852_v51 }
 0x3c9   : > { %5578 = vmatmul.bf16.gmra.mxu1 %v3716_v6  ;;  %v8579_v41 = vpop.permute.xlu1 %8578  ;;  %v8615_v6 = vunpack.i.l.bf16 %v11109_v31 }
 0x3ca   : > { %5740 = vmatpush.bf16.msrb.mxu2 %v7868_v16  ;;  %5759 = vmatpush.bf16.msrb.mxu3 %v7876_v62  ;;  %v8581_v29 = vunpack.i.h.bf16 %v8579_v41  ;;  %v8580_v52 = vunpack.i.l.bf16 %v8579_v41  ;;  %v8589_v26 = vpop.permute.xlu0 %8588  ;;  %v11156_v60 = vpop.permute.xlu2 %8618  ;;  %v8616_v62 = vunpack.i.h.bf16 %v11109_v31  ;;  %v7895_v31 = vld [vmem:[%s11334_s3 + $0x630] sm:$0xff] }
 0x3cb   : > { %v8591_v9 = vunpack.i.h.bf16 %v8589_v26  ;;  %v8590_v44 = vunpack.i.l.bf16 %v8589_v26  ;;  %v5353_v53 = vpop.f32.mrf.mxu1 }
 0x3cc   : > { %5720 = vmatpush.bf16.msrb.mxu1 %v7861_v63  ;;  %v3551_v22 = vsel %vm488_vm15, %v8580_v52, %v8581_v29  ;;  %5703 = vmatpush.bf16.msrb.mxu0 %v7851_v46  ;;  %v7857_v63 = vld [vmem:[%s11334_s3 + $0x500] sm:$0xff]  ;;  %v8600_v29 = vunpack.i.l.bf16 %v11068_v3 }
 0x3cd   : > { %v3697_v8 = vpack.c.bf16 %v3552_v5, %v3551_v22  ;;  %v3503_v12 = vsel %vm438_vm14, %v8590_v44, %v8591_v9  ;;  %v7894_v5 = vld [vmem:[%s11334_s3 + $0x628] sm:$0xff]  ;;  %v7885_v9 = vld [vmem:[%s11334_s3 + $0x5e0] sm:$0xff] }
 0x3ce   : > { %5741 = vmatpush.bf16.msrb.mxu2 %v7867_v55  ;;  %5760 = vmatpush.bf16.msrb.mxu3 %v7875_v33  ;;  %v5349_v55 = vadd.f32 %v11150_v0, %v11131_v38  ;;  %v3554_v38 = vsel %vm488_vm15, %v8615_v6, %v8616_v62  ;;  %v7893_v44 = vld [vmem:[%s11334_s3 + $0x620] sm:$0xff] }
 0x3cf   : > { %5630 = vmatmul.bf16.vlgmr.msra.gmra.mxu0 %v3694_v1  ;;  %v5347_v1 = vadd.f32 %v11150_v0, %v11088_v54  ;;  %v7896_v54 = vld [vmem:[%s11334_s3 + $0x638] sm:$0xff] }
 0x3d0   : > { %5721 = vmatpush.bf16.msrb.mxu1 %v7860_v17  ;;  %5704 = vmatpush.bf16.msrb.mxu0 %v7850_v36 }
 0x3d1   : > { %5668 = vmatmul.bf16.vlgmr.msra.gmra.mxu2 %v3696_v13  ;;  %5687 = vmatmul.bf16.vlgmr.msra.gmra.mxu3 %v3697_v8  ;;  %v8594_v32 = vpop.permute.xlu1 %8593  ;;  %v3529_v13 = vsel %vm463_vm13, %v8600_v29, %v8601_v34 }
 0x3d2   : > { %5742 = vmatpush.bf16.msrb.mxu2 %v7866_v2  ;;  %v8596_v30 = vunpack.i.h.bf16 %v8594_v32  ;;  %v8595_v11 = vunpack.i.l.bf16 %v8594_v32  ;;  %v8604_v4 = vpop.permute.xlu0 %8603  ;;  %5761 = vmatpush.bf16.msrb.mxu3 %v7874_v39  ;;  %v11209_v41 = vpop.permute.xlu2 %8643 }
 0x3d3   : > { %v5365_v14 = vpop.f32.mrf.mxu2  ;;  %v8606_v42 = vunpack.i.h.bf16 %v8604_v4  ;;  %v8605_v23 = vunpack.i.l.bf16 %v8604_v4  ;;  %v8645_v62 = vunpack.i.l.bf16 %v11209_v41 }
 0x3d4   : > { %5722 = vmatpush.bf16.msrb.mxu1 %v7859_v47  ;;  %v3504_v21 = vsel %vm438_vm14, %v8595_v11, %v8596_v30  ;;  %v5366_v50 = vadd.f32 %v5365_v14, %v5347_v1  ;;  %v5384_v28 = vpop.f32.mrf.mxu3  ;;  %v5403_v16 = vpop.f32.mrf.mxu0  ;;  %5705 = vmatpush.bf16.msrb.mxu0 %v7849_v43  ;;  %v5352_v1 = vadd.f32 %v11150_v0, %v11187_v10 }
 0x3d5   : > { %v3695_v37 = vpack.c.bf16 %v3504_v21, %v3503_v12  ;;  %v3530_v2 = vsel %vm463_vm13, %v8605_v23, %v8606_v42  ;;  %v8620_v42 = vunpack.i.l.bf16 %v11156_v60 }
 0x3d6   : > { %5743 = vmatpush.bf16.msrb.mxu2 %v7865_v19  ;;  %v5385_v40 = vadd.f32 %v5384_v28, %v5366_v50  ;;  %5762 = vmatpush.bf16.msrb.mxu3 %v7873_v48  ;;  %v3721_v47 = vpack.c.bf16 %v3530_v2, %v3529_v13  ;;  %v7892_v48 = vld [vmem:[%s11334_s3 + $0x618] sm:$0xff]  ;;  %v7881_v2 = vld [vmem:[%s11334_s3 + $0x5c0] sm:$0xff] }
 0x3d8   : > { %5723 = vmatpush.bf16.msrb.mxu1 %v7858_v7  ;;  %v11202_v18 = vadd.f32 %v5403_v16, %v5385_v40  ;;  %5774 = vmatpush.bf16.msra.mxu0 %v7888_v57  ;;  %v7891_v16 = vld [vmem:[%s11334_s3 + $0x610] sm:$0xff]  ;;  %v8646_v40 = vunpack.i.h.bf16 %v11209_v41  ;;  %v5354_v41 = vadd.f32 %v11150_v0, %v5353_v53 }
 0x3d9   : > { %5649 = vmatmul.bf16.vlgmr.msra.gmra.mxu1 %v3695_v37  ;;  %v8609_v33 = vpop.permute.xlu1 %8608  ;;  %v7883_v37 = vld [vmem:[%s11334_s3 + $0x5d0] sm:$0xff] }
 0x3da   : > { %7897 = vmatpush.bf16.msra.mxu2 %v7888_v57  ;;  %7905 = vmatpush.bf16.msra.mxu3 %v7896_v54  ;;  %v8611_v52 = vunpack.i.h.bf16 %v8609_v33  ;;  %v8610_v26 = vunpack.i.l.bf16 %v8609_v33  ;;  %v11216_v51 = vpop.permute.xlu0 %8623  ;;  %v11241_v30 = vpop.permute.xlu2 %8658  ;;  %v7890_v33 = vld [vmem:[%s11334_s3 + $0x608] sm:$0xff] }
 0x3db   : > { %v5367_v17 = vpop.f32.mrf.mxu2  ;;  %v8626_v6 = vunpack.i.h.bf16 %v11216_v51  ;;  %v8625_v43 = vunpack.i.l.bf16 %v11216_v51 }
 0x3dc   : > { %5724 = vmatpush.bf16.msrb.mxu1 %v7857_v63  ;;  %v5368_v45 = vadd.f32 %v5367_v17, %v5349_v55  ;;  %v5386_v22 = vpop.f32.mrf.mxu3  ;;  %v3553_v3 = vsel %vm488_vm15, %v8610_v26, %v8611_v52  ;;  %v5405_v46 = vpop.f32.mrf.mxu0  ;;  %5775 = vmatpush.bf16.msra.mxu0 %v7887_v59  ;;  %v7882_v55 = vld [vmem:[%s11334_s3 + $0x5c8] sm:$0xff] }
 0x3dd   : > { %v3722_v8 = vpack.c.bf16 %v3554_v38, %v3553_v3  ;;  %v3600_v34 = vsel %vm438_vm14, %v8625_v43, %v8626_v6  ;;  %v7889_v3 = vld [vmem:[%s11334_s3 + $0x600] sm:$0xff] }
 0x3de   : > { %7898 = vmatpush.bf16.msra.mxu2 %v7887_v59  ;;  %7906 = vmatpush.bf16.msra.mxu3 %v7895_v31  ;;  %v5387_v39 = vadd.f32 %v5386_v22, %v5368_v45  ;;  %v8621_v59 = vunpack.i.h.bf16 %v11156_v60 }
 0x3df   : > { %5635 = vmatmul.bf16.gmra.mxu0 %v3719_v27  ;;  %v7884_v27 = vld [vmem:[%s11334_s3 + $0x5d8] sm:$0xff] }
 0x3e0   : > { %5793 = vmatpush.bf16.msra.mxu1 %v7896_v54  ;;  %v11234_v19 = vadd.f32 %v5405_v46, %v5387_v39  ;;  %5776 = vmatpush.bf16.msra.mxu0 %v7886_v58  ;;  %v3599_v17 = vsel %vm438_vm14, %v8620_v42, %v8621_v59 }
 0x3e1   : > { %5673 = vmatmul.bf16.gmra.mxu2 %v3721_v47  ;;  %5692 = vmatmul.bf16.gmra.mxu3 %v3722_v8  ;;  %v8634_v32 = vpop.permute.xlu1 %8633 }
 0x3e2   : > { %7899 = vmatpush.bf16.msra.mxu2 %v7886_v58  ;;  %7907 = vmatpush.bf16.msra.mxu3 %v7894_v5  ;;  %v8636_v57 = vunpack.i.h.bf16 %v8634_v32  ;;  %v8635_v61 = vunpack.i.l.bf16 %v8634_v32  ;;  %v8629_v56 = vpop.permute.xlu0 %8628  ;;  %v3624_v58 = vsel %vm463_vm13, %v8645_v62, %v8646_v40  ;;  %v8674_v0 = vpop.permute.xlu2 %8673 }
 0x3e3   : > { %v8631_v11 = vunpack.i.h.bf16 %v8629_v56  ;;  %v8630_v4 = vunpack.i.l.bf16 %v8629_v56 }
 0x3e4   : > { %5794 = vmatpush.bf16.msra.mxu1 %v7895_v31  ;;  %v5370_v36 = vpop.f32.mrf.mxu2  ;;  %v5389_v14 = vpop.f32.mrf.mxu3  ;;  %v3506_v7 = vsel %vm438_vm14, %v8635_v61, %v8636_v57  ;;  %5777 = vmatpush.bf16.msra.mxu0 %v7885_v9 }
 0x3e5   : > { %v5371_v54 = vadd.f32 %v5370_v36, %v5352_v1  ;;  %v3505_v12 = vsel %vm438_vm14, %v8630_v4, %v8631_v11  ;;  %v8675_v1 = vunpack.i.l.bf16 %v8674_v0 }
 0x3e6   : > { %7900 = vmatpush.bf16.msra.mxu2 %v7885_v9  ;;  %7908 = vmatpush.bf16.msra.mxu3 %v7893_v44  ;;  %v5422_v21 = vpop.f32.mrf.mxu1  ;;  %v3720_v10 = vpack.c.bf16 %v3506_v7, %v3505_v12  ;;  %v8661_v7 = vunpack.i.h.bf16 %v11241_v30 }
 0x3e7   : > { %v11248_v50 = vadd.f32 %v5389_v14, %v5371_v54  ;;  %v5423_v28 = vadd.f32 %v5422_v21, %v11202_v18  ;;  %v8660_v54 = vunpack.i.l.bf16 %v11241_v30 }
 0x3e8   : > { %5795 = vmatpush.bf16.msra.mxu1 %v7894_v5  ;;  %5778 = vmatpush.bf16.msra.mxu0 %v7884_v27  ;;  %v3700_v5 = vpack.c.bf16 %v3600_v34, %v3599_v17 }
 0x3e9   : > { %5654 = vmatmul.bf16.gmra.mxu1 %v3720_v10  ;;  %v8639_v63 = vpop.permute.xlu1 %8638  ;;  %v3601_v43 = vsel %vm438_vm14, %v8660_v54, %v8661_v7 }
 0x3ea   : > { %7901 = vmatpush.bf16.msra.mxu2 %v7884_v27  ;;  %7909 = vmatpush.bf16.msra.mxu3 %v7892_v48  ;;  %v8641_v23 = vunpack.i.h.bf16 %v8639_v63  ;;  %v8640_v18 = vunpack.i.l.bf16 %v8639_v63  ;;  %v8649_v31 = vpop.permute.xlu0 %8648  ;;  %v8676_v27 = vunpack.i.h.bf16 %v8674_v0  ;;  %v11287_v11 = vpop.permute.xlu2 %8693 }
 0x3eb   : > { %v8651_v8 = vunpack.i.h.bf16 %v8649_v31  ;;  %v8650_v53 = vunpack.i.l.bf16 %v8649_v31 }
 0x3ec   : > { %5796 = vmatpush.bf16.msra.mxu1 %v7893_v44  ;;  %v3623_v60 = vsel %vm463_vm13, %v8640_v18, %v8641_v23  ;;  %v5372_v29 = vpop.f32.mrf.mxu2  ;;  %v5391_v52 = vpop.f32.mrf.mxu3  ;;  %5779 = vmatpush.bf16.msra.mxu0 %v7883_v37  ;;  %v3626_v35 = vsel %vm463_vm13, %v8675_v1, %v8676_v27 }
 0x3ed   : > { %v3701_v26 = vpack.c.bf16 %v3624_v58, %v3623_v60  ;;  %v5373_v51 = vadd.f32 %v5372_v29, %v5354_v41  ;;  %v3575_v9 = vsel %vm513_vm0, %v8650_v53, %v8651_v8 }
 0x3ee   : > { %7902 = vmatpush.bf16.msra.mxu2 %v7883_v37  ;;  %7910 = vmatpush.bf16.msra.mxu3 %v7891_v16  ;;  %v5424_v38 = vpop.f32.mrf.mxu1 }
 0x3ef   : > { %v11274_v45 = vadd.f32 %v5391_v52, %v5373_v51  ;;  %v5425_v22 = vadd.f32 %v5424_v38, %v11234_v19 }
 0x3f0   : > { %5797 = vmatpush.bf16.msra.mxu1 %v7892_v48  ;;  %5780 = vmatpush.bf16.msra.mxu0 %v7882_v55 }
 0x3f1   : > { %5744 = vmatmul.bf16.vlgmr.msrb.gmra.mxu2 %v3700_v5  ;;  %5763 = vmatmul.bf16.vlgmr.msrb.gmra.mxu3 %v3701_v26  ;;  %v8654_v39 = vpop.permute.xlu1 %8653 }
 0x3f2   : > { %7903 = vmatpush.bf16.msra.mxu2 %v7882_v55  ;;  %7911 = vmatpush.bf16.msra.mxu3 %v7890_v33  ;;  %v8656_v13 = vunpack.i.h.bf16 %v8654_v39  ;;  %v8655_v46 = vunpack.i.l.bf16 %v8654_v39  ;;  %v8664_v47 = vpop.permute.xlu0 %8663 }
 0x3f3   : > { %v8666_v4 = vunpack.i.h.bf16 %v8664_v47  ;;  %v8665_v48 = vunpack.i.l.bf16 %v8664_v47 }
 0x3f4   : > { %5798 = vmatpush.bf16.msra.mxu1 %v7891_v16  ;;  %v3576_v44 = vsel %vm513_vm0, %v8655_v46, %v8656_v13  ;;  %v5441_v19 = vpop.f32.mrf.mxu2  ;;  %v5460_v32 = vpop.f32.mrf.mxu3  ;;  %5781 = vmatpush.bf16.msra.mxu0 %v7881_v2 }
 0x3f5   : > { %v3698_v57 = vpack.c.bf16 %v3576_v44, %v3575_v9  ;;  %v5442_v61 = vadd.f32 %v5441_v19, %v5423_v28  ;;  %v3602_v16 = vsel %vm438_vm14, %v8665_v48, %v8666_v4 }
 0x3f6   : > { %7904 = vmatpush.bf16.msra.mxu2 %v7881_v2  ;;  %7912 = vmatpush.bf16.msra.mxu3 %v7889_v3  ;;  %v5427_v36 = vpop.f32.mrf.mxu1  ;;  %v3725_v63 = vpack.c.bf16 %v3602_v16, %v3601_v43  ;;  %v8696_v2 = vunpack.i.h.bf16 %v11287_v11 }
 0x3f7   : > { %v11285_v56 = vadd.f32 %v5460_v32, %v5442_v61  ;;  %5706 = vmatmul.bf16.vlgmr.msrb.gmra.mxu0 %v3698_v57 }
 0x3f8   : > { %5799 = vmatpush.bf16.msra.mxu1 %v7890_v33  ;;  %v8709_v33 = vpop.permute.xlu2 %8708 }
 0x3f9   : > { %5725 = vmatmul.bf16.vlgmr.msrb.gmra.mxu1 %v3699_v20  ;;  %v8669_v14 = vpop.permute.xlu1 %8668  ;;  %v8711_v38 = vunpack.i.h.bf16 %v8709_v33  ;;  %v8710_v5 = vunpack.i.l.bf16 %v8709_v33 }
 0x3fa   : > { %v8671_v12 = vunpack.i.h.bf16 %v8669_v14  ;;  %v8670_v21 = vunpack.i.l.bf16 %v8669_v14  ;;  %v8679_v10 = vpop.permute.xlu0 %8678 }
 0x3fb   : > { %v8681_v59 = vunpack.i.h.bf16 %v8679_v10  ;;  %v8680_v42 = vunpack.i.l.bf16 %v8679_v10 }
 0x3fc   : > { %5800 = vmatpush.bf16.msra.mxu1 %v7889_v3  ;;  %v5443_v28 = vpop.f32.mrf.mxu2  ;;  %v5462_v37 = vpop.f32.mrf.mxu3  ;;  %v3625_v40 = vsel %vm463_vm13, %v8670_v21, %v8671_v12  ;;  %v8695_v3 = vunpack.i.l.bf16 %v11287_v11 }
 0x3fd   : > { %v5444_v15 = vadd.f32 %v5443_v28, %v5425_v22  ;;  %v5408_v20 = vpop.f32.mrf.mxu0  ;;  %v3726_v62 = vpack.c.bf16 %v3626_v35, %v3625_v40 }
 0x3fe   : > { %v5409_v6 = vadd.f32 %v5408_v20, %v11248_v50  ;;  %v5429_v58 = vpop.f32.mrf.mxu1  ;;  %v3577_v50 = vsel %vm513_vm0, %v8680_v42, %v8681_v59  ;;  %v3649_v24 = vsel %vm488_vm15, %v8695_v3, %v8696_v2 }
 0x3ff   : > { %v11299_v30 = vadd.f32 %v5462_v37, %v5444_v15 }
 0x400   : > { %v5428_v23 = vadd.f32 %v5427_v36, %v5409_v6  ;;  %v8719_v27 = vpop.permute.xlu2 %8718 }
 0x401   : > { %5749 = vmatmul.bf16.gmra.mxu2 %v3725_v63  ;;  %5768 = vmatmul.bf16.gmra.mxu3 %v3726_v62  ;;  %v8689_v18 = vpop.permute.xlu1 %8688  ;;  %v8721_v7 = vunpack.i.h.bf16 %v8719_v27  ;;  %v8720_v54 = vunpack.i.l.bf16 %v8719_v27 }
 0x402   : > { %v8691_v31 = vunpack.i.h.bf16 %v8689_v18  ;;  %v8690_v55 = vunpack.i.l.bf16 %v8689_v18  ;;  %v8684_v41 = vpop.permute.xlu0 %8683 }
 0x403   : > { %v8686_v48 = vunpack.i.h.bf16 %v8684_v41  ;;  %v8685_v36 = vunpack.i.l.bf16 %v8684_v41  ;;  %v3671_v20 = vsel %vm513_vm0, %v8720_v54, %v8721_v7 }
 0x404   : > { %v5446_v34 = vpop.f32.mrf.mxu2  ;;  %v5465_v60 = vpop.f32.mrf.mxu3  ;;  %v3578_v29 = vsel %vm513_vm0, %v8690_v55, %v8691_v31 }
 0x405   : > { %v5447_v52 = vadd.f32 %v5446_v34, %v5428_v23  ;;  %v5410_v26 = vpop.f32.mrf.mxu0  ;;  %v3723_v51 = vpack.c.bf16 %v3578_v29, %v3577_v50  ;;  %v3647_v40 = vsel %vm488_vm15, %v8685_v36, %v8686_v48 }
 0x406   : > { %v5411_v17 = vadd.f32 %v5410_v26, %v11274_v45  ;;  %v3674_v45 = vsel %vm513_vm0, %v8710_v5, %v8711_v38  ;;  %v5498_v25 = vpop.f32.mrf.mxu1 }
 0x407   : > { %v5466_v0 = vadd.f32 %v5465_v60, %v5447_v52  ;;  %5711 = vmatmul.bf16.gmra.mxu0 %v3723_v51 }
 0x408   : > { %v5430_v22 = vadd.f32 %v5429_v58, %v5411_v17 }
 0x409   : > { %5730 = vmatmul.bf16.gmra.mxu1 %v3724_v49  ;;  %v8704_v8 = vpop.permute.xlu1 %8703 }
 0x40a   : > { %v8706_v53 = vunpack.i.h.bf16 %v8704_v8  ;;  %v8705_v39 = vunpack.i.l.bf16 %v8704_v8  ;;  %v8699_v13 = vpop.permute.xlu0 %8698 }
 0x40b   : > { %v8701_v46 = vunpack.i.h.bf16 %v8699_v13  ;;  %v8700_v47 = vunpack.i.l.bf16 %v8699_v13 }
 0x40c   : > { %v3673_v9 = vsel %vm513_vm0, %v8705_v39, %v8706_v53  ;;  %v5448_v44 = vpop.f32.mrf.mxu2  ;;  %v5467_v19 = vpop.f32.mrf.mxu3 }
 0x40d   : > { %v3728_v49 = vpack.c.bf16 %v3674_v45, %v3673_v9  ;;  %v3650_v32 = vsel %vm488_vm15, %v8700_v47, %v8701_v46  ;;  %v5449_v57 = vadd.f32 %v5448_v44, %v5430_v22  ;;  %v5479_v61 = vpop.f32.mrf.mxu0 }
 0x40e   : > { %v3727_v1 = vpack.c.bf16 %v3650_v32, %v3649_v24  ;;  %v5480_v11 = vadd.f32 %v5479_v61, %v11285_v56  ;;  %v5500_v23 = vpop.f32.mrf.mxu1 }
 0x40f   : > { %v5468_v4 = vadd.f32 %v5467_v19, %v5449_v57 }
 0x410   : > { %v5499_v14 = vadd.f32 %v5498_v25, %v5480_v11 }
 0x411   : > { %5787 = vmatmul.bf16.vlgmr.msra.gmra.mxu2 %v3727_v1  ;;  %5806 = vmatmul.bf16.vlgmr.msra.gmra.mxu3 %v3728_v49  ;;  %v8714_v12 = vpop.permute.xlu1 %8713 }
 0x412   : > { %v8716_v21 = vunpack.i.h.bf16 %v8714_v12  ;;  %v8715_v10 = vunpack.i.l.bf16 %v8714_v12  ;;  %v8724_v28 = vpop.permute.xlu0 %8723 }
 0x413   : > { %v8726_v37 = vunpack.i.h.bf16 %v8724_v28  ;;  %v8725_v16 = vunpack.i.l.bf16 %v8724_v28 }
 0x414   : > { %v3648_v35 = vsel %vm488_vm15, %v8715_v10, %v8716_v21  ;;  %v5517_v15 = vpop.f32.mrf.mxu2  ;;  %v5536_v56 = vpop.f32.mrf.mxu3 }
 0x415   : > { %v3702_v62 = vpack.c.bf16 %v3648_v35, %v3647_v40  ;;  %v3672_v6 = vsel %vm513_vm0, %v8725_v16, %v8726_v37  ;;  %v5518_v43 = vadd.f32 %v5517_v15, %v5499_v14  ;;  %v5481_v63 = vpop.f32.mrf.mxu0 }
 0x416   : > { %v3703_v59 = vpack.c.bf16 %v3672_v6, %v3671_v20  ;;  %v5482_v42 = vadd.f32 %v5481_v63, %v11299_v30 }
 0x417   : > { %v5537_v18 = vadd.f32 %v5536_v56, %v5518_v43  ;;  %5782 = vmatmul.bf16.vlgmr.msra.gmra.mxu0 %v3702_v62 }
 0x418   : > { %v5501_v31 = vadd.f32 %v5500_v23, %v5482_v42 }
 0x419   : > { %5801 = vmatmul.bf16.vlgmr.msra.gmra.mxu1 %v3703_v59 }
 0x41c   : > { %v5519_v55 = vpop.f32.mrf.mxu2  ;;  %v5538_v41 = vpop.f32.mrf.mxu3 }
 0x41d   : > { %v5520_v33 = vadd.f32 %v5519_v55, %v5501_v31  ;;  %v5484_v58 = vpop.f32.mrf.mxu0 }
 0x41e   : > { %v5485_v34 = vadd.f32 %v5484_v58, %v5466_v0 }
 0x41f   : > { %v5539_v60 = vadd.f32 %v5538_v41, %v5520_v33 }
 0x424   : > { %v5522_v50 = vpop.f32.mrf.mxu2  ;;  %v5541_v29 = vpop.f32.mrf.mxu3 }
 0x425   : > { %v5486_v52 = vpop.f32.mrf.mxu0  ;;  %v5503_v26 = vpop.f32.mrf.mxu1 }
 0x426   : > { %v5487_v51 = vadd.f32 %v5486_v52, %v5468_v4  ;;  %v5504_v17 = vadd.f32 %v5503_v26, %v5485_v34 }
 0x428   : > { %v5523_v38 = vadd.f32 %v5522_v50, %v5504_v17 }
 0x42a   : > { %v5542_v5 = vadd.f32 %v5541_v29, %v5523_v38 }
 0x42c   : > { %v5524_v30 = vpop.f32.mrf.mxu2  ;;  %v5543_v22 = vpop.f32.mrf.mxu3 }
 0x42d   : > { %v5505_v2 = vpop.f32.mrf.mxu1  ;;  %v5555_v3 = vpop.f32.mrf.mxu0 }
 0x42e   : > { %v5506_v8 = vadd.f32 %v5505_v2, %v5487_v51  ;;  %v5556_v53 = vadd.f32 %v5555_v3, %v5537_v18 }
 0x430   : > { %v5525_v39 = vadd.f32 %v5524_v30, %v5506_v8 }
 0x432   : > { %v5544_v13 = vadd.f32 %v5543_v22, %v5525_v39 }
 0x434   : > { %v5593_v46 = vpop.f32.mrf.mxu2  ;;  %v5612_v47 = vpop.f32.mrf.mxu3 }
 0x435   : > { %v5557_v0 = vpop.f32.mrf.mxu0  ;;  %v5574_v45 = vpop.f32.mrf.mxu1 }
 0x436   : > { %v5558_v9 = vadd.f32 %v5557_v0, %v5539_v60  ;;  %v5575_v44 = vadd.f32 %v5574_v45, %v5556_v53 }
 0x438   : > { %v5594_v19 = vadd.f32 %v5593_v46, %v5575_v44 }
 0x43a   : > { %v5613_v24 = vadd.f32 %v5612_v47, %v5594_v19 }
 0x43c   : > { %v5595_v25 = vpop.f32.mrf.mxu2  ;;  %v5614_v49 = vpop.f32.mrf.mxu3 }
 0x43d   : > { %v5560_v32 = vpop.f32.mrf.mxu0  ;;  %v5576_v57 = vpop.f32.mrf.mxu1 }
 0x43e   : > { %v5577_v61 = vadd.f32 %v5576_v57, %v5558_v9  ;;  %v5561_v42 = vadd.f32 %v5560_v32, %v5542_v5 }
 0x440   : > { %v5596_v27 = vadd.f32 %v5595_v25, %v5577_v61 }
 0x442   : > { %v5615_v1 = vadd.f32 %v5614_v49, %v5596_v27 }
 0x444   : > { %v5598_v11 = vpop.f32.mrf.mxu2  ;;  %v5617_v4 = vpop.f32.mrf.mxu3 }
 0x445   : > { %v5562_v48 = vpop.f32.mrf.mxu0 }
 0x446   : > { %v5579_v36 = vpop.f32.mrf.mxu1  ;;  %v5563_v58 = vadd.f32 %v5562_v48, %v5544_v13 }
 0x447   : > { %v5580_v23 = vadd.f32 %v5579_v36, %v5561_v42 }
 0x449   : > { %v5599_v55 = vadd.f32 %v5598_v11, %v5580_v23 }
 0x44b   : > { %v5618_v60 = vadd.f32 %v5617_v4, %v5599_v55 }
 0x44c   : > { %v5600_v14 = vpop.f32.mrf.mxu2  ;;  %v5619_v7 = vpop.f32.mrf.mxu3 }
 0x44d   : > { %v5631_v12 = vpop.f32.mrf.mxu0 }
 0x44e   : > { %v5581_v54 = vpop.f32.mrf.mxu1  ;;  %v5632_v29 = vadd.f32 %v5631_v12, %v5613_v24 }
 0x44f   : > { %v5582_v34 = vadd.f32 %v5581_v54, %v5563_v58 }
 0x451   : > { %v5601_v51 = vadd.f32 %v5600_v14, %v5582_v34 }
 0x453   : > { %v5620_v2 = vadd.f32 %v5619_v7, %v5601_v51  ;;  %v4130_v51 = vld [vmem:[%s8799_s28 + $0x8] sm:$0xff] }
 0x454   : > { %v5669_v21 = vpop.f32.mrf.mxu2  ;;  %v5688_v10 = vpop.f32.mrf.mxu3 }
 0x455   : > { %v5633_v37 = vpop.f32.mrf.mxu0 }
 0x456   : > { %v5650_v28 = vpop.f32.mrf.mxu1  ;;  %v5634_v53 = vadd.f32 %v5633_v37, %v5615_v1 }
 0x457   : > { %v5651_v22 = vadd.f32 %v5650_v28, %v5632_v29 }
 0x459   : > { %v5670_v3 = vadd.f32 %v5669_v21, %v5651_v22 }
 0x45b   : > { %v5689_v44 = vadd.f32 %v5688_v10, %v5670_v3 }
 0x45c   : > { %v5671_v16 = vpop.f32.mrf.mxu2  ;;  %v5690_v40 = vpop.f32.mrf.mxu3 }
 0x45d   : > { %v5636_v15 = vpop.f32.mrf.mxu0 }
 0x45e   : > { %v5652_v35 = vpop.f32.mrf.mxu1  ;;  %v5637_v50 = vadd.f32 %v5636_v15, %v5618_v60  ;;  %v4132_v60 = vld [vmem:[%s8799_s28 + $0x18] sm:$0xff] }
 0x45f   : > { %v5653_v9 = vadd.f32 %v5652_v35, %v5634_v53 }
 0x461   : > { %v5672_v49 = vadd.f32 %v5671_v16, %v5653_v9 }
 0x463   : > { %v5691_v48 = vadd.f32 %v5690_v40, %v5672_v49 }
 0x464   : > { %v5674_v56 = vpop.f32.mrf.mxu2  ;;  %v5693_v20 = vpop.f32.mrf.mxu3 }
 0x465   : > { %v5638_v63 = vpop.f32.mrf.mxu0 }
 0x466   : > { %v5655_v62 = vpop.f32.mrf.mxu1  ;;  %v5639_v8 = vadd.f32 %v5638_v63, %v5620_v2 }
 0x467   : > { %v5656_v17 = vadd.f32 %v5655_v62, %v5637_v50 }
 0x469   : > { %v5675_v5 = vadd.f32 %v5674_v56, %v5656_v17 }
 0x46b   : > { %v5694_v13 = vadd.f32 %v5693_v20, %v5675_v5  ;;  %v4131_v20 = vld [vmem:[%s8799_s28 + $0x10] sm:$0xff] }
 0x46c   : > { %v5676_v6 = vpop.f32.mrf.mxu2  ;;  %v5695_v43 = vpop.f32.mrf.mxu3 }
 0x46e   : > { %v5657_v59 = vpop.f32.mrf.mxu1 }
 0x46f   : > { %v5658_v47 = vadd.f32 %v5657_v59, %v5639_v8 }
 0x471   : > { %v5677_v25 = vadd.f32 %v5676_v6, %v5658_v47 }
 0x473   : > { %v5696_v11 = vadd.f32 %v5695_v43, %v5677_v25  ;;  %v4129_v43 = vld [vmem:[%s8799_s28] sm:$0xff] }
 0x474   : > { %v5745_v18 = vpop.f32.mrf.mxu2  ;;  %v5764_v31 = vpop.f32.mrf.mxu3 }
 0x475   : > { %v5707_v41 = vpop.f32.mrf.mxu0 }
 0x476   : > { %v5726_v33 = vpop.f32.mrf.mxu1  ;;  %v5708_v24 = vadd.f32 %v5707_v41, %v5689_v44 }
 0x478   : > { %v5727_v57 = vadd.f32 %v5726_v33, %v5708_v24 }
 0x47a   : > { %v5746_v7 = vadd.f32 %v5745_v18, %v5727_v57 }
 0x47c   : > { %v5747_v52 = vpop.f32.mrf.mxu2  ;;  %v5766_v26 = vpop.f32.mrf.mxu3  ;;  %v5765_v16 = vadd.f32 %v5764_v31, %v5746_v7 }
 0x47d   : > { %v5709_v38 = vpop.f32.mrf.mxu0 }
 0x47e   : > { %v5728_v30 = vpop.f32.mrf.mxu1  ;;  %v5710_v54 = vadd.f32 %v5709_v38, %v5691_v48 }
 0x480   : > { %v5729_v10 = vadd.f32 %v5728_v30, %v5710_v54 }
 0x482   : > { %v5748_v63 = vadd.f32 %v5747_v52, %v5729_v10 }
 0x484   : > { %v5750_v39 = vpop.f32.mrf.mxu2  ;;  %v5769_v46 = vpop.f32.mrf.mxu3  ;;  %v5767_v41 = vadd.f32 %v5766_v26, %v5748_v63 }
 0x485   : > { %v5712_v0 = vpop.f32.mrf.mxu0 }
 0x486   : > { %v5731_v45 = vpop.f32.mrf.mxu1  ;;  %v5713_v19 = vadd.f32 %v5712_v0, %v5694_v13 }
 0x488   : > { %v5732_v32 = vadd.f32 %v5731_v45, %v5713_v19 }
 0x48a   : > { %v5751_v36 = vadd.f32 %v5750_v39, %v5732_v32 }
 0x48c   : > { %v5752_v61 = vpop.f32.mrf.mxu2  ;;  %v5771_v27 = vpop.f32.mrf.mxu3  ;;  %v5770_v21 = vadd.f32 %v5769_v46, %v5751_v36 }
 0x48d   : > { %v5714_v4 = vpop.f32.mrf.mxu0 }
 0x48e   : > { %v5733_v1 = vpop.f32.mrf.mxu1  ;;  %v5715_v14 = vadd.f32 %v5714_v4, %v5696_v11 }
 0x490   : > { %v5734_v12 = vadd.f32 %v5733_v1, %v5715_v14 }
 0x492   : > { %v5753_v6 = vadd.f32 %v5752_v61, %v5734_v12 }
 0x494   : > { %v5788_v28 = vpop.f32.mrf.mxu2  ;;  %v5807_v37 = vpop.f32.mrf.mxu3  ;;  %v5772_v18 = vadd.f32 %v5771_v27, %v5753_v6 }
 0x495   : > { %v5789_v35 = vadd.f32 %v5788_v28, %v5770_v21  ;;  %v5783_v15 = vpop.f32.mrf.mxu0 }
 0x496   : > { %v5802_v56 = vpop.f32.mrf.mxu1  ;;  %v5784_v62 = vadd.f32 %v5783_v15, %v5765_v16 }
 0x497   : > { %v5808_v40 = vadd.f32 %v5807_v37, %v5789_v35 }
 0x498   : > { %v5803_v59 = vadd.f32 %v5802_v56, %v5784_v62 }
 0x499   : > { %v5814_v42 = vadd.f32 %v5808_v40, %v4131_v20 }
 0x49a   : > { %v5812_v23 = vadd.f32 %v5803_v59, %v4129_v43 }
 0x49b   : > { %v5818_v33 = vmax.f32 %v5814_v42, 0.0 }
 0x49c   : > { %v5816_v31 = vmax.f32 %v5812_v23, 0.0  ;;  %v5790_v55 = vpop.f32.mrf.mxu2  ;;  %v5809_v50 = vpop.f32.mrf.mxu3 }
 0x49d   : > { %v5791_v58 = vadd.f32 %v5790_v55, %v5772_v18  ;;  %v5785_v34 = vpop.f32.mrf.mxu0  ;;  %5822 = vst [vmem:[%s231_s16 + $0x10] sm:$0xff] %v5818_v33 }
 0x49e   : > { %5820 = vst [vmem:[%s231_s16] sm:$0xff] %v5816_v31  ;;  %v5786_v29 = vadd.f32 %v5785_v34, %v5767_v41  ;;  %v5804_v17 = vpop.f32.mrf.mxu1 }
 0x49f   : > { %v5810_v52 = vadd.f32 %v5809_v50, %v5791_v58 }
 0x4a0   : > { %v5805_v38 = vadd.f32 %v5804_v17, %v5786_v29 }
 0x4a1   : > { %v5815_v30 = vadd.f32 %v5810_v52, %v4132_v60 }
 0x4a2   : > { %v5813_v22 = vadd.f32 %v5805_v38, %v4130_v51 }
 0x4a3   : > { %v5819_v5 = vmax.f32 %v5815_v30, 0.0 }
 0x4a4   : > { %v5817_v2 = vmax.f32 %v5813_v22, 0.0 }
 0x4a5   : > { %5823 = vst [vmem:[%s231_s16 + $0x18] sm:$0xff] %v5819_v5 }
 0x4a6   : > { %5821 = vst [vmem:[%s231_s16 + $0x8] sm:$0xff] %v5817_v2 }
 0x4a7 PF: > { %s15_s18 = sadd.s32 1, %s8737_s18  }
 0x4a8   : > { %p12_p4 = scmp.ge.s32.totalorder %s15_s18, 4  }
 0x4aa   :  { %14 = sbr.rel (!%p12_p4) target bundleno = 1 (0x1), region = 70 }

</bundles_post_ra>
